<compile_context>
chip_gen: v7x
topology: tpu7x:2x2x1
jax: 0.10.0
libtpu: 0.0.40
codegen_flags: <defaults>
</compile_context>

<pallas_src>
import functools

import jax
import jax.numpy as jnp
from jax import lax
from jax.experimental import pallas as pl
from jax.experimental.pallas import tpu as pltpu


def _round_up(v, m):
    return ((v + m - 1) // m) * m


def _silu(v):
    return v * jax.nn.sigmoid(v)


# ----------------------------- generation-aware tiling plan -----------------------------

def _plan_tiles(Np, Hp, OUTp, Ep, XD=128):
    """Pick (one-hot VMEM residency, edge tile TE, vmem_limit_bytes) from the chip's VMEM."""
    try:
        vmem_cap = int(pltpu.get_tpu_info().vmem_capacity_bytes)
    except Exception:
        vmem_cap = 64 * 1024 * 1024                      # conservative fallback (v7x per-core)
    vmem_cap = max(32 << 20, min(vmem_cap, 128 << 20))
    budget = int(vmem_cap * 0.70)

    # Rough footprint: persistent node scratch + double-buffered node I/O + per-layer weights.
    scratch = Np * (12 * Hp + 8 * XD)                    # h,x,a,b,acc_h,acc_x
    node_io = 2 * Np * (4 * Hp + 8 * XD + 4 + 4 * OUTp)  # h0,x0,invdeg,h_out,x_out (2 bufs)
    weights = 4 * (7 * Hp * Hp + Hp * OUTp)              # bf16 weight blocks, 2 bufs
    base = scratch + node_io + weights + (2 << 20)

    def fits(te, res):
        onehot = 2 * 2 * (Ep if res else te) * Np        # int8 g_row+g_col, assume 2 buffers
        temps = te * (12 * Np + 32 * Hp + 24 * XD)       # per-tile temporaries (rough)
        return base + onehot + temps <= budget

    vmem_limit = min(int(vmem_cap * 0.85), 100 << 20)    # ~100 MiB on v5e/v6e, ~54 MiB on v7x
    for res in (True, False):                            # prefer residency (no per-layer restream)
        for te in (512, 256, 128):                       # prefer the largest edge tile that fits
            if Ep % te == 0 and fits(te, res):
                return res, te, vmem_limit
    return False, 128, vmem_limit


# ----------------------------------- fused kernel ---------------------------------------

def _egnn_fused_kernel(TE, resident,
                       h0_ref, x0_ref, invdeg_ref, g_row_ref, g_col_ref,
                       we1_ref, we1_rad_ref, be1_ref, we2_ref, be2_ref,
                       wc1_ref, bc1_ref, wc2_ref, wn1_ref, bn1_ref, wn2_ref, bn2_ref,
                       wemb_ref, bemb_ref,
                       h_out_ref, x_out_ref,
                       h_s, x_s, a_s, b_s, acc_h_s, acc_x_s):
    f32 = jnp.float32
    bf16 = jnp.bfloat16
    Hp = a_s.shape[-1]
    l = pl.program_id(0)
    e = pl.program_id(1)
    nl = pl.num_programs(0)
    ne = pl.num_programs(1)

    # ---- per-layer init: node-level work hoisted out of the edge loop ----
    @pl.when(e == 0)
    def _layer_init():
        @pl.when(l == 0)
        def _():
            h_s[...] = h0_ref[...]
            x_s[...] = x0_ref[...]
        hb = h_s[...].astype(bf16)
        # Hoisted + fused first edge-MLP matmuls: (Np,Hp)x(Hp,2Hp) -> [h@W_src | h@W_dst].
        ab = jnp.dot(hb, we1_ref[0], preferred_element_type=f32)
        a_s[...] = ab[:, :Hp].astype(bf16)
        b_s[...] = ab[:, Hp:].astype(bf16)
        acc_h_s[...] = jnp.zeros_like(acc_h_s)
        acc_x_s[...] = jnp.zeros_like(acc_x_s)

    # ---- per-edge-tile work ----
    if resident:
        off = pl.multiple_of(e * TE, TE)
        g_r = g_row_ref[pl.ds(off, TE), :].astype(f32)        # (TE, Np) exact 0/1
        g_c = g_col_ref[pl.ds(off, TE), :].astype(f32)
    else:
        g_r = g_row_ref[...].astype(f32)
        g_c = g_col_ref[...].astype(f32)
    g_r_bf = g_r.astype(bf16)
    g_c_bf = g_c.astype(bf16)

    # Gathers: h[row]@W_src, h[col]@W_dst (bf16 MXU, f32 accumulate).
    rowh = jnp.dot(g_r_bf, a_s[...], preferred_element_type=f32)            # (TE, Hp)
    colh = jnp.dot(g_c_bf, b_s[...], preferred_element_type=f32)            # (TE, Hp)

    # Coordinate path in full f32: (onehot_row - onehot_col) @ x == x[row] - x[col] exactly.
    coord_diff = jnp.dot(g_r - g_c, x_s[...], preferred_element_type=f32)   # (TE, XD)
    radial = jnp.sum(coord_diff * coord_diff, axis=1, keepdims=True)        # (TE, 1)

    # edge_mlp: Linear(2H+1, H) (first matmuls hoisted) + SiLU + Linear(H, H) + SiLU.
    e_pre = rowh + colh + radial * we1_rad_ref[0] + be1_ref[0]
    e1 = _silu(e_pre)
    edge_feat = _silu(jnp.dot(e1.astype(bf16), we2_ref[0],
                              preferred_element_type=f32) + be2_ref[0])      # (TE, Hp)

    # coord_mlp: Linear(H,H) + SiLU + Linear(H,1, no bias).
    c1 = _silu(jnp.dot(edge_feat.astype(bf16), wc1_ref[0],
                       preferred_element_type=f32) + bc1_ref[0])
    c2 = jnp.dot(c1.astype(bf16), wc2_ref[0], preferred_element_type=f32)    # (TE, 1)
    trans = coord_diff * c2                                                  # (TE, XD) f32

    # Scatter-add via a transposed contraction of the SAME g_row tile (no s_row HBM stream):
    #   acc[n, :] += sum_e onehot_row[e, n] * feat[e, :]
    dn = (((0,), (0,)), ((), ()))
    acc_h_s[...] += lax.dot_general(g_r_bf, edge_feat.astype(bf16), dn,
                                    preferred_element_type=f32)              # (Np, Hp)
    acc_x_s[...] += lax.dot_general(g_r, trans, dn,
                                    preferred_element_type=f32)              # (Np, XD) f32

    # ---- per-layer finalize: segment mean, node MLP, residuals ----
    @pl.when(e == ne - 1)
    def _layer_finalize():
        agg_h = acc_h_s[...]                          # unsorted_segment_sum(edge_feat, row)
        agg_x = acc_x_s[...] * invdeg_ref[...]        # unsorted_segment_mean(trans, row)
        x_s[...] = x_s[...] + agg_x

        h = h_s[...]
        # node_mlp first layer fused to a single K=2*Hp matmul: concat[h, agg] @ [Wh; Wagg].
        hcat = jnp.concatenate([h, agg_h], axis=1).astype(bf16)              # (Np, 2Hp)
        n1 = _silu(jnp.dot(hcat, wn1_ref[0], preferred_element_type=f32) + bn1_ref[0])
        out = jnp.dot(n1.astype(bf16), wn2_ref[0], preferred_element_type=f32) + bn2_ref[0]
        h_new = h + out                               # residual
        h_s[...] = h_new

        # embedding_out folded into the last layer's finalize step.
        @pl.when(l == nl - 1)
        def _():
            h_out_ref[...] = (jnp.dot(h_new.astype(bf16), wemb_ref[...],
                                      preferred_element_type=f32) + bemb_ref[...])
            x_out_ref[...] = x_s[...]


# ------------------------------------- wrapper -------------------------------------------

def egnn_forward(h, x, edges, params):
    """EGNN_Model.forward with pool_strategy='topK' (GSA branch never runs)."""
    meta = params['meta']
    H, Hp = meta['H'], meta['Hp']
    out_nf, OUTp = meta['out_nf'], meta['OUTp']
    L = meta['n_layers']
    XD = 128                                   # coords padded to one full 128-lane tile

    f32 = jnp.float32
    N = h.shape[0]
    Np = _round_up(N, 128)                     # lane dim of one-hots / MXU contraction dim
    E = edges.shape[1]
    Ep = _round_up(E, 128)

    resident, TE, vmem_limit = _plan_tiles(Np, Hp, OUTp, Ep, XD)

    h0 = jnp.pad(h.astype(f32), ((0, Np - N), (0, Hp - H)))
    x0 = jnp.pad(x.astype(f32), ((0, Np - N), (0, XD - x.shape[1])))

    row, col = edges[0], edges[1]
    # int8 one-hots (exact 0/1): half the HBM bytes of bf16, upcast in-kernel.
    g_row = jnp.pad(jax.nn.one_hot(row, Np, dtype=jnp.int8), ((0, Ep - E), (0, 0)))
    g_col = jnp.pad(jax.nn.one_hot(col, Np, dtype=jnp.int8), ((0, Ep - E), (0, 0)))
    deg = jnp.zeros((Np,), f32).at[row].add(1.0)
    inv_deg = (1.0 / jnp.maximum(deg, 1.0))[:, None]          # (Np, 1), precomputed once

    def fixed(shape):
        return pl.BlockSpec(shape, lambda l, e, _n=len(shape): (0,) * _n)

    def per_layer(shape):
        return pl.BlockSpec(shape, lambda l, e, _n=len(shape): (l,) + (0,) * (_n - 1))

    if resident:
        # Constant index_map -> whole one-hot matrices are DMA'd into VMEM once and reused
        # across ALL layers and edge tiles (no per-layer HBM re-streaming).
        g_spec = fixed((Ep, Np))
    else:
        g_spec = pl.BlockSpec((TE, Np), lambda l, e: (e, 0))

    in_specs = [
        fixed((Np, Hp)), fixed((Np, XD)), fixed((Np, 1)),
        g_spec, g_spec,
        per_layer((1, Hp, 2 * Hp)), per_layer((1, 1, Hp)), per_layer((1, 1, Hp)),
        per_layer((1, Hp, Hp)), per_layer((1, 1, Hp)),
        per_layer((1, Hp, Hp)), per_layer((1, 1, Hp)), per_layer((1, Hp, 1)),
        per_layer((1, 2 * Hp, Hp)), per_layer((1, 1, Hp)),
        per_layer((1, Hp, Hp)), per_layer((1, 1, Hp)),
        fixed((Hp, OUTp)), fixed((1, OUTp)),
    ]
    out_specs = (fixed((Np, OUTp)), fixed((Np, XD)))

    kernel = functools.partial(_egnn_fused_kernel, TE, resident)

    h_out, x_out = pl.pallas_call(
        kernel,
        grid=(L, Ep // TE),
        in_specs=in_specs,
        out_specs=out_specs,
        out_shape=(jax.ShapeDtypeStruct((Np, OUTp), f32),
                   jax.ShapeDtypeStruct((Np, XD), f32)),
        scratch_shapes=[
            pltpu.VMEM((Np, Hp), f32),           # h   (resident across layers)
            pltpu.VMEM((Np, XD), f32),           # x   (resident across layers, f32)
            pltpu.VMEM((Np, Hp), jnp.bfloat16),  # h @ W_src
            pltpu.VMEM((Np, Hp), jnp.bfloat16),  # h @ W_dst
            pltpu.VMEM((Np, Hp), f32),           # scatter acc: segment_sum(edge_feat)
            pltpu.VMEM((Np, XD), f32),           # scatter acc: segment_sum(trans), f32
        ],
        compiler_params=pltpu.CompilerParams(
            dimension_semantics=("arbitrary", "arbitrary"),
            vmem_limit_bytes=vmem_limit),
    )(h0, x0, inv_deg, g_row, g_col,
      params['we1'], params['we1_rad'], params['be1'], params['we2'], params['be2'],
      params['wc1'], params['bc1'], params['wc2'],
      params['wn1'], params['bn1'], params['wn2'], params['bn2'],
      params['emb_out_w'], params['emb_out_b'])

    # TODO(synk): Pool/GSAPool/Unpool (torch.topk + dgl subgraph) branch only runs when
    #             pool_strategy == 'GSA'; unreachable with the default 'topK', not ported.
    # TODO(synk): for N >> 1k replace the dense one-hot gather/scatter with an index-based
    #             path (PrefetchScalarGridSpec + row DMA); one-hot is the small-N fast path.
    # TODO(synk): v7x 2-TensorCore split of the edge-tile axis (core_map + per-core acc) and
    #             row-chunked finalize for very large Np are not implemented here.
    return h_out[:N, :out_nf], x_out[:N, :x.shape[1]]


# ----------------------------- pure-JAX f32 reference (self-check) -----------------------

def egnn_reference(h, x, edges, params):
    meta = params['meta']
    H, Hp, L, out_nf = meta['H'], meta['Hp'], meta['n_layers'], meta['out_nf']
    f32 = jnp.float32
    row, col = edges[0], edges[1]
    N = h.shape[0]
    h = h.astype(f32)
    x = x.astype(f32)
    deg = jnp.zeros((N,), f32).at[row].add(1.0)
    inv_deg = 1.0 / jnp.maximum(deg, 1.0)
    for i in range(L):
        W1s = params['we1'][i, :H, :H].astype(f32)
        W1d = params['we1'][i, :H, Hp:Hp + H].astype(f32)
        w_rad = params['we1_rad'][i, 0, :H]
        b1 = params['be1'][i, 0, :H]
        W2 = params['we2'][i, :H, :H].astype(f32)
        b2 = params['be2'][i, 0, :H]
        Wc1 = params['wc1'][i, :H, :H].astype(f32)
        bc1 = params['bc1'][i, 0, :H]
        Wc2 = params['wc2'][i, :H, :1].astype(f32)
        Wn1h = params['wn1'][i, :H, :H].astype(f32)
        Wn1a = params['wn1'][i, Hp:Hp + H, :H].astype(f32)
        bn1 = params['bn1'][i, 0, :H]
        Wn2 = params['wn2'][i, :H, :H].astype(f32)
        bn2 = params['bn2'][i, 0, :H]

        coord_diff = x[row] - x[col]
        radial = jnp.sum(coord_diff ** 2, axis=1, keepdims=True)
        e1 = _silu(h[row] @ W1s + h[col] @ W1d + radial * w_rad + b1)
        edge_feat = _silu(e1 @ W2 + b2)
        c2 = _silu(edge_feat @ Wc1 + bc1) @ Wc2
        trans = coord_diff * c2
        x = x + jnp.zeros_like(x).at[row].add(trans) * inv_deg[:, None]
        agg_h = jnp.zeros_like(h).at[row].add(edge_feat)
        n1 = _silu(h @ Wn1h + agg_h @ Wn1a + bn1)
        h = h + (n1 @ Wn2 + bn2)
    h = h @ params['emb_out_w'][:H, :out_nf].astype(f32) + params['emb_out_b'][0, :out_nf]
    return h, x


# ------------------------- deterministic parameter init ----------------------------------

def _linear_init(key, fan_in, fan_out, bias=True):
    """Matches PyTorch nn.Linear default init: U(-1/sqrt(fan_in), 1/sqrt(fan_in))."""
    k_w, k_b = jax.random.split(key)
    bound = 1.0 / float(fan_in) ** 0.5
    w = jax.random.uniform(k_w, (fan_in, fan_out), jnp.float32, -bound, bound)
    if bias:
        b = jax.random.uniform(k_b, (1, fan_out), jnp.float32, -bound, bound)
        return w, b
    return w, None


def init_params(key, hidden_nf, out_node_nf, n_layers):
    H = hidden_nf
    Hp = _round_up(H, 128)
    OUTp = _round_up(out_node_nf, 128)

    def pad2(a, r, c):
        return jnp.pad(a, ((0, r - a.shape[0]), (0, c - a.shape[1])))

    names = ('we1', 'we1_rad', 'be1', 'we2', 'be2',
             'wc1', 'bc1', 'wc2', 'wn1', 'bn1', 'wn2', 'bn2')
    stk = {k: [] for k in names}
    keys = jax.random.split(key, n_layers + 1)
    for i in range(n_layers):
        ks = jax.random.split(keys[i], 6)
        we1, be1 = _linear_init(ks[0], 2 * H + 1, H)    # edge_mlp Linear(2H+1, H)
        we2, be2 = _linear_init(ks[1], H, H)            # edge_mlp Linear(H, H)
        wn1, bn1 = _linear_init(ks[2], 2 * H, H)        # node_mlp Linear(2H, H)
        wn2, bn2 = _linear_init(ks[3], H, H)            # node_mlp Linear(H, H)
        wc1, bc1 = _linear_init(ks[4], H, H)            # coord_mlp Linear(H, H)
        xav = 0.001 * (6.0 / (H + 1)) ** 0.5            # xavier_uniform gain=0.001
        wc2 = jax.random.uniform(ks[5], (H, 1), jnp.float32, -xav, xav)

        # Stack [W_src | W_dst] on the output axis; [W_h ; W_agg] on the input axis.
        stk['we1'].append(jnp.concatenate(
            [pad2(we1[:H], Hp, Hp), pad2(we1[H:2 * H], Hp, Hp)], axis=1))    # (Hp, 2Hp)
        stk['we1_rad'].append(pad2(we1[2 * H:], 1, Hp))
        stk['be1'].append(pad2(be1, 1, Hp))
        stk['we2'].append(pad2(we2, Hp, Hp))
        stk['be2'].append(pad2(be2, 1, Hp))
        stk['wc1'].append(pad2(wc1, Hp, Hp))
        stk['bc1'].append(pad2(bc1, 1, Hp))
        stk['wc2'].append(pad2(wc2, Hp, 1))
        stk['wn1'].append(jnp.concatenate(
            [pad2(wn1[:H], Hp, Hp), pad2(wn1[H:], Hp, Hp)], axis=0))         # (2Hp, Hp)
        stk['bn1'].append(pad2(bn1, 1, Hp))
        stk['wn2'].append(pad2(wn2, Hp, Hp))
        stk['bn2'].append(pad2(bn2, 1, Hp))

    mxu_weights = {'we1', 'we2', 'wc1', 'wc2', 'wn1', 'wn2'}
    params = {}
    for k in names:
        arr = jnp.stack(stk[k])                     # (L, ...)
        params[k] = arr.astype(jnp.bfloat16) if k in mxu_weights else arr

    w_out, b_out = _linear_init(keys[-1], H, out_node_nf)
    params['emb_out_w'] = pad2(w_out, Hp, OUTp).astype(jnp.bfloat16)
    params['emb_out_b'] = pad2(b_out, 1, OUTp)
    params['meta'] = dict(H=H, Hp=Hp, out_nf=out_node_nf, OUTp=OUTp, n_layers=n_layers)
    return params


if __name__ == "__main__":
    N = 16          # nodes
    H = 32          # hidden_nf
    OUT_NF = 8      # out_node_nf
    N_LAYERS = 4

    key = jax.random.PRNGKey(0)
    k_h, k_x, k_p = jax.random.split(key, 3)

    h0 = jax.random.normal(k_h, (N, H), dtype=jnp.float32)
    x0 = jax.random.normal(k_x, (N, 3), dtype=jnp.float32)

    # bidirectional ring graph: E = 2N edges, edge_index shape (2, E)
    src = jnp.arange(N, dtype=jnp.int32)
    row = jnp.concatenate([src, src])
    col = jnp.concatenate([(src + 1) % N, (src - 1) % N])
    edges = jnp.stack([row, col])

    params = init_params(k_p, H, OUT_NF, N_LAYERS)

    h_out, x_out = egnn_forward(h0, x0, edges, params)
    jax.block_until_ready((h_out, x_out))
    assert h_out.shape == (N, OUT_NF) and x_out.shape == (N, 3)
    assert bool(jnp.all(jnp.isfinite(h_out))) and bool(jnp.all(jnp.isfinite(x_out)))

    # Loose self-check against a pure-JAX f32 reference using the same (bf16-stored) weights.
    # Kernel activations go through bf16 on the MXU, so only gross structural errors exceed
    # these bounds; the f32 coordinate path keeps x very close to the reference.
    h_ref, x_ref = egnn_reference(h0, x0, edges, params)
    assert float(jnp.max(jnp.abs(h_out - h_ref))) < 0.35
    assert float(jnp.max(jnp.abs(x_out - x_ref))) < 1e-3
    print("KERNEL_OK")
</pallas_src>

<mosaic_0001>
module attributes {stable_mosaic.version = 11 : i64} {
  func.func @_egnn_fused_kernel(%arg0: i32, %arg1: i32, %arg2: memref<128x128xf32, #tpu.memory_space<vmem>>, %arg3: memref<128x128xf32, #tpu.memory_space<vmem>>, %arg4: memref<128x1xf32, #tpu.memory_space<vmem>>, %arg5: memref<128x128xi8, #tpu.memory_space<vmem>>, %arg6: memref<128x128xi8, #tpu.memory_space<vmem>>, %arg7: memref<1x128x256xbf16, #tpu.memory_space<vmem>>, %arg8: memref<1x1x128xf32, #tpu.memory_space<vmem>>, %arg9: memref<1x1x128xf32, #tpu.memory_space<vmem>>, %arg10: memref<1x128x128xbf16, #tpu.memory_space<vmem>>, %arg11: memref<1x1x128xf32, #tpu.memory_space<vmem>>, %arg12: memref<1x128x128xbf16, #tpu.memory_space<vmem>>, %arg13: memref<1x1x128xf32, #tpu.memory_space<vmem>>, %arg14: memref<1x128x1xbf16, #tpu.memory_space<vmem>>, %arg15: memref<1x256x128xbf16, #tpu.memory_space<vmem>>, %arg16: memref<1x1x128xf32, #tpu.memory_space<vmem>>, %arg17: memref<1x128x128xbf16, #tpu.memory_space<vmem>>, %arg18: memref<1x1x128xf32, #tpu.memory_space<vmem>>, %arg19: memref<128x128xbf16, #tpu.memory_space<vmem>>, %arg20: memref<1x128xf32, #tpu.memory_space<vmem>>, %arg21: memref<128x128xf32, #tpu.memory_space<vmem>>, %arg22: memref<128x128xf32, #tpu.memory_space<vmem>>, %arg23: memref<128x128xf32, #tpu.memory_space<vmem>>, %arg24: memref<128x128xf32, #tpu.memory_space<vmem>>, %arg25: memref<128x128xbf16, #tpu.memory_space<vmem>>, %arg26: memref<128x128xbf16, #tpu.memory_space<vmem>>, %arg27: memref<128x128xf32, #tpu.memory_space<vmem>>, %arg28: memref<128x128xf32, #tpu.memory_space<vmem>>) attributes {dimension_semantics = [#tpu.dimension_semantics<arbitrary>, #tpu.dimension_semantics<arbitrary>], iteration_bounds = array<i64: 4, 1>, scalar_prefetch = 0 : i64, scratch_operands = 6 : i64, tpu.core_type = #tpu.core_type<tc>, window_params = [{pipeline_mode = #tpu.pipeline_mode<synchronous>, transform_indices = @transform_0, window_bounds = array<i64: 128, 128>}, {pipeline_mode = #tpu.pipeline_mode<synchronous>, transform_indices = @transform_1, window_bounds = array<i64: 128, 128>}, {pipeline_mode = #tpu.pipeline_mode<synchronous>, transform_indices = @transform_2, window_bounds = array<i64: 128, 1>}, {pipeline_mode = #tpu.pipeline_mode<synchronous>, transform_indices = @transform_3, window_bounds = array<i64: 128, 128>}, {pipeline_mode = #tpu.pipeline_mode<synchronous>, transform_indices = @transform_4, window_bounds = array<i64: 128, 128>}, {transform_indices = @transform_5, window_bounds = array<i64: 1, 128, 256>}, {transform_indices = @transform_6, window_bounds = array<i64: 1, 1, 128>}, {transform_indices = @transform_7, window_bounds = array<i64: 1, 1, 128>}, {transform_indices = @transform_8, window_bounds = array<i64: 1, 128, 128>}, {transform_indices = @transform_9, window_bounds = array<i64: 1, 1, 128>}, {transform_indices = @transform_10, window_bounds = array<i64: 1, 128, 128>}, {transform_indices = @transform_11, window_bounds = array<i64: 1, 1, 128>}, {transform_indices = @transform_12, window_bounds = array<i64: 1, 128, 1>}, {transform_indices = @transform_13, window_bounds = array<i64: 1, 256, 128>}, {transform_indices = @transform_14, window_bounds = array<i64: 1, 1, 128>}, {transform_indices = @transform_15, window_bounds = array<i64: 1, 128, 128>}, {transform_indices = @transform_16, window_bounds = array<i64: 1, 1, 128>}, {pipeline_mode = #tpu.pipeline_mode<synchronous>, transform_indices = @transform_17, window_bounds = array<i64: 128, 128>}, {pipeline_mode = #tpu.pipeline_mode<synchronous>, transform_indices = @transform_18, window_bounds = array<i64: 1, 128>}, {pipeline_mode = #tpu.pipeline_mode<synchronous>, transform_indices = @transform_19, window_bounds = array<i64: 128, 128>}, {pipeline_mode = #tpu.pipeline_mode<synchronous>, transform_indices = @transform_20, window_bounds = array<i64: 128, 128>}]} {
    %c0_i32 = arith.constant 0 : i32
    %0 = arith.cmpi eq, %arg1, %c0_i32 : i32
    %1 = arith.extui %0 : i1 to i32
    %c0_i32_0 = arith.constant 0 : i32
    %2 = arith.cmpi ne, %1, %c0_i32_0 : i32
    scf.if %2 {
      %c0_i32_50 = arith.constant 0 : i32
      %86 = arith.cmpi eq, %arg0, %c0_i32_50 : i32
      %87 = arith.extui %86 : i1 to i32
      %c0_i32_51 = arith.constant 0 : i32
      %88 = arith.cmpi ne, %87, %c0_i32_51 : i32
      scf.if %88 {
        %c0_68 = arith.constant 0 : index
        %c0_69 = arith.constant 0 : index
        %104 = vector.load %arg2[%c0_68, %c0_69] : memref<128x128xf32, #tpu.memory_space<vmem>>, vector<128x128xf32>
        %c0_70 = arith.constant 0 : index
        %c0_71 = arith.constant 0 : index
        %105 = vector.load %arg23[%c0_70, %c0_71] : memref<128x128xf32, #tpu.memory_space<vmem>>, vector<128x128xf32>
        tpu.vector_store %arg23[%c0_70, %c0_71], %104 {strides = array<i32>} : memref<128x128xf32, #tpu.memory_space<vmem>>, vector<128x128xf32>,
        %c0_72 = arith.constant 0 : index
        %c0_73 = arith.constant 0 : index
        %106 = vector.load %arg3[%c0_72, %c0_73] : memref<128x128xf32, #tpu.memory_space<vmem>>, vector<128x128xf32>
        %c0_74 = arith.constant 0 : index
        %c0_75 = arith.constant 0 : index
        %107 = vector.load %arg24[%c0_74, %c0_75] : memref<128x128xf32, #tpu.memory_space<vmem>>, vector<128x128xf32>
        tpu.vector_store %arg24[%c0_74, %c0_75], %106 {strides = array<i32>} : memref<128x128xf32, #tpu.memory_space<vmem>>, vector<128x128xf32>,
      } else {
      }
      %c0_52 = arith.constant 0 : index
      %c0_53 = arith.constant 0 : index
      %89 = vector.load %arg23[%c0_52, %c0_53] : memref<128x128xf32, #tpu.memory_space<vmem>>, vector<128x128xf32>
      %90 = arith.truncf %89 : vector<128x128xf32> to vector<128x128xbf16>
      %c0_54 = arith.constant 0 : index
      %c0_55 = arith.constant 0 : index
      %c0_56 = arith.constant 0 : index
      %91 = vector.load %arg7[%c0_54, %c0_55, %c0_56] : memref<1x128x256xbf16, #tpu.memory_space<vmem>>, vector<1x128x256xbf16>
      %92 = vector.shape_cast %91 : vector<1x128x256xbf16> to vector<128x256xbf16>
      %cst_57 = arith.constant dense<0.000000e+00> : vector<128x256xf32>
      %93 = tpu.matmul %90, %92, %cst_57 {dimension_numbers = #tpu.dot_dimension_numbers<[1], [0], [0], [1], [0, 0, 1, 1], [], []>} : vector<128x128xbf16>, vector<128x256xbf16>, vector<128x256xf32> -> vector<128x256xf32>
      %94 = vector.extract_strided_slice %93 {offsets = [0, 0], sizes = [128, 128], strides = [1, 1]} : vector<128x256xf32> to vector<128x128xf32>
      %95 = arith.truncf %94 : vector<128x128xf32> to vector<128x128xbf16>
      %c0_58 = arith.constant 0 : index
      %c0_59 = arith.constant 0 : index
      %96 = vector.load %arg25[%c0_58, %c0_59] : memref<128x128xbf16, #tpu.memory_space<vmem>>, vector<128x128xbf16>
      tpu.vector_store %arg25[%c0_58, %c0_59], %95 {strides = array<i32>} : memref<128x128xbf16, #tpu.memory_space<vmem>>, vector<128x128xbf16>,
      %97 = vector.extract_strided_slice %93 {offsets = [0, 128], sizes = [128, 128], strides = [1, 1]} : vector<128x256xf32> to vector<128x128xf32>
      %98 = arith.truncf %97 : vector<128x128xf32> to vector<128x128xbf16>
      %c0_60 = arith.constant 0 : index
      %c0_61 = arith.constant 0 : index
      %99 = vector.load %arg26[%c0_60, %c0_61] : memref<128x128xbf16, #tpu.memory_space<vmem>>, vector<128x128xbf16>
      tpu.vector_store %arg26[%c0_60, %c0_61], %98 {strides = array<i32>} : memref<128x128xbf16, #tpu.memory_space<vmem>>, vector<128x128xbf16>,
      %cst_62 = arith.constant 0.000000e+00 : f32
      %100 = vector.broadcast %cst_62 : f32 to vector<128x128xf32>
      %c0_63 = arith.constant 0 : index
      %c0_64 = arith.constant 0 : index
      %101 = vector.load %arg27[%c0_63, %c0_64] : memref<128x128xf32, #tpu.memory_space<vmem>>, vector<128x128xf32>
      tpu.vector_store %arg27[%c0_63, %c0_64], %100 {strides = array<i32>} : memref<128x128xf32, #tpu.memory_space<vmem>>, vector<128x128xf32>,
      %cst_65 = arith.constant 0.000000e+00 : f32
      %102 = vector.broadcast %cst_65 : f32 to vector<128x128xf32>
      %c0_66 = arith.constant 0 : index
      %c0_67 = arith.constant 0 : index
      %103 = vector.load %arg28[%c0_66, %c0_67] : memref<128x128xf32, #tpu.memory_space<vmem>>, vector<128x128xf32>
      tpu.vector_store %arg28[%c0_66, %c0_67], %102 {strides = array<i32>} : memref<128x128xf32, #tpu.memory_space<vmem>>, vector<128x128xf32>,
    } else {
    }
    %c128_i32 = arith.constant 128 : i32
    %3 = arith.muli %arg1, %c128_i32 : i32
    %4 = tpu.assume_multiple %3, 128 : i32
    %5 = arith.index_cast %4 : i32 to index
    %c0 = arith.constant 0 : index
    %6 = vector.load %arg5[%5, %c0] : memref<128x128xi8, #tpu.memory_space<vmem>>, vector<128x128xi8>
    %7 = arith.sitofp %6 : vector<128x128xi8> to vector<128x128xf32>
    %8 = arith.index_cast %4 : i32 to index
    %c0_1 = arith.constant 0 : index
    %9 = vector.load %arg6[%8, %c0_1] : memref<128x128xi8, #tpu.memory_space<vmem>>, vector<128x128xi8>
    %10 = arith.sitofp %9 : vector<128x128xi8> to vector<128x128xf32>
    %11 = arith.truncf %7 : vector<128x128xf32> to vector<128x128xbf16>
    %12 = arith.truncf %10 : vector<128x128xf32> to vector<128x128xbf16>
    %c0_2 = arith.constant 0 : index
    %c0_3 = arith.constant 0 : index
    %13 = vector.load %arg25[%c0_2, %c0_3] : memref<128x128xbf16, #tpu.memory_space<vmem>>, vector<128x128xbf16>
    %cst = arith.constant dense<0.000000e+00> : vector<128x128xf32>
    %14 = tpu.matmul %11, %13, %cst {dimension_numbers = #tpu.dot_dimension_numbers<[1], [0], [0], [1], [0, 0, 1, 1], [], []>} : vector<128x128xbf16>, vector<128x128xbf16>, vector<128x128xf32> -> vector<128x128xf32>
    %c0_4 = arith.constant 0 : index
    %c0_5 = arith.constant 0 : index
    %15 = vector.load %arg26[%c0_4, %c0_5] : memref<128x128xbf16, #tpu.memory_space<vmem>>, vector<128x128xbf16>
    %cst_6 = arith.constant dense<0.000000e+00> : vector<128x128xf32>
    %16 = tpu.matmul %12, %15, %cst_6 {dimension_numbers = #tpu.dot_dimension_numbers<[1], [0], [0], [1], [0, 0, 1, 1], [], []>} : vector<128x128xbf16>, vector<128x128xbf16>, vector<128x128xf32> -> vector<128x128xf32>
    %17 = arith.subf %7, %10 : vector<128x128xf32>
    %c0_7 = arith.constant 0 : index
    %c0_8 = arith.constant 0 : index
    %18 = vector.load %arg24[%c0_7, %c0_8] : memref<128x128xf32, #tpu.memory_space<vmem>>, vector<128x128xf32>
    %cst_9 = arith.constant dense<0.000000e+00> : vector<128x128xf32>
    %19 = tpu.matmul %17, %18, %cst_9 {dimension_numbers = #tpu.dot_dimension_numbers<[1], [0], [0], [1], [0, 0, 1, 1], [], []>} : vector<128x128xf32>, vector<128x128xf32>, vector<128x128xf32> -> vector<128x128xf32>
    %20 = arith.mulf %19, %19 : vector<128x128xf32>
    %cst_10 = arith.constant dense<0.000000e+00> : vector<128xf32>
    %21 = vector.multi_reduction <add>, %20, %cst_10 [1] : vector<128x128xf32> to vector<128xf32>
    %22 = vector.shape_cast %21 : vector<128xf32> to vector<128x1xf32>
    %23 = arith.addf %14, %16 : vector<128x128xf32>
    %c0_11 = arith.constant 0 : index
    %c0_12 = arith.constant 0 : index
    %c0_13 = arith.constant 0 : index
    %24 = vector.load %arg8[%c0_11, %c0_12, %c0_13] : memref<1x1x128xf32, #tpu.memory_space<vmem>>, vector<1x1x128xf32>
    %25 = vector.shape_cast %24 : vector<1x1x128xf32> to vector<1x128xf32>
    %26 = vector.broadcast %22 : vector<128x1xf32> to vector<128x128xf32>
    %27 = vector.broadcast %25 : vector<1x128xf32> to vector<128x128xf32>
    %28 = arith.mulf %26, %27 : vector<128x128xf32>
    %29 = arith.addf %23, %28 : vector<128x128xf32>
    %c0_14 = arith.constant 0 : index
    %c0_15 = arith.constant 0 : index
    %c0_16 = arith.constant 0 : index
    %30 = vector.load %arg9[%c0_14, %c0_15, %c0_16] : memref<1x1x128xf32, #tpu.memory_space<vmem>>, vector<1x1x128xf32>
    %31 = vector.shape_cast %30 : vector<1x1x128xf32> to vector<1x128xf32>
    %32 = vector.broadcast %31 : vector<1x128xf32> to vector<128x128xf32>
    %33 = arith.addf %29, %32 : vector<128x128xf32>
    %34 = arith.negf %33 : vector<128x128xf32>
    %35 = math.exp %34 : vector<128x128xf32>
    %cst_17 = arith.constant 1.000000e+00 : f32
    %36 = vector.broadcast %cst_17 : f32 to vector<128x128xf32>
    %37 = arith.addf %36, %35 : vector<128x128xf32>
    %38 = arith.divf %36, %37 : vector<128x128xf32>
    %39 = arith.mulf %33, %38 : vector<128x128xf32>
    %40 = arith.truncf %39 : vector<128x128xf32> to vector<128x128xbf16>
    %c0_18 = arith.constant 0 : index
    %c0_19 = arith.constant 0 : index
    %c0_20 = arith.constant 0 : index
    %41 = vector.load %arg10[%c0_18, %c0_19, %c0_20] : memref<1x128x128xbf16, #tpu.memory_space<vmem>>, vector<1x128x128xbf16>
    %42 = vector.shape_cast %41 : vector<1x128x128xbf16> to vector<128x128xbf16>
    %cst_21 = arith.constant dense<0.000000e+00> : vector<128x128xf32>
    %43 = tpu.matmul %40, %42, %cst_21 {dimension_numbers = #tpu.dot_dimension_numbers<[1], [0], [0], [1], [0, 0, 1, 1], [], []>} : vector<128x128xbf16>, vector<128x128xbf16>, vector<128x128xf32> -> vector<128x128xf32>
    %c0_22 = arith.constant 0 : index
    %c0_23 = arith.constant 0 : index
    %c0_24 = arith.constant 0 : index
    %44 = vector.load %arg11[%c0_22, %c0_23, %c0_24] : memref<1x1x128xf32, #tpu.memory_space<vmem>>, vector<1x1x128xf32>
    %45 = vector.shape_cast %44 : vector<1x1x128xf32> to vector<1x128xf32>
    %46 = vector.broadcast %45 : vector<1x128xf32> to vector<128x128xf32>
    %47 = arith.addf %43, %46 : vector<128x128xf32>
    %48 = arith.negf %47 : vector<128x128xf32>
    %49 = math.exp %48 : vector<128x128xf32>
    %cst_25 = arith.constant 1.000000e+00 : f32
    %50 = vector.broadcast %cst_25 : f32 to vector<128x128xf32>
    %51 = arith.addf %50, %49 : vector<128x128xf32>
    %52 = arith.divf %50, %51 : vector<128x128xf32>
    %53 = arith.mulf %47, %52 : vector<128x128xf32>
    %54 = arith.truncf %53 : vector<128x128xf32> to vector<128x128xbf16>
    %c0_26 = arith.constant 0 : index
    %c0_27 = arith.constant 0 : index
    %c0_28 = arith.constant 0 : index
    %55 = vector.load %arg12[%c0_26, %c0_27, %c0_28] : memref<1x128x128xbf16, #tpu.memory_space<vmem>>, vector<1x128x128xbf16>
    %56 = vector.shape_cast %55 : vector<1x128x128xbf16> to vector<128x128xbf16>
    %cst_29 = arith.constant dense<0.000000e+00> : vector<128x128xf32>
    %57 = tpu.matmul %54, %56, %cst_29 {dimension_numbers = #tpu.dot_dimension_numbers<[1], [0], [0], [1], [0, 0, 1, 1], [], []>} : vector<128x128xbf16>, vector<128x128xbf16>, vector<128x128xf32> -> vector<128x128xf32>
    %c0_30 = arith.constant 0 : index
    %c0_31 = arith.constant 0 : index
    %c0_32 = arith.constant 0 : index
    %58 = vector.load %arg13[%c0_30, %c0_31, %c0_32] : memref<1x1x128xf32, #tpu.memory_space<vmem>>, vector<1x1x128xf32>
    %59 = vector.shape_cast %58 : vector<1x1x128xf32> to vector<1x128xf32>
    %60 = vector.broadcast %59 : vector<1x128xf32> to vector<128x128xf32>
    %61 = arith.addf %57, %60 : vector<128x128xf32>
    %62 = arith.negf %61 : vector<128x128xf32>
    %63 = math.exp %62 : vector<128x128xf32>
    %cst_33 = arith.constant 1.000000e+00 : f32
    %64 = vector.broadcast %cst_33 : f32 to vector<128x128xf32>
    %65 = arith.addf %64, %63 : vector<128x128xf32>
    %66 = arith.divf %64, %65 : vector<128x128xf32>
    %67 = arith.mulf %61, %66 : vector<128x128xf32>
    %68 = arith.truncf %67 : vector<128x128xf32> to vector<128x128xbf16>
    %c0_34 = arith.constant 0 : index
    %c0_35 = arith.constant 0 : index
    %c0_36 = arith.constant 0 : index
    %69 = vector.load %arg14[%c0_34, %c0_35, %c0_36] : memref<1x128x1xbf16, #tpu.memory_space<vmem>>, vector<1x128x1xbf16>
    %70 = vector.shape_cast %69 : vector<1x128x1xbf16> to vector<128x1xbf16>
    %cst_37 = arith.constant dense<0.000000e+00> : vector<128x1xf32>
    %71 = tpu.matmul %68, %70, %cst_37 {dimension_numbers = #tpu.dot_dimension_numbers<[1], [0], [0], [1], [0, 0, 1, 1], [], []>} : vector<128x128xbf16>, vector<128x1xbf16>, vector<128x1xf32> -> vector<128x1xf32>
    %72 = vector.broadcast %71 : vector<128x1xf32> to vector<128x128xf32>
    %73 = arith.mulf %19, %72 : vector<128x128xf32>
    %c0_38 = arith.constant 0 : index
    %c0_39 = arith.constant 0 : index
    %74 = vector.load %arg27[%c0_38, %c0_39] : memref<128x128xf32, #tpu.memory_space<vmem>>, vector<128x128xf32>
    %75 = arith.truncf %53 : vector<128x128xf32> to vector<128x128xbf16>
    %cst_40 = arith.constant dense<0.000000e+00> : vector<128x128xf32>
    %76 = tpu.matmul %11, %75, %cst_40 {dimension_numbers = #tpu.dot_dimension_numbers<[0], [0], [1], [1], [0, 1, 1, 1], [], []>} : vector<128x128xbf16>, vector<128x128xbf16>, vector<128x128xf32> -> vector<128x128xf32>
    %77 = arith.addf %74, %76 : vector<128x128xf32>
    %c0_41 = arith.constant 0 : index
    %c0_42 = arith.constant 0 : index
    %78 = vector.load %arg27[%c0_41, %c0_42] : memref<128x128xf32, #tpu.memory_space<vmem>>, vector<128x128xf32>
    tpu.vector_store %arg27[%c0_41, %c0_42], %77 {strides = array<i32>} : memref<128x128xf32, #tpu.memory_space<vmem>>, vector<128x128xf32>,
    %c0_43 = arith.constant 0 : index
    %c0_44 = arith.constant 0 : index
    %79 = vector.load %arg28[%c0_43, %c0_44] : memref<128x128xf32, #tpu.memory_space<vmem>>, vector<128x128xf32>
    %cst_45 = arith.constant dense<0.000000e+00> : vector<128x128xf32>
    %80 = tpu.matmul %7, %73, %cst_45 {dimension_numbers = #tpu.dot_dimension_numbers<[0], [0], [1], [1], [0, 1, 1, 1], [], []>} : vector<128x128xf32>, vector<128x128xf32>, vector<128x128xf32> -> vector<128x128xf32>
    %81 = arith.addf %79, %80 : vector<128x128xf32>
    %c0_46 = arith.constant 0 : index
    %c0_47 = arith.constant 0 : index
    %82 = vector.load %arg28[%c0_46, %c0_47] : memref<128x128xf32, #tpu.memory_space<vmem>>, vector<128x128xf32>
    tpu.vector_store %arg28[%c0_46, %c0_47], %81 {strides = array<i32>} : memref<128x128xf32, #tpu.memory_space<vmem>>, vector<128x128xf32>,
    %c0_i32_48 = arith.constant 0 : i32
    %83 = arith.cmpi eq, %arg1, %c0_i32_48 : i32
    %84 = arith.extui %83 : i1 to i32
    %c0_i32_49 = arith.constant 0 : i32
    %85 = arith.cmpi ne, %84, %c0_i32_49 : i32
    scf.if %85 {
      %c0_50 = arith.constant 0 : index
      %c0_51 = arith.constant 0 : index
      %86 = vector.load %arg27[%c0_50, %c0_51] : memref<128x128xf32, #tpu.memory_space<vmem>>, vector<128x128xf32>
      %c0_52 = arith.constant 0 : index
      %c0_53 = arith.constant 0 : index
      %87 = vector.load %arg28[%c0_52, %c0_53] : memref<128x128xf32, #tpu.memory_space<vmem>>, vector<128x128xf32>
      %c0_54 = arith.constant 0 : index
      %c0_55 = arith.constant 0 : index
      %88 = vector.load %arg4[%c0_54, %c0_55] : memref<128x1xf32, #tpu.memory_space<vmem>>, vector<128x1xf32>
      %89 = vector.broadcast %88 : vector<128x1xf32> to vector<128x128xf32>
      %90 = arith.mulf %87, %89 : vector<128x128xf32>
      %c0_56 = arith.constant 0 : index
      %c0_57 = arith.constant 0 : index
      %91 = vector.load %arg24[%c0_56, %c0_57] : memref<128x128xf32, #tpu.memory_space<vmem>>, vector<128x128xf32>
      %92 = arith.addf %91, %90 : vector<128x128xf32>
      %c0_58 = arith.constant 0 : index
      %c0_59 = arith.constant 0 : index
      %93 = vector.load %arg24[%c0_58, %c0_59] : memref<128x128xf32, #tpu.memory_space<vmem>>, vector<128x128xf32>
      tpu.vector_store %arg24[%c0_58, %c0_59], %92 {strides = array<i32>} : memref<128x128xf32, #tpu.memory_space<vmem>>, vector<128x128xf32>,
      %c0_60 = arith.constant 0 : index
      %c0_61 = arith.constant 0 : index
      %94 = vector.load %arg23[%c0_60, %c0_61] : memref<128x128xf32, #tpu.memory_space<vmem>>, vector<128x128xf32>
      %95 = tpu.concatenate %94, %86 in 1 : vector<128x128xf32>, vector<128x128xf32> -> vector<128x256xf32>
      %96 = arith.truncf %95 : vector<128x256xf32> to vector<128x256xbf16>
      %c0_62 = arith.constant 0 : index
      %c0_63 = arith.constant 0 : index
      %c0_64 = arith.constant 0 : index
      %97 = vector.load %arg15[%c0_62, %c0_63, %c0_64] : memref<1x256x128xbf16, #tpu.memory_space<vmem>>, vector<1x256x128xbf16>
      %98 = vector.shape_cast %97 : vector<1x256x128xbf16> to vector<256x128xbf16>
      %cst_65 = arith.constant dense<0.000000e+00> : vector<128x128xf32>
      %99 = tpu.matmul %96, %98, %cst_65 {dimension_numbers = #tpu.dot_dimension_numbers<[1], [0], [0], [1], [0, 0, 1, 1], [], []>} : vector<128x256xbf16>, vector<256x128xbf16>, vector<128x128xf32> -> vector<128x128xf32>
      %c0_66 = arith.constant 0 : index
      %c0_67 = arith.constant 0 : index
      %c0_68 = arith.constant 0 : index
      %100 = vector.load %arg16[%c0_66, %c0_67, %c0_68] : memref<1x1x128xf32, #tpu.memory_space<vmem>>, vector<1x1x128xf32>
      %101 = vector.shape_cast %100 : vector<1x1x128xf32> to vector<1x128xf32>
      %102 = vector.broadcast %101 : vector<1x128xf32> to vector<128x128xf32>
      %103 = arith.addf %99, %102 : vector<128x128xf32>
      %104 = arith.negf %103 : vector<128x128xf32>
      %105 = math.exp %104 : vector<128x128xf32>
      %cst_69 = arith.constant 1.000000e+00 : f32
      %106 = vector.broadcast %cst_69 : f32 to vector<128x128xf32>
      %107 = arith.addf %106, %105 : vector<128x128xf32>
      %108 = arith.divf %106, %107 : vector<128x128xf32>
      %109 = arith.mulf %103, %108 : vector<128x128xf32>
      %110 = arith.truncf %109 : vector<128x128xf32> to vector<128x128xbf16>
      %c0_70 = arith.constant 0 : index
      %c0_71 = arith.constant 0 : index
      %c0_72 = arith.constant 0 : index
      %111 = vector.load %arg17[%c0_70, %c0_71, %c0_72] : memref<1x128x128xbf16, #tpu.memory_space<vmem>>, vector<1x128x128xbf16>
      %112 = vector.shape_cast %111 : vector<1x128x128xbf16> to vector<128x128xbf16>
      %cst_73 = arith.constant dense<0.000000e+00> : vector<128x128xf32>
      %113 = tpu.matmul %110, %112, %cst_73 {dimension_numbers = #tpu.dot_dimension_numbers<[1], [0], [0], [1], [0, 0, 1, 1], [], []>} : vector<128x128xbf16>, vector<128x128xbf16>, vector<128x128xf32> -> vector<128x128xf32>
      %c0_74 = arith.constant 0 : index
      %c0_75 = arith.constant 0 : index
      %c0_76 = arith.constant 0 : index
      %114 = vector.load %arg18[%c0_74, %c0_75, %c0_76] : memref<1x1x128xf32, #tpu.memory_space<vmem>>, vector<1x1x128xf32>
      %115 = vector.shape_cast %114 : vector<1x1x128xf32> to vector<1x128xf32>
      %116 = vector.broadcast %115 : vector<1x128xf32> to vector<128x128xf32>
      %117 = arith.addf %113, %116 : vector<128x128xf32>
      %118 = arith.addf %94, %117 : vector<128x128xf32>
      %c0_77 = arith.constant 0 : index
      %c0_78 = arith.constant 0 : index
      %119 = vector.load %arg23[%c0_77, %c0_78] : memref<128x128xf32, #tpu.memory_space<vmem>>, vector<128x128xf32>
      tpu.vector_store %arg23[%c0_77, %c0_78], %118 {strides = array<i32>} : memref<128x128xf32, #tpu.memory_space<vmem>>, vector<128x128xf32>,
      %c3_i32 = arith.constant 3 : i32
      %120 = arith.cmpi eq, %arg0, %c3_i32 : i32
      %121 = arith.extui %120 : i1 to i32
      %c0_i32_79 = arith.constant 0 : i32
      %122 = arith.cmpi ne, %121, %c0_i32_79 : i32
      scf.if %122 {
        %123 = arith.truncf %118 : vector<128x128xf32> to vector<128x128xbf16>
        %c0_80 = arith.constant 0 : index
        %c0_81 = arith.constant 0 : index
        %124 = vector.load %arg19[%c0_80, %c0_81] : memref<128x128xbf16, #tpu.memory_space<vmem>>, vector<128x128xbf16>
        %cst_82 = arith.constant dense<0.000000e+00> : vector<128x128xf32>
        %125 = tpu.matmul %123, %124, %cst_82 {dimension_numbers = #tpu.dot_dimension_numbers<[1], [0], [0], [1], [0, 0, 1, 1], [], []>} : vector<128x128xbf16>, vector<128x128xbf16>, vector<128x128xf32> -> vector<128x128xf32>
        %c0_83 = arith.constant 0 : index
        %c0_84 = arith.constant 0 : index
        %126 = vector.load %arg20[%c0_83, %c0_84] : memref<1x128xf32, #tpu.memory_space<vmem>>, vector<1x128xf32>
        %127 = vector.broadcast %126 : vector<1x128xf32> to vector<128x128xf32>
        %128 = arith.addf %125, %127 : vector<128x128xf32>
        %c0_85 = arith.constant 0 : index
        %c0_86 = arith.constant 0 : index
        %129 = vector.load %arg21[%c0_85, %c0_86] : memref<128x128xf32, #tpu.memory_space<vmem>>, vector<128x128xf32>
        tpu.vector_store %arg21[%c0_85, %c0_86], %128 {strides = array<i32>} : memref<128x128xf32, #tpu.memory_space<vmem>>, vector<128x128xf32>,
        %c0_87 = arith.constant 0 : index
        %c0_88 = arith.constant 0 : index
        %130 = vector.load %arg24[%c0_87, %c0_88] : memref<128x128xf32, #tpu.memory_space<vmem>>, vector<128x128xf32>
        %c0_89 = arith.constant 0 : index
        %c0_90 = arith.constant 0 : index
        %131 = vector.load %arg22[%c0_89, %c0_90] : memref<128x128xf32, #tpu.memory_space<vmem>>, vector<128x128xf32>
        tpu.vector_store %arg22[%c0_89, %c0_90], %130 {strides = array<i32>} : memref<128x128xf32, #tpu.memory_space<vmem>>, vector<128x128xf32>,
      } else {
      }
    } else {
    }
    return
  }
  func.func @transform_0(%arg0: i32, %arg1: i32) -> (i32, i32) {
    %c0_i32 = arith.constant 0 : i32
    %c0_i32_0 = arith.constant 0 : i32
    %c0_i32_1 = arith.constant 0 : i32
    return %c0_i32, %c0_i32_0 : i32, i32
  }
  func.func @transform_1(%arg0: i32, %arg1: i32) -> (i32, i32) {
    %c0_i32 = arith.constant 0 : i32
    %c0_i32_0 = arith.constant 0 : i32
    %c0_i32_1 = arith.constant 0 : i32
    return %c0_i32, %c0_i32_0 : i32, i32
  }
  func.func @transform_2(%arg0: i32, %arg1: i32) -> (i32, i32) {
    %c0_i32 = arith.constant 0 : i32
    %c0_i32_0 = arith.constant 0 : i32
    %c0_i32_1 = arith.constant 0 : i32
    return %c0_i32, %c0_i32_0 : i32, i32
  }
  func.func @transform_3(%arg0: i32, %arg1: i32) -> (i32, i32) {
    %c0_i32 = arith.constant 0 : i32
    %c0_i32_0 = arith.constant 0 : i32
    %c0_i32_1 = arith.constant 0 : i32
    return %c0_i32, %c0_i32_0 : i32, i32
  }
  func.func @transform_4(%arg0: i32, %arg1: i32) -> (i32, i32) {
    %c0_i32 = arith.constant 0 : i32
    %c0_i32_0 = arith.constant 0 : i32
    %c0_i32_1 = arith.constant 0 : i32
    return %c0_i32, %c0_i32_0 : i32, i32
  }
  func.func @transform_5(%arg0: i32, %arg1: i32) -> (i32, i32, i32) {
    %c0_i32 = arith.constant 0 : i32
    %c0_i32_0 = arith.constant 0 : i32
    %c0_i32_1 = arith.constant 0 : i32
    return %arg0, %c0_i32, %c0_i32_0 : i32, i32, i32
  }
  func.func @transform_6(%arg0: i32, %arg1: i32) -> (i32, i32, i32) {
    %c0_i32 = arith.constant 0 : i32
    %c0_i32_0 = arith.constant 0 : i32
    %c0_i32_1 = arith.constant 0 : i32
    return %arg0, %c0_i32, %c0_i32_0 : i32, i32, i32
  }
  func.func @transform_7(%arg0: i32, %arg1: i32) -> (i32, i32, i32) {
    %c0_i32 = arith.constant 0 : i32
    %c0_i32_0 = arith.constant 0 : i32
    %c0_i32_1 = arith.constant 0 : i32
    return %arg0, %c0_i32, %c0_i32_0 : i32, i32, i32
  }
  func.func @transform_8(%arg0: i32, %arg1: i32) -> (i32, i32, i32) {
    %c0_i32 = arith.constant 0 : i32
    %c0_i32_0 = arith.constant 0 : i32
    %c0_i32_1 = arith.constant 0 : i32
    return %arg0, %c0_i32, %c0_i32_0 : i32, i32, i32
  }
  func.func @transform_9(%arg0: i32, %arg1: i32) -> (i32, i32, i32) {
    %c0_i32 = arith.constant 0 : i32
    %c0_i32_0 = arith.constant 0 : i32
    %c0_i32_1 = arith.constant 0 : i32
    return %arg0, %c0_i32, %c0_i32_0 : i32, i32, i32
  }
  func.func @transform_10(%arg0: i32, %arg1: i32) -> (i32, i32, i32) {
    %c0_i32 = arith.constant 0 : i32
    %c0_i32_0 = arith.constant 0 : i32
    %c0_i32_1 = arith.constant 0 : i32
    return %arg0, %c0_i32, %c0_i32_0 : i32, i32, i32
  }
  func.func @transform_11(%arg0: i32, %arg1: i32) -> (i32, i32, i32) {
    %c0_i32 = arith.constant 0 : i32
    %c0_i32_0 = arith.constant 0 : i32
    %c0_i32_1 = arith.constant 0 : i32
    return %arg0, %c0_i32, %c0_i32_0 : i32, i32, i32
  }
  func.func @transform_12(%arg0: i32, %arg1: i32) -> (i32, i32, i32) {
    %c0_i32 = arith.constant 0 : i32
    %c0_i32_0 = arith.constant 0 : i32
    %c0_i32_1 = arith.constant 0 : i32
    return %arg0, %c0_i32, %c0_i32_0 : i32, i32, i32
  }
  func.func @transform_13(%arg0: i32, %arg1: i32) -> (i32, i32, i32) {
    %c0_i32 = arith.constant 0 : i32
    %c0_i32_0 = arith.constant 0 : i32
    %c0_i32_1 = arith.constant 0 : i32
    return %arg0, %c0_i32, %c0_i32_0 : i32, i32, i32
  }
  func.func @transform_14(%arg0: i32, %arg1: i32) -> (i32, i32, i32) {
    %c0_i32 = arith.constant 0 : i32
    %c0_i32_0 = arith.constant 0 : i32
    %c0_i32_1 = arith.constant 0 : i32
    return %arg0, %c0_i32, %c0_i32_0 : i32, i32, i32
  }
  func.func @transform_15(%arg0: i32, %arg1: i32) -> (i32, i32, i32) {
    %c0_i32 = arith.constant 0 : i32
    %c0_i32_0 = arith.constant 0 : i32
    %c0_i32_1 = arith.constant 0 : i32
    return %arg0, %c0_i32, %c0_i32_0 : i32, i32, i32
  }
  func.func @transform_16(%arg0: i32, %arg1: i32) -> (i32, i32, i32) {
    %c0_i32 = arith.constant 0 : i32
    %c0_i32_0 = arith.constant 0 : i32
    %c0_i32_1 = arith.constant 0 : i32
    return %arg0, %c0_i32, %c0_i32_0 : i32, i32, i32
  }
  func.func @transform_17(%arg0: i32, %arg1: i32) -> (i32, i32) {
    %c0_i32 = arith.constant 0 : i32
    %c0_i32_0 = arith.constant 0 : i32
    %c0_i32_1 = arith.constant 0 : i32
    return %c0_i32, %c0_i32_0 : i32, i32
  }
  func.func @transform_18(%arg0: i32, %arg1: i32) -> (i32, i32) {
    %c0_i32 = arith.constant 0 : i32
    %c0_i32_0 = arith.constant 0 : i32
    %c0_i32_1 = arith.constant 0 : i32
    return %c0_i32, %c0_i32_0 : i32, i32
  }
  func.func @transform_19(%arg0: i32, %arg1: i32) -> (i32, i32) {
    %c0_i32 = arith.constant 0 : i32
    %c0_i32_0 = arith.constant 0 : i32
    %c0_i32_1 = arith.constant 0 : i32
    return %c0_i32, %c0_i32_0 : i32, i32
  }
  func.func @transform_20(%arg0: i32, %arg1: i32) -> (i32, i32) {
    %c0_i32 = arith.constant 0 : i32
    %c0_i32_0 = arith.constant 0 : i32
    %c0_i32_1 = arith.constant 0 : i32
    return %c0_i32, %c0_i32_0 : i32, i32
  }
}

</mosaic_0001>

<bundles_post_ra>
// kernel: tpu_custom_call.1
= control target key start
LH: loop header
LB: loop body
LE: loop exit
PB: predicated region body
PF: predicated region fallthrough
CT: control target
= control target key end

     0   :  { %s8015_s0 = inlined_call_operand.vmem [shape: f32[128,128], index: 0, kind: input, shape index: {}]   ;;  %s8016_s1 = inlined_call_operand.hbm [shape: f32[128,128], index: 1, kind: input, shape index: {}]   ;;  %s8017_s2 = inlined_call_operand.vmem [shape: f32[128,1], index: 2, kind: input, shape index: {}]   ;;  %s8018_s3 = inlined_call_operand.vmem [shape: s8[128,128], index: 3, kind: input, shape index: {}]   ;;  %s8019_s4 = inlined_call_operand.hbm [shape: s8[128,128], index: 4, kind: input, shape index: {}]   ;;  %s8020_s5 = inlined_call_operand.hbm [shape: bf16[4,128,256], index: 5, kind: input, shape index: {}]   ;;  %s8021_s6 = inlined_call_operand.hbm [shape: f32[4,1,128], index: 6, kind: input, shape index: {}]   ;;  %s8022_s7 = inlined_call_operand.hbm [shape: f32[4,1,128], index: 7, kind: input, shape index: {}]   ;;  %s8023_s8 = inlined_call_operand.vmem [shape: bf16[4,128,128], index: 8, kind: input, shape index: {}]   ;;  %s8024_s9 = inlined_call_operand.hbm [shape: f32[4,1,128], index: 9, kind: input, shape index: {}]   ;;  %s8025_s10 = inlined_call_operand.hbm [shape: bf16[4,128,128], index: 10, kind: input, shape index: {}]   ;;  %s8026_s11 = inlined_call_operand.vmem [shape: f32[4,1,128], index: 11, kind: input, shape index: {}]   ;;  %s8027_s12 = inlined_call_operand.vmem [shape: bf16[4,128,1], index: 12, kind: input, shape index: {}]   ;;  %s8028_s13 = inlined_call_operand.hbm [shape: bf16[4,256,128], index: 13, kind: input, shape index: {}]   ;;  %s8029_s14 = inlined_call_operand.vmem [shape: f32[4,1,128], index: 14, kind: input, shape index: {}]   ;;  %s8030_s15 = inlined_call_operand.hbm [shape: bf16[4,128,128], index: 15, kind: input, shape index: {}]   ;;  %s8031_s16 = inlined_call_operand.vmem [shape: f32[4,1,128], index: 16, kind: input, shape index: {}]   ;;  %s8032_s17 = inlined_call_operand.hbm [shape: bf16[128,128], index: 17, kind: input, shape index: {}]   ;;  %s8033_s18 = inlined_call_operand.vmem [shape: f32[1,128], index: 18, kind: input, shape index: {}]   ;;  %s8034_s19 = inlined_call_operand.hbm [shape: f32[128,128], index: 19, kind: output, shape index: {0}]   ;;  %s8035_s20 = inlined_call_operand.hbm [shape: f32[128,128], index: 20, kind: output, shape index: {1}]  }
   0x1   :  { %8071 = sst [smem:[#allocation38_spill]] %s8015_s0 }
   0x2   :  { %8072 = sst [smem:[#allocation39_spill]] %s8016_s1 }
   0x3   :  { %8073 = sst [smem:[#allocation40_spill]] %s8017_s2 }
   0x4   :  { %8074 = sst [smem:[#allocation41_spill]] %s8018_s3 }
   0x5   :  { %8075 = sst [smem:[#allocation42_spill]] %s8019_s4 }
   0x6   :  { %8076 = sst [smem:[#allocation43_spill]] %s8020_s5 }
   0x7   :  { %8077 = sst [smem:[#allocation44_spill]] %s8021_s6 }
   0x8   :  { %8078 = sst [smem:[#allocation45_spill]] %s8022_s7 }
   0x9   :  { %8079 = sst [smem:[#allocation46_spill]] %s8023_s8 }
   0xa   :  { %8080 = sst [smem:[#allocation47_spill]] %s8024_s9 }
   0xb   :  { %8081 = sst [smem:[#allocation48_spill]] %s8025_s10 }
   0xc   :  { %8082 = sst [smem:[#allocation49_spill]] %s8026_s11 }
   0xd   :  { %8083 = sst [smem:[#allocation50_spill]] %s8027_s12 }
   0xe   :  { %8084 = sst [smem:[#allocation51_spill]] %s8028_s13 }
   0xf   :  { %8085 = sst [smem:[#allocation52_spill]] %s8029_s14 }
  0x10   :  { %8086 = sst [smem:[#allocation53_spill]] %s8030_s15 }
  0x11   :  { %8087 = sst [smem:[#allocation54_spill]] %s8031_s16 }
  0x12   :  { %8088 = sst [smem:[#allocation55_spill]] %s8032_s17 }
  0x13   :  { %8089 = sst [smem:[#allocation56_spill]] %s8033_s18 }
  0x14   :  { %8090 = sst [smem:[#allocation57_spill]] %s8034_s19 }
  0x15   :  { %8091 = sst [smem:[#allocation58_spill]] %s8035_s20 }
  0x16   :  { %26 = vsyncpa [#allocation9], 0 }
  0x17   :  { %27 = vsyncpa [#allocation12], 0 }
  0x18   :  { %28 = vsyncpa [#allocation10], 0 }
  0x19   :  { %29 = vsyncpa [#allocation23], 0  ;;  %s6511_s1 = smov 0   ;;  %s6513_s22 = smov 0  }
  0x1a   :  { %s6515_s23 = smov 0   ;;  %s6517_s24 = smov 0  }
  0x1b   :  { %s6519_s2 = smov 0   ;;  %s6521_s25 = smov 0  }
  0x1c LB: > { %8092 = sst [smem:[#allocation30_spill]] %s6373_s23  ;;  %s6540_s3 = sadd.s32 4294967295, %s6385_s25   ;;  %s6385_s25 = sphi %s6521_s25, %s35_s25   ;;  %s6381_s2 = sphi %s6519_s2, %s8169_s2   ;;  %s6377_s24 = sphi %s6517_s24, %s8168_s24   ;;  %s6373_s23 = sphi %s6515_s23, %s8164_s23   ;;  %s6369_s22 = sphi %s6513_s22, %s8167_s22   ;;  %s6365_s1 = sphi %s6511_s1, %s8166_s1  }
  0x1d   : > { %8093 = sst [smem:[#allocation31_spill]] %s6377_s24  ;;  %p166_p0 = scmp.ne.s32.totalorder %s6373_s23, %s6369_s22 }
  0x1e   : > { %8094 = sst [smem:[#allocation32_spill]] %s6385_s25  ;;  %p167_p1 = scmp.eq.s32.totalorder %s6385_s25, 0 }
  0x1f   : > { %p172_p2 = scmp.ne.s32.totalorder %s6369_s22, %s6365_s1  ;;  %p8043_p3 = scmp.eq.s32.totalorder %s6540_s3, 0 }
  0x20   : > { %p168_p4 = por %p167_p1, %p166_p0  ;;  %p4569_p5 = scmp.ge.s32.totalorder %s6385_s25, 1 }
  0x21   : > { %p6551_p6 = por %p8043_p3, %p172_p2  ;;  %p553_p7 = scmp.lt.s32.totalorder %s6385_s25, 5 }
  0x22   : > { %s6387_s4 = smov [#allocation8]   ;;  %p5547_p10 = scmp.lt.s32.totalorder %s6385_s25, 4 }
  0x23   : > { %s8095_s27 = scalar_select %p6551_p6, 1, 0 }
  0x24   : > { %p6556_p8 = pnand %p4569_p5, %p553_p7  ;;  %s568_s29 = sshll.u32 %s6387_s4, 4  ;;  %s569_s29 = int_to_ptr.vmem [resolvable:$true] %s568_s29 }
  0x25   : > { %8096 = sst [smem:[#allocation33_spill]] %s8095_s27  ;;  %p6569_p12 = pnand %p5547_p10, %p168_p4 }
  0x26   : > { %s8097_s28 = scalar_select %p6556_p8, 1, 0 }
  0x27   : > { %p5512_p9 = pneg %p6556_p8  ;;  %s47_s21 = sadd.s32 1, %s6381_s2 }
  0x28   : > { %s8099_s0 = scalar_select %p6569_p12, 1, 0 }
  0x29   : > { %p6565_p11 = pnand %p5512_p9, %p8043_p3  ;;  %s8100_s20 = sld [smem:[#allocation39_spill]] }
  0x2b   : > { %s8098_s30 = scalar_select %p6565_p11, 1, 0 }
  0x2c   : > { %p6582_p0 = pneg %p6565_p11 }
  0x2e   : > { %s8101_s16 = scalar_select %p6582_p0, 1, 0 }
  0x2f   : > { %s5969_s19 = scalar_lea.hbm %s8100_s20, 2048 }
  0x30   : > { %p5970_p13 = scmp.ne.s32.totalorder %s8100_s20, %s5969_s19  ;;  %p5976_p4 = scmp.lt.u32.totalorder %s5969_s19, %s8100_s20 }
  0x32   : > { %p5972_p1 = pnand %p6582_p0, %p5970_p13 }
  0x34   : > { %p5973_p2 = pneg %p5972_p1 }
  0x36   : > { %p5978_p5 = pnand %p5976_p4, %p5973_p2 }
  0x38   : > { %5981 = shalt.err (!%p5978_p5)
}
  0x39   : > { %s5982_s26 = scalar_lea.vmem %s569_s29, 2048  ;;  %p5990_p3 = scmp.lt.s32.totalorder %s569_s29, %s569_s29 }
  0x3a   : > { %p5983_p7 = scmp.ne.s32.totalorder %s569_s29, %s5982_s26  ;;  %p5991_p6 = scmp.lt.s32.totalorder %s5982_s26, %s5982_s26 }
  0x3c   : > { %p5985_p9 = pnand %p5983_p7, %p6582_p0  ;;  %p5992_p8 = por %p5991_p6, %p5990_p3 }
  0x3e   : > { %p5986_p10 = pneg %p5985_p9 }
  0x40   : > { %p5993_p12 = pnand %p5992_p8, %p5986_p10 }
  0x42   : > { %5996 = shalt.err (!%p5993_p12)
}
  0x43   : > { %s8050_s18 = smov 128   ;;  %s8052_s12 = smov 8  }
  0x44   : > { %5515 = dma.hbm_to_vmem [thread:$0]  (!%p6565_p11), %s8100_s20, 2048, %s569_s29, [#allocation9], %s8050_s18, %s8050_s18, %s8052_s12  }
  0x45   : > { %p49_p3 = scmp.ge.s32.totalorder %s47_s21, 4  ;;  %s617_s1 = sand.u32 1, %s6385_s25  }
  0x46   : > { %s6603_s4 = sand.u32 1, %s6373_s23   ;;  %s8056_s11 = sshll.u32 %s6381_s2, 11 }
  0x47   : > { %s8171_s21 = smov (%p49_p3, %s47_s21), 0  ;;  %s8055_s26 = sshll.u32 %s6603_s4, 7 }
  0x48   : > { %8102 = sst [smem:[#allocation34_spill]] %s8171_s21  ;;  %s156_s8 = ssub.s32 %s6381_s2, %s8171_s21 }
  0x49   : > { %p157_p6 = scmp.eq.s32.totalorder %s156_s8, 0  ;;  %s8103_s5 = sld [smem:[#allocation43_spill]] }
  0x4a   : > { %s621_s29 = scalar_lea.vmem [#allocation13], %s8055_s26  ;;  %s8104_s18 = sadd.s32 1, %s6373_s23 }
  0x4b   : > { %s628_s19 = sshll.u32 %s621_s29, 4  ;;  %s6627_s8 = scalar_lea.sflag [#allocation9], %s617_s1  ;;  %s6625_s19 = int_to_ptr.vmem [resolvable:$true] %s628_s19 }
  0x4c   : > { %s6623_s12 = scalar_select %p157_p6, %s6373_s23, %s8104_s18  }
  0x4d   : > { %p8106_p12 = scmp.ne.s32.totalorder %s8099_s0, 0 }
  0x4e   : > { %8105 = sst [smem:[#allocation35_spill]] %s6623_s12 }
  0x4f   : > { %s6616_s14 = scalar_lea.hbm %s8103_s5, %s8056_s11  ;;  %p6633_p13 = pneg %p8106_p12 }
  0x50   : > { %s5997_s20 = scalar_lea.hbm %s6616_s14, 2048  ;;  %s6002_s18 = scalar_lea.hbm %s8103_s5, 8192 }
  0x51   : > { %p5998_p8 = scmp.ne.s32.totalorder %s6616_s14, %s5997_s20  ;;  %p6003_p4 = scmp.lt.u32.totalorder %s6616_s14, %s8103_s5 }
  0x52   : > { %p6004_p5 = scmp.lt.u32.totalorder %s6002_s18, %s5997_s20  ;;  %p6006_p9 = scmp.lt.u32.totalorder %s5997_s20, %s6616_s14 }
  0x53   : > { %p6000_p1 = pnand %p6633_p13, %p5998_p8 }
  0x54   : > { %p6005_p7 = por %p6004_p5, %p6003_p4 }
  0x55   : > { %p6001_p2 = pneg %p6000_p1 }
  0x56   : > { %p6007_p10 = por %p6006_p9, %p6005_p7 }
  0x58   : > { %p6008_p3 = pnand %p6007_p10, %p6001_p2 }
  0x5a   : > { %6011 = shalt.err (!%p6008_p3)
}
  0x5b   : > { %s6012_s1 = scalar_lea.vmem %s6625_s19, 2048  ;;  %s6390_s27 = smov [#allocation13]  }
  0x5c   : > { %p6013_p6 = scmp.ne.s32.totalorder %s6625_s19, %s6012_s1  ;;  %s6017_s29 = sshll.u32 %s6390_s27, 4  ;;  %s6018_s29 = int_to_ptr.vmem [resolvable:$false] %s6017_s29 }
  0x5d   : > { %s6019_s11 = scalar_lea.vmem %s6018_s29, 4096  ;;  %p6020_p11 = scmp.lt.s32.totalorder %s6625_s19, %s6018_s29 }
  0x5e   : > { %p6015_p8 = pnand %p6013_p6, %p6633_p13  ;;  %p6021_p0 = scmp.lt.s32.totalorder %s6019_s11, %s6012_s1 }
  0x60   : > { %p6016_p1 = pneg %p6015_p8  ;;  %p6022_p4 = por %p6021_p0, %p6020_p11 }
  0x62   : > { %p6023_p5 = pnand %p6022_p4, %p6016_p1 }
  0x64   : > { %6026 = shalt.err (!%p6023_p5)
}
  0x65   : > { %s8108_s20 = smov 8   ;;  %s8109_s26 = smov 128  }
  0x66   : > { %5525 = dma.hbm_to_vmem [thread:$0]  (!%p8106_p12), %s6616_s14, 2048, %s6625_s19, %s6627_s8, %s8109_s26, %s8109_s26, %s8108_s20  }
  0x67   : > { %s6661_s18 = sshll.u32 %s6381_s2, 4  ;;  %s641_s27 = scalar_lea.vmem [#allocation14], %s6603_s4 }
  0x68   : > { %s648_s1 = sshll.u32 %s641_s27, 4  ;;  %s8110_s6 = sld [smem:[#allocation44_spill]]  ;;  %s649_s1 = int_to_ptr.vmem [resolvable:$true] %s648_s1 }
  0x6e   : > { %s646_s5 = scalar_lea.hbm %s8110_s6, %s6661_s18  ;;  %s6032_s25 = scalar_lea.hbm %s8110_s6, 64 }
  0x6f   : > { %s6027_s21 = scalar_lea.hbm %s646_s5, 16  ;;  %p6033_p7 = scmp.lt.u32.totalorder %s646_s5, %s8110_s6 }
  0x70   : > { %p6028_p11 = scmp.ne.s32.totalorder %s646_s5, %s6027_s21  ;;  %p6034_p9 = scmp.lt.u32.totalorder %s6032_s25, %s6027_s21 }
  0x71   : > { %p6036_p3 = scmp.lt.u32.totalorder %s6027_s21, %s646_s5 }
  0x72   : > { %p6030_p0 = pnand %p6028_p11, %p6633_p13  ;;  %p6035_p10 = por %p6034_p9, %p6033_p7 }
  0x74   : > { %p6031_p2 = pneg %p6030_p0  ;;  %p6037_p6 = por %p6036_p3, %p6035_p10 }
  0x76   : > { %p6038_p8 = pnand %p6037_p6, %p6031_p2 }
  0x78   : > { %6041 = shalt.err (!%p6038_p8)
}
  0x79   : > { %s6042_s27 = scalar_lea.vmem %s649_s1, 16  ;;  %s6391_s29 = smov [#allocation14]  }
  0x7a   : > { %p6043_p1 = scmp.ne.s32.totalorder %s649_s1, %s6042_s27  ;;  %s6047_s11 = sshll.u32 %s6391_s29, 4  ;;  %s6048_s11 = int_to_ptr.vmem [resolvable:$false] %s6047_s11 }
  0x7b   : > { %s6049_s23 = scalar_lea.vmem %s6048_s11, 32  ;;  %p6050_p11 = scmp.lt.s32.totalorder %s649_s1, %s6048_s11 }
  0x7c   : > { %p6045_p4 = pnand %p6043_p1, %p6633_p13  ;;  %p6051_p0 = scmp.lt.s32.totalorder %s6049_s23, %s6042_s27 }
  0x7e   : > { %p6046_p5 = pneg %p6045_p4  ;;  %p6052_p12 = por %p6051_p0, %p6050_p11 }
  0x80   : > { %p6053_p7 = pnand %p6052_p12, %p6046_p5 }
  0x82   : > { %6056 = shalt.err (!%p6053_p7)
}
  0x83   : > { %p8111_p9 = scmp.ne.s32.totalorder %s8099_s0, 0  ;;  %s8112_s7 = sld [smem:[#allocation45_spill]] }
  0x84   : > { %s658_s14 = scalar_lea.vmem [#allocation15], %s6603_s4  ;;  %s8113_s9 = sld [smem:[#allocation47_spill]] }
  0x85   : > { %5528 = dma.hbm_to_vmem [thread:$0]  (!%p8111_p9), %s646_s5, 16, %s649_s1, %s6627_s8  }
  0x86   : > { %s665_s19 = sshll.u32 %s658_s14, 4  ;;  %s666_s19 = int_to_ptr.vmem [resolvable:$true] %s665_s19 }
  0x89   : > { %s6685_s12 = scalar_lea.hbm %s8112_s7, %s6661_s18  ;;  %s6062_s25 = scalar_lea.hbm %s8112_s7, 64 }
  0x8a   : > { %s6692_s11 = scalar_lea.hbm %s8113_s9, %s6661_s18  ;;  %s6057_s23 = scalar_lea.hbm %s6685_s12, 16 }
  0x8b   : > { %p6058_p12 = scmp.ne.s32.totalorder %s6685_s12, %s6057_s23  ;;  %p6063_p3 = scmp.lt.u32.totalorder %s6685_s12, %s8112_s7 }
  0x8c   : > { %p6064_p6 = scmp.lt.u32.totalorder %s6062_s25, %s6057_s23  ;;  %p6066_p1 = scmp.lt.u32.totalorder %s6057_s23, %s6685_s12 }
  0x8d   : > { %p6060_p2 = pnand %p6058_p12, %p6633_p13 }
  0x8e   : > { %p6065_p8 = por %p6064_p6, %p6063_p3 }
  0x8f   : > { %p6061_p10 = pneg %p6060_p2 }
  0x90   : > { %p6067_p4 = por %p6066_p1, %p6065_p8 }
  0x92   : > { %p6068_p5 = pnand %p6067_p4, %p6061_p10 }
  0x94   : > { %6071 = shalt.err (!%p6068_p5)
}
  0x95   : > { %s6072_s18 = scalar_lea.vmem %s666_s19, 16  ;;  %s6392_s14 = smov [#allocation15]  }
  0x96   : > { %p6073_p11 = scmp.ne.s32.totalorder %s666_s19, %s6072_s18  ;;  %s6077_s27 = sshll.u32 %s6392_s14, 4  ;;  %s6078_s27 = int_to_ptr.vmem [resolvable:$false] %s6077_s27 }
  0x97   : > { %s6079_s29 = scalar_lea.vmem %s6078_s27, 32  ;;  %p6080_p12 = scmp.lt.s32.totalorder %s666_s19, %s6078_s27 }
  0x98   : > { %p6075_p0 = pnand %p6073_p11, %p6633_p13  ;;  %p6081_p2 = scmp.lt.s32.totalorder %s6079_s29, %s6072_s18 }
  0x9a   : > { %p6076_p7 = pneg %p6075_p0  ;;  %p6082_p9 = por %p6081_p2, %p6080_p12 }
  0x9c   : > { %p6083_p3 = pnand %p6082_p9, %p6076_p7 }
  0x9e   : > { %6086 = shalt.err (!%p6083_p3)
}
  0x9f   : > { %p8114_p6 = scmp.ne.s32.totalorder %s8099_s0, 0  ;;  %s683_s6 = scalar_lea.vmem [#allocation16], %s6603_s4 }
  0xa0   : > { %s690_s23 = sshll.u32 %s683_s6, 4  ;;  %s6087_s5 = scalar_lea.hbm %s6692_s11, 16  ;;  %s691_s23 = int_to_ptr.vmem [resolvable:$true] %s690_s23 }
  0xa1   : > { %5531 = dma.hbm_to_vmem [thread:$0]  (!%p8114_p6), %s6685_s12, 16, %s666_s19, %s6627_s8  }
  0xa2   : > { %p6088_p10 = scmp.ne.s32.totalorder %s6692_s11, %s6087_s5  ;;  %s6092_s21 = scalar_lea.hbm %s8113_s9, 64 }
  0xa3   : > { %p6093_p1 = scmp.lt.u32.totalorder %s6692_s11, %s8113_s9  ;;  %p6094_p4 = scmp.lt.u32.totalorder %s6092_s21, %s6087_s5 }
  0xa4   : > { %p6090_p8 = pnand %p6088_p10, %p6633_p13  ;;  %p6096_p11 = scmp.lt.u32.totalorder %s6087_s5, %s6692_s11 }
  0xa5   : > { %p6095_p5 = por %p6094_p4, %p6093_p1 }
  0xa6   : > { %p6091_p9 = pneg %p6090_p8 }
  0xa7   : > { %p6097_p0 = por %p6096_p11, %p6095_p5 }
  0xa9   : > { %p6098_p7 = pnand %p6097_p0, %p6091_p9 }
  0xab   : > { %6101 = shalt.err (!%p6098_p7)
}
  0xac   : > { %s6102_s12 = scalar_lea.vmem %s691_s23, 16  ;;  %s6393_s19 = smov [#allocation16]  }
  0xad   : > { %p6103_p12 = scmp.ne.s32.totalorder %s691_s23, %s6102_s12  ;;  %s6107_s27 = sshll.u32 %s6393_s19, 4  ;;  %s6108_s27 = int_to_ptr.vmem [resolvable:$false] %s6107_s27 }
  0xae   : > { %s6109_s29 = scalar_lea.vmem %s6108_s27, 32  ;;  %p6110_p10 = scmp.lt.s32.totalorder %s691_s23, %s6108_s27 }
  0xaf   : > { %p6105_p2 = pnand %p6103_p12, %p6633_p13  ;;  %p6111_p8 = scmp.lt.s32.totalorder %s6109_s29, %s6102_s12 }
  0xb1   : > { %p6106_p3 = pneg %p6105_p2  ;;  %p6112_p6 = por %p6111_p8, %p6110_p10 }
  0xb3   : > { %p6113_p1 = pnand %p6112_p6, %p6106_p3 }
  0xb5   : > { %6116 = shalt.err (!%p6113_p1)
}
  0xb6   : > { %p8115_p4 = scmp.ne.s32.totalorder %s8099_s0, 0  ;;  %s8065_s6 = sshll.u32 %s6603_s4, 6 }
  0xb7   : > { %s8066_s5 = sshll.u32 %s6381_s2, 10  ;;  %s8116_s10 = sld [smem:[#allocation48_spill]] }
  0xb8   : > { %5534 = dma.hbm_to_vmem [thread:$0]  (!%p8115_p4), %s6692_s11, 16, %s691_s23, %s6627_s8  }
  0xb9   : > { %s701_s18 = scalar_lea.vmem [#allocation17], %s8065_s6  ;;  %s6394_s12 = smov [#allocation11]  }
  0xba   : > { %s708_s14 = sshll.u32 %s701_s18, 4  ;;  %s6744_s19 = sshll.u32 %s6394_s12, 4  ;;  %s6742_s14 = int_to_ptr.vmem [resolvable:$true] %s708_s14  ;;  %s588_s19 = int_to_ptr.vmem [resolvable:$true] %s6744_s19 }
  0xbd   : > { %s6738_s21 = scalar_lea.hbm %s8116_s10, %s8066_s5  ;;  %s6122_s29 = scalar_lea.hbm %s8116_s10, 4096 }
  0xbe   : > { %s6117_s11 = scalar_lea.hbm %s6738_s21, 1024  ;;  %p6123_p11 = scmp.lt.u32.totalorder %s6738_s21, %s8116_s10 }
  0xbf   : > { %p6118_p6 = scmp.ne.s32.totalorder %s6738_s21, %s6117_s11  ;;  %p6124_p0 = scmp.lt.u32.totalorder %s6122_s29, %s6117_s11 }
  0xc0   : > { %p6126_p12 = scmp.lt.u32.totalorder %s6117_s11, %s6738_s21 }
  0xc1   : > { %p6120_p9 = pnand %p6118_p6, %p6633_p13  ;;  %p6125_p7 = por %p6124_p0, %p6123_p11 }
  0xc3   : > { %p6121_p5 = pneg %p6120_p9  ;;  %p6127_p2 = por %p6126_p12, %p6125_p7 }
  0xc5   : > { %p6128_p3 = pnand %p6127_p2, %p6121_p5 }
  0xc7   : > { %6131 = shalt.err (!%p6128_p3)
}
  0xc8   : > { %s6132_s18 = scalar_lea.vmem %s6742_s14, 1024  ;;  %s6395_s12 = smov [#allocation17]  }
  0xc9   : > { %p6133_p10 = scmp.ne.s32.totalorder %s6742_s14, %s6132_s18  ;;  %s6137_s23 = sshll.u32 %s6395_s12, 4  ;;  %s6138_s23 = int_to_ptr.vmem [resolvable:$false] %s6137_s23 }
  0xca   : > { %s6139_s27 = scalar_lea.vmem %s6138_s23, 2048  ;;  %p6140_p6 = scmp.lt.s32.totalorder %s6742_s14, %s6138_s23 }
  0xcb   : > { %p6135_p8 = pnand %p6133_p10, %p6633_p13  ;;  %p6141_p9 = scmp.lt.s32.totalorder %s6139_s27, %s6132_s18 }
  0xcd   : > { %p6136_p1 = pneg %p6135_p8  ;;  %p6142_p11 = por %p6141_p9, %p6140_p6 }
  0xcf   : > { %p6143_p0 = pnand %p6142_p11, %p6136_p1 }
  0xd1   : > { %6146 = shalt.err (!%p6143_p0)
}
  0xd2   : > { %s6396_s11 = smov 64   ;;  %s6397_s29 = smov 4  }
  0xd3   : > { %5537 = dma.hbm_to_vmem [thread:$0]  (!%p8115_p4), %s6738_s21, 1024, %s6742_s14, %s6627_s8, %s6396_s11, %s6396_s11, %s6397_s29  }
  0xd4   : > { %s8117_s18 = sld [smem:[#allocation42_spill]]  ;;  %p8118_p7 = scmp.ne.s32.totalorder %s8101_s16, 0 }
  0xda   : > { %s6147_s12 = scalar_lea.hbm %s8117_s18, 512 }
  0xdb   : > { %p6148_p5 = scmp.ne.s32.totalorder %s8117_s18, %s6147_s12  ;;  %p6154_p3 = scmp.lt.u32.totalorder %s6147_s12, %s8117_s18 }
  0xdd   : > { %p6150_p12 = pnand %p6148_p5, %p8118_p7 }
  0xdf   : > { %p6151_p2 = pneg %p6150_p12 }
  0xe1   : > { %p6156_p10 = pnand %p6154_p3, %p6151_p2 }
  0xe3   : > { %6159 = shalt.err (!%p6156_p10)
}
  0xe4   : > { %s6160_s7 = scalar_lea.vmem %s588_s19, 512  ;;  %p6168_p9 = scmp.lt.s32.totalorder %s588_s19, %s588_s19 }
  0xe5   : > { %p6161_p8 = scmp.ne.s32.totalorder %s588_s19, %s6160_s7  ;;  %p6169_p11 = scmp.lt.s32.totalorder %s6160_s7, %s6160_s7 }
  0xe7   : > { %p6163_p1 = pnand %p6161_p8, %p8118_p7  ;;  %p6170_p0 = por %p6169_p11, %p6168_p9 }
  0xe9   : > { %p6164_p6 = pneg %p6163_p1 }
  0xeb   : > { %p6171_p4 = pnand %p6170_p0, %p6164_p6 }
  0xed   : > { %6174 = shalt.err (!%p6171_p4)
}
  0xee   : > { %p8119_p5 = scmp.ne.s32.totalorder %s8098_s30, 0  ;;  %s8120_s21 = sshll.u32 %s6381_s2, 11 }
  0xef   : > { %s8121_s13 = sld [smem:[#allocation51_spill]]  ;;  %s8122_s25 = sshll.u32 %s6603_s4, 7 }
  0xf0   : > { %5518 = dma.hbm_to_vmem [thread:$0]  (!%p8119_p5), %s8117_s18, 512, %s588_s19, [#allocation12], %s8109_s26, %s8109_s26, %s8108_s20  }
  0xf1   : > { %s736_s12 = scalar_lea.vmem [#allocation18], %s8122_s25 }
  0xf2   : > { %s743_s23 = sshll.u32 %s736_s12, 4  ;;  %s6802_s23 = int_to_ptr.vmem [resolvable:$true] %s743_s23 }
  0xf5   : > { %s6798_s7 = scalar_lea.hbm %s8121_s13, %s8120_s21  ;;  %s6180_s19 = scalar_lea.hbm %s8121_s13, 8192 }
  0xf6   : > { %s6175_s27 = scalar_lea.hbm %s6798_s7, 2048  ;;  %p6181_p3 = scmp.lt.u32.totalorder %s6798_s7, %s8121_s13 }
  0xf7   : > { %p6176_p4 = scmp.ne.s32.totalorder %s6798_s7, %s6175_s27  ;;  %p6182_p10 = scmp.lt.u32.totalorder %s6180_s19, %s6175_s27 }
  0xf8   : > { %p6184_p1 = scmp.lt.u32.totalorder %s6175_s27, %s6798_s7 }
  0xf9   : > { %p6178_p12 = pnand %p6176_p4, %p6633_p13  ;;  %p6183_p8 = por %p6182_p10, %p6181_p3 }
  0xfb   : > { %p6179_p2 = pneg %p6178_p12  ;;  %p6185_p6 = por %p6184_p1, %p6183_p8 }
  0xfd   : > { %p6186_p9 = pnand %p6185_p6, %p6179_p2 }
  0xff   : > { %6189 = shalt.err (!%p6186_p9)
}
 0x100   : > { %s6190_s21 = scalar_lea.vmem %s6802_s23, 2048  ;;  %s6398_s14 = smov [#allocation18]  }
 0x101   : > { %p6191_p11 = scmp.ne.s32.totalorder %s6802_s23, %s6190_s21  ;;  %s6195_s1 = sshll.u32 %s6398_s14, 4  ;;  %s6196_s1 = int_to_ptr.vmem [resolvable:$false] %s6195_s1 }
 0x102   : > { %s6197_s25 = scalar_lea.vmem %s6196_s1, 4096  ;;  %p6198_p12 = scmp.lt.s32.totalorder %s6802_s23, %s6196_s1 }
 0x103   : > { %p6193_p0 = pnand %p6191_p11, %p6633_p13  ;;  %p6199_p5 = scmp.lt.s32.totalorder %s6197_s25, %s6190_s21 }
 0x105   : > { %p6194_p4 = pneg %p6193_p0  ;;  %p6200_p3 = por %p6199_p5, %p6198_p12 }
 0x107   : > { %p6201_p10 = pnand %p6200_p3, %p6194_p4 }
 0x109   : > { %6204 = shalt.err (!%p6201_p10)
}
 0x10a   : > { %p8123_p2 = scmp.ne.s32.totalorder %s8099_s0, 0  ;;  %s6399_s12 = smov [#allocation20]  }
 0x10b   : > { %s600_s27 = sshll.u32 %s6399_s12, 4  ;;  %s8124_s20 = sshll.u32 %s6381_s2, 10  ;;  %s601_s27 = int_to_ptr.vmem [resolvable:$true] %s600_s27 }
 0x10c   : > { %5540 = dma.hbm_to_vmem [thread:$0]  (!%p8123_p2), %s6798_s7, 2048, %s6802_s23, %s6627_s8, %s6396_s11, %s6396_s11, %s6397_s29  }
 0x10d   : > { %s8125_s15 = sld [smem:[#allocation53_spill]]  ;;  %s8126_s17 = sld [smem:[#allocation55_spill]] }
 0x113   : > { %s6834_s6 = scalar_lea.hbm %s8125_s15, %s8124_s20  ;;  %s6205_s14 = scalar_lea.hbm %s8126_s17, 1024 }
 0x114   : > { %p6206_p5 = scmp.ne.s32.totalorder %s8126_s17, %s6205_s14  ;;  %p6212_p6 = scmp.lt.u32.totalorder %s6205_s14, %s8126_s17 }
 0x116   : > { %p6208_p8 = pnand %p6206_p5, %p8118_p7 }
 0x118   : > { %p6209_p1 = pneg %p6208_p8 }
 0x11a   : > { %p6214_p9 = pnand %p6212_p6, %p6209_p1 }
 0x11c   : > { %6217 = shalt.err (!%p6214_p9)
}
 0x11d   : > { %s6218_s12 = scalar_lea.vmem %s601_s27, 1024  ;;  %p6226_p12 = scmp.lt.s32.totalorder %s601_s27, %s601_s27 }
 0x11e   : > { %p6219_p11 = scmp.ne.s32.totalorder %s601_s27, %s6218_s12  ;;  %p6227_p3 = scmp.lt.s32.totalorder %s6218_s12, %s6218_s12 }
 0x120   : > { %p6221_p0 = pnand %p6219_p11, %p8118_p7  ;;  %p6228_p10 = por %p6227_p3, %p6226_p12 }
 0x122   : > { %p6222_p4 = pneg %p6221_p0 }
 0x124   : > { %p6229_p2 = pnand %p6228_p10, %p6222_p4 }
 0x126   : > { %6232 = shalt.err (!%p6229_p2)
}
 0x127   : > { %p8127_p5 = scmp.ne.s32.totalorder %s8098_s30, 0  ;;  %s8128_s16 = sshll.u32 %s6603_s4, 6 }
 0x128   : > { %s763_s19 = scalar_lea.vmem [#allocation19], %s8128_s16  ;;  %s6233_s21 = scalar_lea.hbm %s6834_s6, 1024 }
 0x129   : > { %5521 = dma.hbm_to_vmem [thread:$0]  (!%p8127_p5), %s8126_s17, 1024, %s601_s27, [#allocation12], %s6396_s11, %s6396_s11, %s6397_s29  }
 0x12a   : > { %s770_s5 = sshll.u32 %s763_s19, 4  ;;  %p6234_p7 = scmp.ne.s32.totalorder %s6834_s6, %s6233_s21  ;;  %s6859_s5 = int_to_ptr.vmem [resolvable:$true] %s770_s5 }
 0x12b   : > { %s6238_s1 = scalar_lea.hbm %s8125_s15, 4096  ;;  %p6239_p1 = scmp.lt.u32.totalorder %s6834_s6, %s8125_s15 }
 0x12c   : > { %p6236_p2 = pnand %p6234_p7, %p6633_p13  ;;  %p6240_p6 = scmp.lt.u32.totalorder %s6238_s1, %s6233_s21 }
 0x12d   : > { %p6242_p11 = scmp.lt.u32.totalorder %s6233_s21, %s6834_s6 }
 0x12e   : > { %p6237_p8 = pneg %p6236_p2  ;;  %p6241_p9 = por %p6240_p6, %p6239_p1 }
 0x130   : > { %p6243_p0 = por %p6242_p11, %p6241_p9 }
 0x132   : > { %p6244_p4 = pnand %p6243_p0, %p6237_p8 }
 0x134   : > { %6247 = shalt.err (!%p6244_p4)
}
 0x135   : > { %s6248_s4 = scalar_lea.vmem %s6859_s5, 1024  ;;  %s6400_s27 = smov [#allocation19]  }
 0x136   : > { %p6249_p12 = scmp.ne.s32.totalorder %s6859_s5, %s6248_s4  ;;  %s6253_s23 = sshll.u32 %s6400_s27, 4  ;;  %s6254_s23 = int_to_ptr.vmem [resolvable:$false] %s6253_s23 }
 0x137   : > { %s6255_s12 = scalar_lea.vmem %s6254_s23, 2048  ;;  %p6256_p5 = scmp.lt.s32.totalorder %s6859_s5, %s6254_s23 }
 0x138   : > { %p6251_p3 = pnand %p6249_p12, %p6633_p13  ;;  %p6257_p7 = scmp.lt.s32.totalorder %s6255_s12, %s6248_s4 }
 0x13a   : > { %p6252_p10 = pneg %p6251_p3  ;;  %p6258_p2 = por %p6257_p7, %p6256_p5 }
 0x13c   : > { %p6259_p1 = pnand %p6258_p2, %p6252_p10 }
 0x13e   : > { %6262 = shalt.err (!%p6259_p1)
}
 0x13f   : > { %p8129_p8 = scmp.ne.s32.totalorder %s8099_s0, 0  ;;  %p8130_p13 = scmp.ne.s32.totalorder %s8097_s28, 0 }
 0x141   : > { %5543 = dma.hbm_to_vmem [thread:$0]  (!%p8129_p8), %s6834_s6, 1024, %s6859_s5, %s6627_s8, %s6396_s11, %s6396_s11, %s6397_s29  }
 0x142   : > { %788 = sbr.rel (%p8130_p13) target bundleno = 2654 (0xa5e), region = 96 }
 0x149   : > { %p8131_p6 = scmp.eq.s32.totalorder %s6540_s3, 0 }
 0x14b   : > { %6340 = dma.done.wait (%p8131_p6), [#allocation9], 2048   ;;  %p8132_p9 = pmov %p8131_p6 }
 0x14c   : > { %p8133_p11 = pmov %p8131_p6 }
 0x14d   : > { %6342 = vsyncadd (%p8132_p9), [#allocation9], 4294965248 }
 0x14e   : > { %6344 = dma.done.wait (%p8133_p11), [#allocation12], 512   ;;  %p8134_p0 = pmov %p8131_p6 }
 0x14f   : > { %s8135_s0 = sld [smem:[#allocation33_spill]]  ;;  %s798_s24 = sand.u32 1, %s6540_s3  }
 0x150   : > { %6346 = vsyncadd (%p8134_p0), [#allocation12], 4294966784  ;;  %s6898_s8 = sand.u32 1, %s6369_s22   ;;  %s799_s11 = scalar_lea.sflag [#allocation9], %s798_s24 }
 0x151   : > { %s4592_s28 = sshll.u32 %s6898_s8, 7 }
 0x152   : > { %s6901_s29 = scalar_lea.vmem [#allocation13], %s4592_s28 }
 0x155   : > { %p8136_p4 = scmp.ne.s32.totalorder %s8135_s0, 0 }
 0x157   : > { %6348 = dma.done.wait (%p8136_p4), %s799_s11, 6192  }
 0x158   : > { %6350 = vsyncadd (%p8136_p4), %s799_s11, 4294961104  ;;  %s4593_s6 = sshll.u32 %s6898_s8, 6  ;;  %s6913_s5 = scalar_lea.vmem [#allocation18], %s4592_s28 }
 0x159   : > { %s6911_s19 = scalar_lea.vmem [#allocation17], %s4593_s6  ;;  %s6915_s21 = scalar_lea.vmem [#allocation19], %s4593_s6 }
 0x15a   : > { %p8137_p12 = pmov %p8134_p0 }
 0x15b   : > { %p8138_p3 = pmov %p8134_p0 }
 0x15c   : > { %6352 = dma.done.wait (%p8137_p12), [#allocation12], 1024  }
 0x15d   : > { %6354 = vsyncadd (%p8138_p3), [#allocation12], 4294966272  ;;  %s8139_s30 = sld [smem:[#allocation31_spill]]  ;;  %s8140_s4 = sld [smem:[#allocation49_spill]] }
 0x15e   : > { %s8141_s0 = sld [smem:[#allocation46_spill]]  ;;  %s8142_s6 = sld [smem:[#allocation50_spill]] }
 0x15f   : > { %s8143_s9 = sld [smem:[#allocation52_spill]]  ;;  %s8144_s17 = sld [smem:[#allocation54_spill]] }
 0x163   : > { %p955_p10 = scmp.lt.s32.totalorder %s8139_s30, 3  ;;  %p4601_p5 = scmp.ne.s32.totalorder %s8139_s30, 0 }
 0x164   : > { %v1015_v16 = vld [vmem:[#allocation8] sm:$0xff] (!%p4601_p5)  ;;  %v1016_v17 = vld [vmem:[#allocation8 + $0x8] sm:$0xff] (!%p4601_p5)  ;;  %v1017_v18 = vld [vmem:[#allocation8 + $0x10] sm:$0xff] (!%p4601_p5) }
 0x165   : > { %s6923_s14 = scalar_select %p955_p10, %s8139_s30, 3 }
 0x166   : > { %982 = sbr.rel (%p4601_p5) target bundleno = 377 (0x179), region = 144  ;;  %1031 = vst [vmem:[#allocation3] sm:$0xff] (!%p4601_p5), %v1015_v16  ;;  %1032 = vst [vmem:[#allocation3 + $0x8] sm:$0xff] (!%p4601_p5), %v1016_v17  ;;  %v1018_v19 = vld [vmem:[#allocation8 + $0x18] sm:$0xff] (!%p4601_p5)  ;;  %v1019_v20 = vld [vmem:[#allocation8 + $0x20] sm:$0xff] (!%p4601_p5) }
 0x167   : > { %s4756_s1 = sshll.u32 %s6923_s14, 6  ;;  %s962_s27 = scalar_lea.vmem %s8140_s4, %s6923_s14  ;;  %1033 = vst [vmem:[#allocation3 + $0x10] sm:$0xff] (!%p4601_p5), %v1017_v18  ;;  %1034 = vst [vmem:[#allocation3 + $0x18] sm:$0xff] (!%p4601_p5), %v1018_v19  ;;  %v1020_v21 = vld [vmem:[#allocation8 + $0x28] sm:$0xff] (!%p4601_p5)  ;;  %v1021_v22 = vld [vmem:[#allocation8 + $0x30] sm:$0xff] (!%p4601_p5) }
 0x168   : > { %s6933_s24 = scalar_lea.vmem %s8141_s0, %s4756_s1  ;;  %s6938_s16 = scalar_lea.vmem %s8142_s6, %s4756_s1  ;;  %1035 = vst [vmem:[#allocation3 + $0x20] sm:$0xff] (!%p4601_p5), %v1019_v20  ;;  %v1022_v23 = vld [vmem:[#allocation8 + $0x38] sm:$0xff] (!%p4601_p5)  ;;  %1036 = vst [vmem:[#allocation3 + $0x28] sm:$0xff] (!%p4601_p5), %v1020_v21  ;;  %v1023_v24 = vld [vmem:[#allocation8 + $0x40] sm:$0xff] (!%p4601_p5) }
 0x169   : > { %s970_s10 = scalar_lea.vmem %s8143_s9, %s6923_s14  ;;  %s973_s18 = scalar_lea.vmem %s8144_s17, %s6923_s14  ;;  %1037 = vst [vmem:[#allocation3 + $0x30] sm:$0xff] (!%p4601_p5), %v1021_v22  ;;  %1038 = vst [vmem:[#allocation3 + $0x38] sm:$0xff] (!%p4601_p5), %v1022_v23  ;;  %v1024_v25 = vld [vmem:[#allocation8 + $0x48] sm:$0xff] (!%p4601_p5)  ;;  %v1025_v26 = vld [vmem:[#allocation8 + $0x50] sm:$0xff] (!%p4601_p5) }
 0x16a   : > { %s8145_s4 = sld [smem:[#allocation38_spill]] (!%p4601_p5)  ;;  %1039 = vst [vmem:[#allocation3 + $0x40] sm:$0xff] (!%p4601_p5), %v1023_v24  ;;  %1040 = vst [vmem:[#allocation3 + $0x48] sm:$0xff] (!%p4601_p5), %v1024_v25  ;;  %v1026_v27 = vld [vmem:[#allocation8 + $0x58] sm:$0xff] (!%p4601_p5)  ;;  %v1027_v28 = vld [vmem:[#allocation8 + $0x60] sm:$0xff] (!%p4601_p5) }
 0x16b   : > { %1041 = vst [vmem:[#allocation3 + $0x50] sm:$0xff] (!%p4601_p5), %v1025_v26  ;;  %v1028_v29 = vld [vmem:[#allocation8 + $0x68] sm:$0xff] (!%p4601_p5)  ;;  %1042 = vst [vmem:[#allocation3 + $0x58] sm:$0xff] (!%p4601_p5), %v1026_v27  ;;  %v1029_v30 = vld [vmem:[#allocation8 + $0x70] sm:$0xff] (!%p4601_p5) }
 0x16c   : > { %1043 = vst [vmem:[#allocation3 + $0x60] sm:$0xff] (!%p4601_p5), %v1027_v28  ;;  %1044 = vst [vmem:[#allocation3 + $0x68] sm:$0xff] (!%p4601_p5), %v1028_v29  ;;  %v1030_v31 = vld [vmem:[#allocation8 + $0x78] sm:$0xff] (!%p4601_p5) }
 0x16d   : > { %1045 = vst [vmem:[#allocation3 + $0x70] sm:$0xff] %v1029_v30  ;;  %1046 = vst [vmem:[#allocation3 + $0x78] sm:$0xff] %v1030_v31 }
 0x170   : > { %v983_v0 = vld [vmem:[%s8145_s4] sm:$0xff]  ;;  %v984_v1 = vld [vmem:[%s8145_s4 + $0x8] sm:$0xff]  ;;  %v985_v2 = vld [vmem:[%s8145_s4 + $0x10] sm:$0xff] }
 0x171   : > { %999 = vst [vmem:[#allocation2] sm:$0xff] %v983_v0  ;;  %1000 = vst [vmem:[#allocation2 + $0x8] sm:$0xff] %v984_v1  ;;  %v986_v3 = vld [vmem:[%s8145_s4 + $0x18] sm:$0xff]  ;;  %v987_v4 = vld [vmem:[%s8145_s4 + $0x20] sm:$0xff] }
 0x172   : > { %1001 = vst [vmem:[#allocation2 + $0x10] sm:$0xff] %v985_v2  ;;  %v988_v5 = vld [vmem:[%s8145_s4 + $0x28] sm:$0xff]  ;;  %1002 = vst [vmem:[#allocation2 + $0x18] sm:$0xff] %v986_v3  ;;  %v989_v6 = vld [vmem:[%s8145_s4 + $0x30] sm:$0xff] }
 0x173   : > { %1003 = vst [vmem:[#allocation2 + $0x20] sm:$0xff] %v987_v4  ;;  %1004 = vst [vmem:[#allocation2 + $0x28] sm:$0xff] %v988_v5  ;;  %v990_v7 = vld [vmem:[%s8145_s4 + $0x38] sm:$0xff]  ;;  %v991_v8 = vld [vmem:[%s8145_s4 + $0x40] sm:$0xff] }
 0x174   : > { %1005 = vst [vmem:[#allocation2 + $0x30] sm:$0xff] %v989_v6  ;;  %1006 = vst [vmem:[#allocation2 + $0x38] sm:$0xff] %v990_v7  ;;  %v992_v9 = vld [vmem:[%s8145_s4 + $0x48] sm:$0xff]  ;;  %v993_v10 = vld [vmem:[%s8145_s4 + $0x50] sm:$0xff] }
 0x175   : > { %1007 = vst [vmem:[#allocation2 + $0x40] sm:$0xff] %v991_v8  ;;  %v994_v11 = vld [vmem:[%s8145_s4 + $0x58] sm:$0xff]  ;;  %1008 = vst [vmem:[#allocation2 + $0x48] sm:$0xff] %v992_v9  ;;  %v995_v12 = vld [vmem:[%s8145_s4 + $0x60] sm:$0xff] }
 0x176   : > { %1009 = vst [vmem:[#allocation2 + $0x50] sm:$0xff] %v993_v10  ;;  %1010 = vst [vmem:[#allocation2 + $0x58] sm:$0xff] %v994_v11  ;;  %v996_v13 = vld [vmem:[%s8145_s4 + $0x68] sm:$0xff]  ;;  %v997_v14 = vld [vmem:[%s8145_s4 + $0x70] sm:$0xff] }
 0x177   : > { %1011 = vst [vmem:[#allocation2 + $0x60] sm:$0xff] %v995_v12  ;;  %1012 = vst [vmem:[#allocation2 + $0x68] sm:$0xff] %v996_v13  ;;  %v998_v15 = vld [vmem:[%s8145_s4 + $0x78] sm:$0xff] }
 0x178   : > { %1013 = vst [vmem:[#allocation2 + $0x70] sm:$0xff] %v997_v14  ;;  %1014 = vst [vmem:[#allocation2 + $0x78] sm:$0xff] %v998_v15 }
 0x179 PF: > { %v5617_v32 = vld [vmem:[%s6901_s29 + $0x4] ss:$8 sps:$4 sm:$0xff]   ;;  %v5619_v33 = vld [vmem:[%s6901_s29] ss:$8 sps:$4 sm:$0xff]   ;;  %v6401_v34 = vmov 0   ;;  %v1049_v52 = vld [vmem:[#allocation2 + $0x10] sm:$0xff] }
 0x17a   : > { %1199 = vmatprep.mubr.bf16.mxu0 %v6401_v34  ;;  %5615 = vset.pattern.permute.xlu1 %v6401_v34  ;;  %v5620_v35 = vld [vmem:[%s6901_s29 + $0x14] ss:$8 sps:$4 sm:$0xff]   ;;  %v5622_v36 = vld [vmem:[%s6901_s29 + $0x10] ss:$8 sps:$4 sm:$0xff]   ;;  %v5623_v37 = vld [vmem:[%s6901_s29 + $0x24] ss:$8 sps:$4 sm:$0xff]  }
 0x17b   : > { %1167 = vmatprep.subr.bf16.mxu0 %v5617_v32  ;;  %v5625_v38 = vld [vmem:[%s6901_s29 + $0x20] ss:$8 sps:$4 sm:$0xff]   ;;  %v5626_v39 = vld [vmem:[%s6901_s29 + $0x34] ss:$8 sps:$4 sm:$0xff]   ;;  %v5628_v40 = vld [vmem:[%s6901_s29 + $0x30] ss:$8 sps:$4 sm:$0xff]  }
 0x17c   : > { %1168 = vmatpush1.bf16.msra.mxu0 %v5619_v33  ;;  %v5629_v41 = vld [vmem:[%s6901_s29 + $0x44] ss:$8 sps:$4 sm:$0xff]   ;;  %v5631_v42 = vld [vmem:[%s6901_s29 + $0x40] ss:$8 sps:$4 sm:$0xff]   ;;  %v5632_v43 = vld [vmem:[%s6901_s29 + $0x54] ss:$8 sps:$4 sm:$0xff]  }
 0x17d   : > { %1169 = vmatprep.subr.bf16.mxu0 %v5620_v35  ;;  %v5634_v44 = vld [vmem:[%s6901_s29 + $0x50] ss:$8 sps:$4 sm:$0xff]   ;;  %v5635_v45 = vld [vmem:[%s6901_s29 + $0x64] ss:$8 sps:$4 sm:$0xff]   ;;  %v5637_v46 = vld [vmem:[%s6901_s29 + $0x60] ss:$8 sps:$4 sm:$0xff]  }
 0x17e   : > { %v5638_v47 = vld [vmem:[%s6901_s29 + $0x74] ss:$8 sps:$4 sm:$0xff]   ;;  %v5640_v48 = vld [vmem:[%s6901_s29 + $0x70] ss:$8 sps:$4 sm:$0xff]   ;;  %v1047_v49 = vld [vmem:[#allocation2] sm:$0xff]  ;;  %s8146_s7 = sld [smem:[#allocation41_spill]] }
 0x17f   : > { %v1048_v50 = vld [vmem:[#allocation2 + $0x8] sm:$0xff]  ;;  %v1050_v53 = vld [vmem:[#allocation2 + $0x18] sm:$0xff]  ;;  %v1051_v55 = vld [vmem:[#allocation2 + $0x20] sm:$0xff]  ;;  %s8150_s15 = scalar_lea.vmem [#allocation15], %s6898_s8  ;;  %s8151_s17 = scalar_lea.vmem [#allocation16], %s6898_s8 }
 0x180   : > { %1170 = vmatpush1.bf16.msra.mxu0 %v5622_v36  ;;  %v1063_v51 = vpack.c.bf16 %v1048_v50, %v1047_v49  ;;  %v1064_v54 = vpack.c.bf16 %v1050_v53, %v1049_v52  ;;  %v1052_v56 = vld [vmem:[#allocation2 + $0x28] sm:$0xff]  ;;  %v1053_v58 = vld [vmem:[#allocation2 + $0x30] sm:$0xff]  ;;  %v1054_v59 = vld [vmem:[#allocation2 + $0x38] sm:$0xff]  ;;  %s8153_s20 = sld [smem:[#allocation40_spill]] }
 0x181   : > { %1171 = vmatprep.subr.bf16.mxu0 %v5623_v37  ;;  %v1065_v57 = vpack.c.bf16 %v1052_v56, %v1051_v55  ;;  %v1066_v60 = vpack.c.bf16 %v1054_v59, %v1053_v58  ;;  %v1055_v61 = vld [vmem:[#allocation2 + $0x40] sm:$0xff]  ;;  %v1056_v62 = vld [vmem:[#allocation2 + $0x48] sm:$0xff]  ;;  %v1057_v0 = vld [vmem:[#allocation2 + $0x50] sm:$0xff] }
 0x182   : > { %v1067_v63 = vpack.c.bf16 %v1056_v62, %v1055_v61  ;;  %v1058_v1 = vld [vmem:[#allocation2 + $0x58] sm:$0xff]  ;;  %v1059_v3 = vld [vmem:[#allocation2 + $0x60] sm:$0xff]  ;;  %v1060_v4 = vld [vmem:[#allocation2 + $0x68] sm:$0xff] }
 0x183   : > { %v1068_v2 = vpack.c.bf16 %v1058_v1, %v1057_v0  ;;  %v1069_v5 = vpack.c.bf16 %v1060_v4, %v1059_v3  ;;  %v1061_v6 = vld [vmem:[#allocation2 + $0x70] sm:$0xff]  ;;  %v1062_v7 = vld [vmem:[#allocation2 + $0x78] sm:$0xff]  ;;  %v7022_v9 = vld [vmem:[#allocation11] sm:$0xff] }
 0x184   : > { %1172 = vmatpush1.bf16.msra.mxu0 %v5625_v38  ;;  %v1070_v8 = vpack.c.bf16 %v1062_v7, %v1061_v6  ;;  %v1431_v10 = vunpack.c.l.s8.bf16 %v7022_v9  ;;  %v1568_v56 = vld [vmem:[#allocation3] sm:$0xff]  ;;  %v1570_v0 = vld [vmem:[#allocation3 + $0x10] sm:$0xff]  ;;  %v1571_v1 = vld [vmem:[#allocation3 + $0x18] sm:$0xff] }
 0x185   : > { %1173 = vmatprep.subr.bf16.mxu0 %v5626_v39  ;;  %v5386_v4 = vpack.c.bf16 %v1571_v1, %v1570_v0  ;;  %v1573_v6 = vld [vmem:[#allocation3 + $0x28] sm:$0xff] }
 0x186   : > { %5030 = vmatprep.mubr.bf16.mxu1 %v1431_v10  ;;  %v1574_v10 = vld [vmem:[#allocation3 + $0x30] sm:$0xff] }
 0x188   : > { %1174 = vmatpush1.bf16.msra.mxu0 %v5628_v40 }
 0x189   : > { %1175 = vmatprep.subr.bf16.mxu0 %v5629_v41 }
 0x18c   : > { %1176 = vmatpush1.bf16.msra.mxu0 %v5631_v42 }
 0x18d   : > { %1177 = vmatprep.subr.bf16.mxu0 %v5632_v43 }
 0x190   : > { %1178 = vmatpush1.bf16.msra.mxu0 %v5634_v44 }
 0x191   : > { %1179 = vmatprep.subr.bf16.mxu0 %v5635_v45 }
 0x194   : > { %1180 = vmatpush1.bf16.msra.mxu0 %v5637_v46 }
 0x195   : > { %1181 = vmatprep.subr.bf16.mxu0 %v5638_v47 }
 0x198   : > { %1182 = vmatpush1.bf16.msra.mxu0 %v5640_v48 }
 0x19b   : > { %1200 = vmatmul.mubr.bf16.vlgmr.msra.gmra.mrb[0].mxu0 %v1063_v51 }
 0x19c   : > { %1209 = vmatprep.mubr.bf16.mxu0 %v6401_v34 }
 0x1a3   : > { %1210 = vmatmul.mubr.bf16.gmra.mrb[4].mxu0 %v1064_v54 }
 0x1a4   : > { %1219 = vmatprep.mubr.bf16.mxu0 %v6401_v34 }
 0x1ab   : > { %1220 = vmatmul.mubr.bf16.gmra.mrb[8].mxu0 %v1065_v57  ;;  %v1569_v57 = vld [vmem:[#allocation3 + $0x8] sm:$0xff] }
 0x1ac   : > { %1229 = vmatprep.mubr.bf16.mxu0 %v6401_v34  ;;  %v5382_v62 = vpack.c.bf16 %v1569_v57, %v1568_v56 }
 0x1b3   : > { %1230 = vmatmul.mubr.bf16.gmra.mrb[12].mxu0 %v1066_v60 }
 0x1b4   : > { %1239 = vmatprep.mubr.bf16.mxu0 %v6401_v34 }
 0x1bb   : > { %1240 = vmatmul.mubr.bf16.gmra.mrb[16].mxu0 %v1067_v63  ;;  %v7041_v63 = vld [vmem:[#allocation11 + $0x8] sm:$0xff] }
 0x1bc   : > { %1249 = vmatprep.mubr.bf16.mxu0 %v6401_v34  ;;  %v1433_v3 = vunpack.c.l.s8.bf16 %v7041_v63 }
 0x1c3   : > { %1250 = vmatmul.mubr.bf16.gmra.mrb[20].mxu0 %v1068_v2  ;;  %v1432_v2 = vunpack.c.h.s8.bf16 %v7022_v9 }
 0x1c4   : > { %1259 = vmatprep.mubr.bf16.mxu0 %v6401_v34 }
 0x1cb   : > { %1260 = vmatmul.mubr.bf16.gmra.mrb[24].mxu0 %v1069_v5  ;;  %v1572_v5 = vld [vmem:[#allocation3 + $0x20] sm:$0xff] }
 0x1cc   : > { %1269 = vmatprep.mubr.bf16.mxu0 %v6401_v34  ;;  %v5390_v7 = vpack.c.bf16 %v1573_v6, %v1572_v5  ;;  %v7095_v5 = vld [vmem:[%s8146_s7 + $0x10] sm:$0xff] }
 0x1d3   : > { %1270 = vmatmul.mubr.bf16.gmra.mrb[28].mxu0 %v1070_v8  ;;  %v7045_v8 = vld [vmem:[#allocation11 + $0x10] sm:$0xff] }
 0x26e   : > { %v1201_v11 = vpop.f32.mrb[0].mxu0 }
 0x26f   : > { %v1203_v12 = vpop.f32.mrb[1].mxu0 }
 0x270   : > { %v1205_v13 = vpop.f32.mrb[2].mxu0 }
 0x271   : > { %v7025_v14 = vpack.c.bf16 %v1205_v13, %v1201_v11  ;;  %v1207_v15 = vpop.f32.mrb[3].mxu0  ;;  %v1575_v11 = vld [vmem:[#allocation3 + $0x38] sm:$0xff]  ;;  %v1435_v13 = vunpack.c.l.s8.bf16 %v7045_v8 }
 0x272   : > { %v1296_v16 = vpack.c.bf16 %v1207_v15, %v1203_v12  ;;  %v1434_v12 = vunpack.c.h.s8.bf16 %v7041_v63  ;;  %v5394_v15 = vpack.c.bf16 %v1575_v11, %v1574_v10  ;;  %v1398_v11 = vunpack.c.3.s8 %v7041_v63 }
 0x274   : > { %5014 = vmatprep.subr.bf16.mxu1 %v1296_v16 }
 0x275   : > { %5015 = vmatpush3.bf16.msra.mxu1 %v1296_v16  ;;  %v1576_v16 = vld [vmem:[#allocation3 + $0x40] sm:$0xff] }
 0x276   : > { %v1211_v17 = vpop.f32.mrb[4].mxu0 }
 0x277   : > { %v1213_v18 = vpop.f32.mrb[5].mxu0 }
 0x278   : > { %v1215_v19 = vpop.f32.mrb[6].mxu0 }
 0x279   : > { %v7027_v20 = vpack.c.bf16 %v1215_v19, %v1211_v17  ;;  %v1217_v21 = vpop.f32.mrb[7].mxu0  ;;  %v1577_v17 = vld [vmem:[#allocation3 + $0x48] sm:$0xff]  ;;  %v7049_v19 = vld [vmem:[#allocation11 + $0x18] sm:$0xff] }
 0x27a   : > { %v1297_v22 = vpack.c.bf16 %v1217_v21, %v1213_v18  ;;  %v5398_v18 = vpack.c.bf16 %v1577_v17, %v1576_v16  ;;  %v7054_v21 = vld [vmem:[%s8146_s7] sm:$0xff]  ;;  %v1361_v17 = vunpack.c.0.s8 %v7095_v5 }
 0x27c   : > { %5016 = vmatprep.subr.bf16.mxu1 %v1297_v22 }
 0x27d   : > { %5017 = vmatpush3.bf16.msra.mxu1 %v1297_v22  ;;  %v1578_v22 = vld [vmem:[#allocation3 + $0x50] sm:$0xff] }
 0x27e   : > { %v1221_v23 = vpop.f32.mrb[8].mxu0 }
 0x27f   : > { %v1223_v24 = vpop.f32.mrb[9].mxu0 }
 0x280   : > { %v1225_v25 = vpop.f32.mrb[10].mxu0 }
 0x281   : > { %v7029_v26 = vpack.c.bf16 %v1225_v25, %v1221_v23  ;;  %v1227_v27 = vpop.f32.mrb[11].mxu0  ;;  %v1579_v23 = vld [vmem:[#allocation3 + $0x58] sm:$0xff]  ;;  %v1437_v25 = vunpack.c.l.s8.bf16 %v7049_v19 }
 0x282   : > { %v1298_v28 = vpack.c.bf16 %v1227_v27, %v1223_v24  ;;  %v1436_v24 = vunpack.c.h.s8.bf16 %v7045_v8  ;;  %v1353_v27 = vunpack.c.0.s8 %v7054_v21 }
 0x284   : > { %5018 = vmatprep.subr.bf16.mxu1 %v1298_v28 }
 0x285   : > { %5019 = vmatpush3.bf16.msra.mxu1 %v1298_v28  ;;  %v1391_v28 = vunpack.c.0.s8 %v7022_v9 }
 0x286   : > { %v1231_v29 = vpop.f32.mrb[12].mxu0 }
 0x287   : > { %v1233_v30 = vpop.f32.mrb[13].mxu0 }
 0x288   : > { %v1235_v31 = vpop.f32.mrb[14].mxu0 }
 0x289   : > { %v7031_v32 = vpack.c.bf16 %v1235_v31, %v1231_v29  ;;  %v1237_v33 = vpop.f32.mrb[15].mxu0  ;;  %v5402_v29 = vpack.c.bf16 %v1579_v23, %v1578_v22  ;;  %v1581_v31 = vld [vmem:[#allocation3 + $0x68] sm:$0xff]  ;;  %v1414_v23 = vcvt.s32.f32 %v1398_v11  ;;  %v1423_v11 = vunpack.c.l.s8.bf16 %v7054_v21 }
 0x28a   : > { %v1299_v35 = vpack.c.bf16 %v1237_v33, %v1233_v30  ;;  %v1580_v30 = vld [vmem:[#allocation3 + $0x60] sm:$0xff]  ;;  %v7060_v33 = vcvt.s32.f32 %v1353_v27  ;;  %v1401_v27 = vunpack.c.2.s8 %v7045_v8 }
 0x28c   : > { %5020 = vmatprep.subr.bf16.mxu1 %v1299_v35 }
 0x28d   : > { %5021 = vmatpush3.bf16.msra.mxu1 %v1299_v35  ;;  %v1407_v35 = vcvt.s32.f32 %v1391_v28 }
 0x28e   : > { %v1241_v36 = vpop.f32.mrb[16].mxu0 }
 0x28f   : > { %v1243_v37 = vpop.f32.mrb[17].mxu0 }
 0x290   : > { %v1245_v38 = vpop.f32.mrb[18].mxu0 }
 0x291   : > { %v7033_v39 = vpack.c.bf16 %v1245_v38, %v1241_v36  ;;  %v1247_v40 = vpop.f32.mrb[19].mxu0  ;;  %v5406_v36 = vpack.c.bf16 %v1581_v31, %v1580_v30  ;;  %v1583_v38 = vld [vmem:[#allocation3 + $0x78] sm:$0xff] }
 0x292   : > { %v1300_v41 = vpack.c.bf16 %v1247_v40, %v1243_v37  ;;  %v1582_v37 = vld [vmem:[#allocation3 + $0x70] sm:$0xff]  ;;  %v1354_v40 = vunpack.c.1.s8 %v7054_v21  ;;  %v7124_v31 = vld [vmem:[%s8146_s7 + $0x18] sm:$0xff] }
 0x294   : > { %5022 = vmatprep.subr.bf16.mxu1 %v1300_v41 }
 0x295   : > { %5023 = vmatpush3.bf16.msra.mxu1 %v1300_v41  ;;  %v1392_v41 = vunpack.c.1.s8 %v7022_v9 }
 0x296   : > { %v1251_v42 = vpop.f32.mrb[20].mxu0 }
 0x297   : > { %v1253_v43 = vpop.f32.mrb[21].mxu0 }
 0x298   : > { %v1255_v44 = vpop.f32.mrb[22].mxu0 }
 0x299   : > { %v7035_v45 = vpack.c.bf16 %v1255_v44, %v1251_v42  ;;  %v1257_v46 = vpop.f32.mrb[23].mxu0  ;;  %v1438_v42 = vunpack.c.h.s8.bf16 %v7049_v19  ;;  %v1355_v44 = vunpack.c.2.s8 %v7054_v21 }
 0x29a   : > { %v1301_v47 = vpack.c.bf16 %v1257_v46, %v1253_v43  ;;  %v1552_v43 = vsub.f32 %v7060_v33, %v1407_v35  ;;  %v1393_v46 = vunpack.c.2.s8 %v7022_v9 }
 0x29b   : > { %v7079_v56 = vcvt.s32.f32 %v1355_v44  ;;  %v1403_v44 = vunpack.c.0.s8 %v7049_v19 }
 0x29c   : > { %5024 = vmatprep.subr.bf16.mxu1 %v1301_v47  ;;  %v1409_v57 = vcvt.s32.f32 %v1393_v46 }
 0x29d   : > { %5025 = vmatpush3.bf16.msra.mxu1 %v1301_v47  ;;  %v7071_v47 = vld [vmem:[%s8146_s7 + $0x8] sm:$0xff] }
 0x29e   : > { %v1261_v48 = vpop.f32.mrb[24].mxu0  ;;  %v1360_v10 = vunpack.c.3.s8 %v7071_v47 }
 0x29f   : > { %v1263_v49 = vpop.f32.mrb[25].mxu0 }
 0x2a0   : > { %v1265_v50 = vpop.f32.mrb[26].mxu0 }
 0x2a1   : > { %v7037_v51 = vpack.c.bf16 %v1265_v50, %v1261_v48  ;;  %v1267_v52 = vpop.f32.mrb[27].mxu0  ;;  %v5410_v48 = vpack.c.bf16 %v1583_v38, %v1582_v37  ;;  %v1408_v50 = vcvt.s32.f32 %v1392_v41  ;;  %v1402_v37 = vunpack.c.3.s8 %v7045_v8 }
 0x2a2   : > { %v1302_v53 = vpack.c.bf16 %v1267_v52, %v1263_v49  ;;  %v7073_v49 = vcvt.s32.f32 %v1354_v40  ;;  %v1356_v52 = vunpack.c.3.s8 %v7054_v21  ;;  %v1417_v41 = vcvt.s32.f32 %v1401_v27 }
 0x2a4   : > { %5026 = vmatprep.subr.bf16.mxu1 %v1302_v53 }
 0x2a5   : > { %5027 = vmatpush3.bf16.msra.mxu1 %v1302_v53  ;;  %v1394_v53 = vunpack.c.3.s8 %v7022_v9 }
 0x2a6   : > { %v1271_v54 = vpop.f32.mrb[28].mxu0 }
 0x2a7   : > { %v1273_v55 = vpop.f32.mrb[29].mxu0  ;;  %v1410_v0 = vcvt.s32.f32 %v1394_v53 }
 0x2a8   : > { %v1275_v58 = vpop.f32.mrb[30].mxu0 }
 0x2a9   : > { %v7039_v59 = vpack.c.bf16 %v1275_v58, %v1271_v54  ;;  %v1277_v60 = vpop.f32.mrb[31].mxu0  ;;  %v1357_v54 = vunpack.c.0.s8 %v7071_v47  ;;  %v1553_v58 = vsub.f32 %v7073_v49, %v1408_v50 }
 0x2aa   : > { %v1303_v61 = vpack.c.bf16 %v1277_v60, %v1273_v55  ;;  %v1395_v55 = vunpack.c.0.s8 %v7041_v63  ;;  %v1358_v60 = vunpack.c.1.s8 %v7071_v47 }
 0x2ab   : > { %v7086_v9 = vcvt.s32.f32 %v1357_v54  ;;  %v1419_v54 = vcvt.s32.f32 %v1403_v44 }
 0x2ac   : > { %5028 = vmatprep.subr.bf16.mxu1 %v1303_v61  ;;  %v1411_v1 = vcvt.s32.f32 %v1395_v55  ;;  %v7097_v6 = vcvt.s32.f32 %v1358_v60  ;;  %v1367_v55 = vunpack.c.2.s8 %v7124_v31 }
 0x2ad   : > { %5029 = vmatpush3.bf16.msra.mxu1 %v1303_v61  ;;  %v1396_v61 = vunpack.c.1.s8 %v7041_v63 }
 0x2ae   : > { %5383 = vmatprep.subr.bf16.mxu1 %v5382_v62 }
 0x2b0   : > { %5031 = vmatmul.mubr.bf16.vlgmr.msra.gmra.mrb[0].mxu1 %v1432_v2  ;;  %v1554_v2 = vsub.f32 %v7079_v56, %v1409_v57  ;;  %v1405_v57 = vunpack.c.2.s8 %v7049_v19 }
 0x2b1   : > { %5385 = vmatpush3.bf16.msra.mxu1 %v5382_v62  ;;  %5034 = vmatprep.mubr.bf16.mxu1 %v1433_v3  ;;  %v7084_v62 = vcvt.s32.f32 %v1356_v52  ;;  %v1359_v3 = vunpack.c.2.s8 %v7071_v47  ;;  %v1366_v52 = vunpack.c.1.s8 %v7124_v31 }
 0x2b2   : > { %5387 = vmatprep.subr.bf16.mxu1 %v5386_v4 }
 0x2b3   : > { %v7151_v60 = vcvt.s32.f32 %v1366_v52 }
 0x2b5   : > { %5389 = vmatpush3.bf16.msra.mxu1 %v5386_v4  ;;  %v1397_v4 = vunpack.c.2.s8 %v7041_v63  ;;  %v7110_v63 = vcvt.s32.f32 %v1360_v10 }
 0x2b6   : > { %5391 = vmatprep.subr.bf16.mxu1 %v5390_v7 }
 0x2b7   : > { %v1413_v16 = vcvt.s32.f32 %v1397_v4  ;;  %v1559_v35 = vsub.f32 %v7110_v63, %v1414_v23  ;;  %v5643_v23 = vld [vmem:[%s6933_s24 + $0x10] sm:$0xff]  }
 0x2b8   : > { %5035 = vmatmul.mubr.bf16.gmra.mrb[4].mxu1 %v1434_v12  ;;  %v1555_v12 = vsub.f32 %v7084_v62, %v1410_v0  ;;  %v1368_v0 = vunpack.c.3.s8 %v7124_v31 }
 0x2b9   : > { %5393 = vmatpush3.bf16.msra.mxu1 %v5390_v7  ;;  %5038 = vmatprep.mubr.bf16.mxu1 %v1435_v13  ;;  %v1412_v7 = vcvt.s32.f32 %v1396_v61  ;;  %v1556_v13 = vsub.f32 %v7086_v9, %v1411_v1 }
 0x2ba   : > { %5395 = vmatprep.subr.bf16.mxu1 %v5394_v15 }
 0x2bb   : > { %v1557_v22 = vsub.f32 %v7097_v6, %v1412_v7  ;;  %v7161_v7 = vcvt.s32.f32 %v1368_v0 }
 0x2bd   : > { %5397 = vmatpush3.bf16.msra.mxu1 %v5394_v15  ;;  %v7104_v15 = vcvt.s32.f32 %v1359_v3  ;;  %v1421_v3 = vcvt.s32.f32 %v1405_v57 }
 0x2be   : > { %5399 = vmatprep.subr.bf16.mxu1 %v5398_v18 }
 0x2bf   : > { %v1558_v28 = vsub.f32 %v7104_v15, %v1413_v16  ;;  %v1429_v16 = vunpack.c.l.s8.bf16 %v7124_v31 }
 0x2c0   : > { %5039 = vmatmul.mubr.bf16.gmra.mrb[8].mxu1 %v1436_v24  ;;  %v1362_v24 = vunpack.c.1.s8 %v7095_v5 }
 0x2c1   : > { %5401 = vmatpush3.bf16.msra.mxu1 %v5398_v18  ;;  %5042 = vmatprep.mubr.bf16.mxu1 %v1437_v25  ;;  %v1399_v18 = vunpack.c.0.s8 %v7045_v8  ;;  %v1363_v25 = vunpack.c.2.s8 %v7095_v5 }
 0x2c2   : > { %5403 = vmatprep.subr.bf16.mxu1 %v5402_v29 }
 0x2c3   : > { %v1415_v30 = vcvt.s32.f32 %v1399_v18  ;;  %v7131_v40 = vcvt.s32.f32 %v1363_v25  ;;  %v5641_v18 = vld [vmem:[%s6933_s24] sm:$0xff]  }
 0x2c4   : > { %5134 = vmatprep.subr.bf16.mxu0 %v5641_v18 }
 0x2c5   : > { %5405 = vmatpush3.bf16.msra.mxu1 %v5402_v29  ;;  %v7118_v29 = vcvt.s32.f32 %v1361_v17  ;;  %v1562_v50 = vsub.f32 %v7131_v40, %v1417_v41  ;;  %v1430_v17 = vunpack.c.h.s8.bf16 %v7124_v31  ;;  %5135 = vmatpush3.bf16.msra.mxu0 %v5641_v18 }
 0x2c6   : > { %5407 = vmatprep.subr.bf16.mxu1 %v5406_v36 }
 0x2c8   : > { %5043 = vmatmul.mubr.bf16.gmra.mrb[12].mxu1 %v1438_v42  ;;  %v1560_v42 = vsub.f32 %v7118_v29, %v1415_v30 }
 0x2c9   : > { %5409 = vmatpush3.bf16.msra.mxu1 %v5406_v36  ;;  %5078 = vmatprep.mubr.f32.mxu1 %v1552_v43  ;;  %v1364_v36 = vunpack.c.3.s8 %v7095_v5  ;;  %v1365_v43 = vunpack.c.0.s8 %v7124_v31 }
 0x2ca   : > { %5411 = vmatprep.subr.bf16.mxu1 %v5410_v48 }
 0x2cb   : > { %v7138_v46 = vcvt.s32.f32 %v1364_v36  ;;  %v7145_v53 = vcvt.s32.f32 %v1365_v43 }
 0x2cd   : > { %5413 = vmatpush3.bf16.msra.mxu1 %v5410_v48  ;;  %v1564_v1 = vsub.f32 %v7145_v53, %v1419_v54 }
 0x2ce   : > { %5102 = vmatprep.subr.bf16.mxu1 %v7025_v14 }
 0x2d0   : > { %5079 = vmatmul.mubr.f32.vlgmr.msra.gmra.mrb[16].mxu1 %v1553_v58 }
 0x2d1   : > { %5103 = vmatpush3.bf16.msra.mxu1 %v7025_v14  ;;  %5081 = vmatprep.mubr.f32.mxu1 %v1554_v2  ;;  %v1400_v14 = vunpack.c.1.s8 %v7045_v8  ;;  %v1418_v8 = vcvt.s32.f32 %v1402_v37  ;;  %v7157_v2 = vcvt.s32.f32 %v1367_v55 }
 0x2d2   : > { %5104 = vmatprep.subr.bf16.mxu1 %v7027_v20 }
 0x2d3   : > { %v1416_v38 = vcvt.s32.f32 %v1400_v14  ;;  %v1563_v58 = vsub.f32 %v7138_v46, %v1418_v8 }
 0x2d4   : > { %5082 = vmatmul.mubr.f32.gmra.mrb[18].mxu1 %v1555_v12  ;;  %v1424_v12 = vunpack.c.h.s8.bf16 %v7054_v21 }
 0x2d5   : > { %5105 = vmatpush3.bf16.msra.mxu1 %v7027_v20  ;;  %5084 = vmatprep.mubr.f32.mxu1 %v1556_v13  ;;  %v7129_v20 = vcvt.s32.f32 %v1362_v24  ;;  %v1427_v13 = vunpack.c.l.s8.bf16 %v7095_v5 }
 0x2d6   : > { %5106 = vmatprep.subr.bf16.mxu1 %v7029_v26 }
 0x2d7   : > { %v1561_v48 = vsub.f32 %v7129_v20, %v1416_v38 }
 0x2d8   : > { %5085 = vmatmul.mubr.f32.gmra.mrb[20].mxu1 %v1557_v22  ;;  %v5642_v22 = vld [vmem:[%s6933_s24 + $0x8] sm:$0xff]  }
 0x2d9   : > { %5107 = vmatpush3.bf16.msra.mxu1 %v7029_v26  ;;  %5087 = vmatprep.mubr.f32.mxu1 %v1558_v28  ;;  %v1404_v26 = vunpack.c.1.s8 %v7049_v19 }
 0x2da   : > { %5108 = vmatprep.subr.bf16.mxu1 %v7031_v32  ;;  %5136 = vmatprep.subr.bf16.mxu0 %v5642_v22 }
 0x2db   : > { %v1420_v61 = vcvt.s32.f32 %v1404_v26  ;;  %5137 = vmatpush3.bf16.msra.mxu0 %v5642_v22 }
 0x2dc   : > { %5088 = vmatmul.mubr.f32.gmra.mrb[22].mxu1 %v1559_v35  ;;  %5138 = vmatprep.subr.bf16.mxu0 %v5643_v23 }
 0x2dd   : > { %5109 = vmatpush3.bf16.msra.mxu1 %v7031_v32  ;;  %5090 = vmatprep.mubr.f32.mxu1 %v1560_v42  ;;  %v1406_v32 = vunpack.c.3.s8 %v7049_v19  ;;  %v1565_v4 = vsub.f32 %v7151_v60, %v1420_v61  ;;  %v1566_v19 = vsub.f32 %v7157_v2, %v1421_v3 }
 0x2de   : > { %5110 = vmatprep.subr.bf16.mxu1 %v7033_v39 }
 0x2df   : > { %v1422_v10 = vcvt.s32.f32 %v1406_v32  ;;  %5139 = vmatpush3.bf16.msra.mxu0 %v5643_v23 }
 0x2e0   : > { %5091 = vmatmul.mubr.f32.gmra.mrb[24].mxu1 %v1561_v48 }
 0x2e1   : > { %5111 = vmatpush3.bf16.msra.mxu1 %v7033_v39  ;;  %5093 = vmatprep.mubr.f32.mxu1 %v1562_v50  ;;  %v1567_v39 = vsub.f32 %v7161_v7, %v1422_v10 }
 0x2e2   : > { %5112 = vmatprep.subr.bf16.mxu1 %v7035_v45 }
 0x2e4   : > { %5094 = vmatmul.mubr.f32.gmra.mrb[26].mxu1 %v1563_v58 }
 0x2e5   : > { %5113 = vmatpush3.bf16.msra.mxu1 %v7035_v45  ;;  %5096 = vmatprep.mubr.f32.mxu1 %v1564_v1  ;;  %v1425_v45 = vunpack.c.l.s8.bf16 %v7071_v47 }
 0x2e6   : > { %5114 = vmatprep.subr.bf16.mxu1 %v7037_v51 }
 0x2e8   : > { %5097 = vmatmul.mubr.f32.gmra.mrb[28].mxu1 %v1565_v4 }
 0x2e9   : > { %5115 = vmatpush3.bf16.msra.mxu1 %v7037_v51  ;;  %5099 = vmatprep.mubr.f32.mxu1 %v1566_v19  ;;  %v1426_v51 = vunpack.c.h.s8.bf16 %v7071_v47 }
 0x2ea   : > { %5116 = vmatprep.subr.bf16.mxu1 %v7039_v59 }
 0x2ec   : > { %5100 = vmatmul.mubr.f32.gmra.mrb[30].mxu1 %v1567_v39 }
 0x2ed   : > { %5117 = vmatpush3.bf16.msra.mxu1 %v7039_v59  ;;  %5118 = vmatprep.mubr.bf16.mxu1 %v1423_v11  ;;  %v1428_v59 = vunpack.c.h.s8.bf16 %v7095_v5 }
 0x2f0   : > { %5119 = vmatmul.mubr.bf16.vlgmr.msra.gmra.mrb[0].mxu1 %v1424_v12 }
 0x2f1   : > { %5122 = vmatprep.mubr.bf16.mxu1 %v1425_v45 }
 0x2f8   : > { %5123 = vmatmul.mubr.bf16.gmra.mrb[4].mxu1 %v1426_v51 }
 0x2f9   : > { %5126 = vmatprep.mubr.bf16.mxu1 %v1427_v13 }
 0x300   : > { %5127 = vmatmul.mubr.bf16.gmra.mrb[8].mxu1 %v1428_v59 }
 0x301   : > { %5130 = vmatprep.mubr.bf16.mxu1 %v1429_v16 }
 0x308   : > { %5131 = vmatmul.mubr.bf16.gmra.mrb[12].mxu1 %v1430_v17 }
 0x3a3   : > { %v7197_v24 = vpop.f32.mrb[16].mxu1 }
 0x3a4   : > { %v7199_v14 = vpop.f32.mrb[17].mxu1  ;;  %v1730_v35 = vmul.f32 %v7197_v24, %v7197_v24 }
 0x3a5   : > { %v1729_v25 = vmul.f32 %v7199_v14, %v7199_v14 }
 0x3a7   : > { %1745 = vadd.xlane.f32.xlu0 %v1729_v25  ;;  %v7203_v27 = vpop.f32.mrb[18].mxu1 }
 0x3a8   : > { %v7205_v28 = vpop.f32.mrb[19].mxu1  ;;  %v1732_v30 = vmul.f32 %v7203_v27, %v7203_v27 }
 0x3a9   : > { %v1731_v38 = vmul.f32 %v7205_v28, %v7205_v28 }
 0x3aa   : > { %1751 = vadd.xlane.f32.xlu1 %v1732_v30  ;;  %v5644_v30 = vld [vmem:[%s6933_s24 + $0x18] sm:$0xff]  }
 0x3ab   : > { %1747 = vadd.xlane.f32.xlu0 %v1730_v35  ;;  %v7211_v36 = vpop.f32.mrb[20].mxu1  ;;  %5140 = vmatprep.subr.bf16.mxu0 %v5644_v30 }
 0x3ac   : > { %v7213_v37 = vpop.f32.mrb[21].mxu1  ;;  %v1734_v42 = vmul.f32 %v7211_v36, %v7211_v36  ;;  %5141 = vmatpush3.bf16.msra.mxu0 %v5644_v30 }
 0x3ad   : > { %v1733_v41 = vmul.f32 %v7213_v37, %v7213_v37 }
 0x3ae   : > { %1749 = vadd.xlane.f32.xlu1 %v1731_v38 }
 0x3af   : > { %1753 = vadd.xlane.f32.xlu0 %v1733_v41  ;;  %v7221_v43 = vpop.f32.mrb[22].mxu1 }
 0x3b0   : > { %v7223_v44 = vpop.f32.mrb[23].mxu1  ;;  %v1736_v48 = vmul.f32 %v7221_v43, %v7221_v43 }
 0x3b1   : > { %v1735_v8 = vmul.f32 %v7223_v44, %v7223_v44 }
 0x3b2   : > { %1755 = vadd.xlane.f32.xlu1 %v1734_v42 }
 0x3b3   : > { %1757 = vadd.xlane.f32.xlu0 %v1735_v8  ;;  %v7229_v50 = vpop.f32.mrb[24].mxu1  ;;  %v5645_v8 = vld [vmem:[%s6933_s24 + $0x20] sm:$0xff]  }
 0x3b4   : > { %v7231_v52 = vpop.f32.mrb[25].mxu1  ;;  %v1738_v54 = vmul.f32 %v7229_v50, %v7229_v50  ;;  %5142 = vmatprep.subr.bf16.mxu0 %v5645_v8 }
 0x3b5   : > { %v1737_v26 = vmul.f32 %v7231_v52, %v7231_v52  ;;  %5143 = vmatpush3.bf16.msra.mxu0 %v5645_v8 }
 0x3b6   : > { %1759 = vadd.xlane.f32.xlu1 %v1736_v48 }
 0x3b7   : > { %1761 = vadd.xlane.f32.xlu0 %v1737_v26  ;;  %v7237_v55 = vpop.f32.mrb[26].mxu1 }
 0x3b8   : > { %v7239_v57 = vpop.f32.mrb[27].mxu1  ;;  %v1740_v61 = vmul.f32 %v7237_v55, %v7237_v55 }
 0x3b9   : > { %v1739_v58 = vmul.f32 %v7239_v57, %v7239_v57 }
 0x3ba   : > { %1763 = vadd.xlane.f32.xlu1 %v1738_v54  ;;  %v5646_v54 = vld [vmem:[%s6933_s24 + $0x28] sm:$0xff]  }
 0x3bb   : > { %1765 = vadd.xlane.f32.xlu0 %v1739_v58  ;;  %v7245_v0 = vpop.f32.mrb[28].mxu1  ;;  %5144 = vmatprep.subr.bf16.mxu0 %v5646_v54 }
 0x3bc   : > { %8147 = vst [vmem:[#allocation36_spill] sm:$0xff] %v7245_v0  ;;  %v7247_v32 = vpop.f32.mrb[29].mxu1  ;;  %v1742_v3 = vmul.f32 %v7245_v0, %v7245_v0  ;;  %5145 = vmatpush3.bf16.msra.mxu0 %v5646_v54 }
 0x3bd   : > { %8148 = vst [vmem:[#allocation37_spill] sm:$0xff] %v7247_v32  ;;  %v1741_v1 = vmul.f32 %v7247_v32, %v7247_v32 }
 0x3be   : > { %1767 = vadd.xlane.f32.xlu1 %v1740_v61 }
 0x3bf   : > { %1769 = vadd.xlane.f32.xlu0 %v1741_v1  ;;  %v7253_v4 = vpop.f32.mrb[30].mxu1  ;;  %v5647_v1 = vld [vmem:[%s6933_s24 + $0x30] sm:$0xff]  }
 0x3c0   : > { %v7255_v10 = vpop.f32.mrb[31].mxu1  ;;  %v1744_v39 = vmul.f32 %v7253_v4, %v7253_v4  ;;  %5146 = vmatprep.subr.bf16.mxu0 %v5647_v1 }
 0x3c1   : > { %v1743_v19 = vmul.f32 %v7255_v10, %v7255_v10  ;;  %5147 = vmatpush3.bf16.msra.mxu0 %v5647_v1 }
 0x3c2   : > { %1771 = vadd.xlane.f32.xlu1 %v1742_v3 }
 0x3c3   : > { %v7261_v18 = vpop.f32.mrb[0].mxu1  ;;  %1773 = vadd.xlane.f32.xlu0 %v1743_v19 }
 0x3c4   : > { %v1811_v22 = vpop.f32.mrb[1].mxu1 }
 0x3c5   : > { %v5121_v23 = vpop.f32.mrb[2].mxu1 }
 0x3c6   : > { %1775 = vadd.xlane.f32.xlu1 %v1744_v39  ;;  %v1814_v25 = vpop.f32.mrb[3].mxu1  ;;  %v5648_v39 = vld [vmem:[%s6933_s24 + $0x38] sm:$0xff]   ;;  %s8149_s24 = scalar_lea.vmem [#allocation14], %s6898_s8 }
 0x3c7   : > { %5148 = vmatprep.subr.bf16.mxu0 %v5648_v39  ;;  %v7309_v21 = vld [vmem:[%s8149_s24] ss:$0 sm:$0xff] }
 0x3c8   : > { %5149 = vmatpush3.bf16.msra.mxu0 %v5648_v39 }
 0x3cb   : > { %v7264_v35 = vpop.f32.mrb[4].mxu1 }
 0x3cc   : > { %v1827_v38 = vpop.f32.mrb[5].mxu1 }
 0x3cd   : > { %v7266_v41 = vpop.f32.mrb[6].mxu1 }
 0x3ce   : > { %v7268_v42 = vpop.f32.mrb[7].mxu1 }
 0x3d3   : > { %v7271_v48 = vpop.f32.mrb[8].mxu1 }
 0x3d4   : > { %v7273_v26 = vpop.f32.mrb[9].mxu1 }
 0x3d5   : > { %v7276_v58 = vpop.f32.mrb[10].mxu1 }
 0x3d6   : > { %v7278_v61 = vpop.f32.mrb[11].mxu1 }
 0x3db   : > { %v7281_v3 = vpop.f32.mrb[12].mxu1 }
 0x3dc   : > { %v7283_v19 = vpop.f32.mrb[13].mxu1 }
 0x3dd   : > { %v7286_v30 = vpop.f32.mrb[14].mxu1 }
 0x3de   : > { %v7288_v8 = vpop.f32.mrb[15].mxu1 }
 0x3f0   : > { %2905 = vxpose.xlu0.c.b16.start [1/8] %v1423_v11, 128 }
 0x3f4   : > { %2906 = vxpose.xlu0.c.b16.cont [2/8] %v1424_v12, 128  ;;  %v7314_v12 = vld [vmem:[%s8150_s15] ss:$0 sm:$0xff] }
 0x3f8   : > { %2907 = vxpose.xlu0.c.b16.cont [3/8] %v1425_v45, 128 }
 0x3fc   : > { %2908 = vxpose.xlu0.c.b16.cont [4/8] %v1426_v51, 128 }
 0x400   : > { %2909 = vxpose.xlu0.c.b16.cont [5/8] %v1427_v13, 128 }
 0x404   : > { %2910 = vxpose.xlu0.c.b16.cont [6/8] %v1428_v59, 128 }
 0x408   : > { %2911 = vxpose.xlu0.c.b16.cont [7/8] %v1429_v16, 128 }
 0x40c   : > { %2912 = vxpose.xlu0.c.b16.end [8/8] %v1430_v17, 128 }
 0x415   : > { %5616 = vset.pattern.permute.xlu0 %v6401_v34 }
 0x434   : > { %v1746_v11 = vpop.xlane.xlu0 %1745 }
 0x435   : > { %v1881_v47 = vmul.f32 %v7309_v21, %v1746_v11 }
 0x437   : > { %v1897_v45 = vadd.f32 %v1881_v47, %v1811_v22  ;;  %v1752_v5 = vpop.xlane.xlu1 %1751 }
 0x438   : > { %v1884_v51 = vmul.f32 %v7309_v21, %v1752_v5  ;;  %v1748_v13 = vpop.xlane.xlu0 %1747 }
 0x439   : > { %v7318_v59 = vadd.f32 %v7314_v12, %v1897_v45  ;;  %v1882_v31 = vmul.f32 %v7309_v21, %v1748_v13 }
 0x43a   : > { %v1900_v34 = vadd.f32 %v5121_v23, %v1884_v51 }
 0x43b   : > { %v4620_v16 = vmul.f32 -1.442695, %v7318_v59  ;;  %v1898_v17 = vadd.f32 %v1882_v31, %v1814_v25  ;;  %v1750_v54 = vpop.xlane.xlu1 %1749 }
 0x43c   : > { %v7323_v1 = vadd.f32 %v7314_v12, %v1900_v34  ;;  %v1883_v39 = vmul.f32 %v7309_v21, %v1750_v54  ;;  %v1754_v22 = vpop.xlane.xlu0 %1753 }
 0x43d   : > { %5689 = vpow2.f32 %v4620_v16  ;;  %v7327_v11 = vadd.f32 %v7314_v12, %v1898_v17  ;;  %v1885_v47 = vmul.f32 %v7309_v21, %v1754_v22 }
 0x43e   : > { %v4623_v45 = vmul.f32 -1.442695, %v7323_v1  ;;  %v1899_v23 = vadd.f32 %v7261_v18, %v1883_v39 }
 0x43f   : > { %v4621_v5 = vmul.f32 -1.442695, %v7327_v11  ;;  %v1901_v25 = vadd.f32 %v1885_v47, %v1827_v38  ;;  %v1756_v51 = vpop.xlane.xlu1 %1755 }
 0x440   : > { %5691 = vpow2.f32 %v4623_v45  ;;  %v7334_v13 = vadd.f32 %v7314_v12, %v1899_v23  ;;  %v1886_v31 = vmul.f32 %v7309_v21, %v1756_v51  ;;  %v1758_v34 = vpop.xlane.xlu0 %1757 }
 0x441   : > { %5693 = vpow2.f32 %v4621_v5  ;;  %v7338_v16 = vadd.f32 %v7314_v12, %v1901_v25  ;;  %v1887_v17 = vmul.f32 %v7309_v21, %v1758_v34 }
 0x442   : > { %v4622_v54 = vmul.f32 -1.442695, %v7334_v13  ;;  %v1902_v18 = vadd.f32 %v1886_v31, %v7268_v42 }
 0x443   : > { %v4624_v38 = vmul.f32 -1.442695, %v7338_v16  ;;  %v1903_v39 = vadd.f32 %v7264_v35, %v1887_v17  ;;  %v1760_v22 = vpop.xlane.xlu1 %1759 }
 0x444   : > { %5695 = vpow2.f32 %v4622_v54  ;;  %v7346_v47 = vadd.f32 %v7314_v12, %v1902_v18  ;;  %v1888_v45 = vmul.f32 %v7309_v21, %v1760_v22  ;;  %v1762_v23 = vpop.xlane.xlu0 %1761 }
 0x445   : > { %5697 = vpow2.f32 %v4624_v38  ;;  %v7350_v5 = vadd.f32 %v7314_v12, %v1903_v39  ;;  %v1889_v25 = vmul.f32 %v7309_v21, %v1762_v23 }
 0x446   : > { %v4625_v42 = vmul.f32 -1.442695, %v7346_v47  ;;  %v1904_v51 = vadd.f32 %v7266_v41, %v1888_v45 }
 0x447   : > { %v5690_v31 = vpop.eup %5689  ;;  %v4626_v35 = vmul.f32 -1.442695, %v7350_v5  ;;  %v1905_v34 = vadd.f32 %v1889_v25, %v7273_v26  ;;  %v1764_v17 = vpop.xlane.xlu1 %1763 }
 0x448   : > { %v1984_v54 = vadd.f32 1.0, %v5690_v31  ;;  %5699 = vpow2.f32 %v4625_v42  ;;  %v7358_v18 = vadd.f32 %v7314_v12, %v1904_v51  ;;  %v1890_v38 = vmul.f32 %v7309_v21, %v1764_v17  ;;  %v1766_v39 = vpop.xlane.xlu0 %1765 }
 0x449   : > { %5701 = vpow2.f32 %v4626_v35  ;;  %v7362_v22 = vadd.f32 %v7314_v12, %v1905_v34  ;;  %v1891_v41 = vmul.f32 %v7309_v21, %v1766_v39 }
 0x44a   : > { %v5692_v45 = vpop.eup %5691  ;;  %v4627_v23 = vmul.f32 -1.442695, %v7358_v18  ;;  %v1906_v26 = vadd.f32 %v1890_v38, %v7278_v61  ;;  %5703 = vrcp.f32 %v1984_v54 }
 0x44b   : > { %v5694_v25 = vpop.eup %5693  ;;  %v1987_v42 = vadd.f32 1.0, %v5692_v45  ;;  %v4628_v51 = vmul.f32 -1.442695, %v7362_v22  ;;  %v1907_v31 = vadd.f32 %v7271_v48, %v1891_v41  ;;  %v1768_v17 = vpop.xlane.xlu1 %1767 }
 0x44c   : > { %v1985_v0 = vadd.f32 1.0, %v5694_v25  ;;  %5705 = vpow2.f32 %v4627_v23  ;;  %v7370_v35 = vadd.f32 %v7314_v12, %v1906_v26  ;;  %v1892_v34 = vmul.f32 %v7309_v21, %v1768_v17  ;;  %v1770_v39 = vpop.xlane.xlu0 %1769 }
 0x44d   : > { %5707 = vrcp.f32 %v1987_v42  ;;  %v7374_v32 = vadd.f32 %v7314_v12, %v1907_v31  ;;  %v1893_v61 = vmul.f32 %v7309_v21, %v1770_v39 }
 0x44e   : > { %v5696_v54 = vpop.eup %5695  ;;  %5709 = vrcp.f32 %v1985_v0  ;;  %v4629_v38 = vmul.f32 -1.442695, %v7370_v35  ;;  %v1908_v48 = vadd.f32 %v7276_v58, %v1892_v34 }
 0x44f   : > { %v5698_v41 = vpop.eup %5697  ;;  %v1986_v45 = vadd.f32 1.0, %v5696_v54  ;;  %5711 = vpow2.f32 %v4628_v51  ;;  %v4630_v23 = vmul.f32 -1.442695, %v7374_v32  ;;  %v1909_v26 = vadd.f32 %v1893_v61, %v7283_v19  ;;  %v1772_v25 = vpop.xlane.xlu1 %1771 }
 0x450   : > { %v1988_v42 = vadd.f32 1.0, %v5698_v41  ;;  %5713 = vpow2.f32 %v4629_v38  ;;  %v7382_v31 = vadd.f32 %v7314_v12, %v1908_v48  ;;  %v1894_v17 = vmul.f32 %v7309_v21, %v1772_v25  ;;  %v1774_v0 = vpop.xlane.xlu0 %1773 }
 0x451   : > { %5715 = vrcp.f32 %v1986_v45  ;;  %v7386_v39 = vadd.f32 %v7314_v12, %v1909_v26  ;;  %v1895_v58 = vmul.f32 %v7309_v21, %v1774_v0 }
 0x452   : > { %v5700_v51 = vpop.eup %5699  ;;  %5717 = vrcp.f32 %v1988_v42  ;;  %v4631_v34 = vmul.f32 -1.442695, %v7382_v31  ;;  %v1910_v19 = vadd.f32 %v1894_v17, %v7288_v8 }
 0x453   : > { %v5702_v61 = vpop.eup %5701  ;;  %v1989_v54 = vadd.f32 1.0, %v5700_v51  ;;  %5719 = vpow2.f32 %v4630_v23  ;;  %v4632_v38 = vmul.f32 -1.442695, %v7386_v39  ;;  %v1911_v48 = vadd.f32 %v7281_v3, %v1895_v58  ;;  %v1776_v41 = vpop.xlane.xlu1 %1775 }
 0x454   : > { %v1990_v45 = vadd.f32 1.0, %v5702_v61  ;;  %5721 = vpow2.f32 %v4631_v34  ;;  %v7394_v26 = vadd.f32 %v7314_v12, %v1910_v19  ;;  %v1896_v25 = vmul.f32 %v7309_v21, %v1776_v41  ;;  %v5704_v42 = vpop.eup %5703 }
 0x455   : > { %5723 = vrcp.f32 %v1989_v54  ;;  %v7398_v0 = vadd.f32 %v7314_v12, %v1911_v48  ;;  %v2032_v61 = vmul.f32 %v5704_v42, %v7318_v59 }
 0x456   : > { %v5706_v8 = vpop.eup %5705  ;;  %5725 = vrcp.f32 %v1990_v45  ;;  %v4633_v23 = vmul.f32 -1.442695, %v7394_v26  ;;  %v1912_v17 = vadd.f32 %v7286_v30, %v1896_v25 }
 0x457   : > { %v5708_v3 = vpop.eup %5707  ;;  %v1991_v58 = vadd.f32 1.0, %v5706_v8  ;;  %5727 = vpow2.f32 %v4632_v38  ;;  %v4634_v51 = vmul.f32 -1.442695, %v7398_v0 }
 0x458   : > { %v5710_v34 = vpop.eup %5709  ;;  %5729 = vpow2.f32 %v4633_v23  ;;  %v7404_v21 = vadd.f32 %v7314_v12, %v1912_v17  ;;  %v2035_v23 = vmul.f32 %v5708_v3, %v7323_v1 }
 0x459   : > { %v5712_v19 = vpop.eup %5711  ;;  %5731 = vrcp.f32 %v1991_v58  ;;  %v2033_v54 = vmul.f32 %v5710_v34, %v7327_v11 }
 0x45a   : > { %v5714_v48 = vpop.eup %5713  ;;  %v1992_v41 = vadd.f32 1.0, %v5712_v19  ;;  %5733 = vpow2.f32 %v4634_v51  ;;  %v4635_v30 = vmul.f32 -1.442695, %v7404_v21 }
 0x45b   : > { %v5716_v45 = vpop.eup %5715  ;;  %v1993_v38 = vadd.f32 1.0, %v5714_v48  ;;  %v2048_v25 = vpack.c.bf16 %v2033_v54, %v2032_v61 }
 0x45c   : > { %v5718_v8 = vpop.eup %5717  ;;  %v2034_v12 = vmul.f32 %v5716_v45, %v7334_v13  ;;  %5735 = vrcp.f32 %v1992_v41 }
 0x45d   : > { %v5720_v17 = vpop.eup %5719  ;;  %5737 = vrcp.f32 %v1993_v38  ;;  %5150 = vmatprep.mubr.bf16.mxu0 %v2048_v25  ;;  %v2036_v19 = vmul.f32 %v5718_v8, %v7338_v16 }
 0x45e   : > { %v5722_v59 = vpop.eup %5721  ;;  %v2049_v42 = vpack.c.bf16 %v2035_v23, %v2034_v12  ;;  %v1994_v11 = vadd.f32 1.0, %v5720_v17  ;;  %5739 = vpow2.f32 %v4635_v30 }
 0x45f   : > { %v5724_v58 = vpop.eup %5723  ;;  %v1995_v51 = vadd.f32 1.0, %v5722_v59 }
 0x460   : > { %v5726_v34 = vpop.eup %5725  ;;  %5741 = vrcp.f32 %v1994_v11  ;;  %5151 = vmatmul.mubr.bf16.vlgmr.msra.gmra.mrb[32].mxu0 %v2049_v42  ;;  %v2037_v61 = vmul.f32 %v5724_v58, %v7346_v47 }
 0x461   : > { %v5728_v1 = vpop.eup %5727  ;;  %5743 = vrcp.f32 %v1995_v51  ;;  %v2038_v30 = vmul.f32 %v5726_v34, %v7350_v5 }
 0x462   : > { %v5730_v13 = vpop.eup %5729  ;;  %v1996_v3 = vadd.f32 1.0, %v5728_v1  ;;  %v2050_v54 = vpack.c.bf16 %v2037_v61, %v2036_v19 }
 0x463   : > { %v5732_v48 = vpop.eup %5731  ;;  %v1997_v41 = vadd.f32 1.0, %v5730_v13 }
 0x464   : > { %v5734_v45 = vpop.eup %5733  ;;  %5745 = vrcp.f32 %v1996_v3  ;;  %5154 = vmatprep.mubr.bf16.mxu0 %v2050_v54  ;;  %v2039_v38 = vmul.f32 %v5732_v48, %v7358_v18  ;;  %v5649_v54 = vld [vmem:[%s6911_s19] sm:$0xff]   ;;  %v5652_v48 = vld [vmem:[%s6911_s19 + $0x18] sm:$0xff]  }
 0x465   : > { %5747 = vrcp.f32 %v1997_v41  ;;  %v1998_v25 = vadd.f32 1.0, %v5734_v45  ;;  %5166 = vmatprep.subr.bf16.mxu0 %v5649_v54  ;;  %v5655_v41 = vld [vmem:[%s6911_s19 + $0x30] sm:$0xff]   ;;  %v5656_v45 = vld [vmem:[%s6911_s19 + $0x38] sm:$0xff]  }
 0x466   : > { %v5736_v23 = vpop.eup %5735  ;;  %v2051_v16 = vpack.c.bf16 %v2039_v38, %v2038_v30  ;;  %5167 = vmatpush3.bf16.msra.mxu0 %v5649_v54  ;;  %v7433_v30 = vld [vmem:[%s8151_s17] ss:$0 sm:$0xff] }
 0x467   : > { %v5738_v8 = vpop.eup %5737  ;;  %v2040_v12 = vmul.f32 %v5736_v23, %v7362_v22  ;;  %5749 = vrcp.f32 %v1998_v25 }
 0x468   : > { %v5740_v47 = vpop.eup %5739  ;;  %5155 = vmatmul.mubr.bf16.gmra.mrb[36].mxu0 %v2051_v16  ;;  %v2041_v17 = vmul.f32 %v5738_v8, %v7370_v35 }
 0x469   : > { %v1999_v59 = vadd.f32 1.0, %v5740_v47 }
 0x46a   : > { %v5742_v42 = vpop.eup %5741  ;;  %v2052_v11 = vpack.c.bf16 %v2041_v17, %v2040_v12 }
 0x46b   : > { %v5744_v58 = vpop.eup %5743  ;;  %5751 = vrcp.f32 %v1999_v59  ;;  %v2042_v5 = vmul.f32 %v5742_v42, %v7374_v32 }
 0x46c   : > { %5158 = vmatprep.mubr.bf16.mxu0 %v2052_v11  ;;  %v2043_v18 = vmul.f32 %v5744_v58, %v7382_v31 }
 0x46e   : > { %v5746_v51 = vpop.eup %5745  ;;  %v2053_v34 = vpack.c.bf16 %v2043_v18, %v2042_v5 }
 0x46f   : > { %v5748_v19 = vpop.eup %5747  ;;  %v2044_v22 = vmul.f32 %v5746_v51, %v7386_v39  ;;  %v5650_v39 = vld [vmem:[%s6911_s19 + $0x8] sm:$0xff]  }
 0x470   : > { %5159 = vmatmul.mubr.bf16.gmra.mrb[40].mxu0 %v2053_v34  ;;  %v2045_v35 = vmul.f32 %v5748_v19, %v7394_v26  ;;  %5168 = vmatprep.subr.bf16.mxu0 %v5650_v39  ;;  %v5651_v26 = vld [vmem:[%s6911_s19 + $0x10] sm:$0xff]  }
 0x471   : > { %v5750_v1 = vpop.eup %5749  ;;  %5169 = vmatpush3.bf16.msra.mxu0 %v5650_v39 }
 0x472   : > { %v2054_v61 = vpack.c.bf16 %v2045_v35, %v2044_v22  ;;  %v2046_v32 = vmul.f32 %v5750_v1, %v7398_v0  ;;  %5170 = vmatprep.subr.bf16.mxu0 %v5651_v26  ;;  %v5653_v0 = vld [vmem:[%s6911_s19 + $0x20] sm:$0xff]  }
 0x474   : > { %5162 = vmatprep.mubr.bf16.mxu0 %v2054_v61 }
 0x475   : > { %v5752_v13 = vpop.eup %5751  ;;  %5171 = vmatpush3.bf16.msra.mxu0 %v5651_v26 }
 0x476   : > { %v2047_v31 = vmul.f32 %v5752_v13, %v7404_v21  ;;  %5172 = vmatprep.subr.bf16.mxu0 %v5652_v48  ;;  %v5654_v21 = vld [vmem:[%s6911_s19 + $0x28] sm:$0xff]  }
 0x478   : > { %v2055_v3 = vpack.c.bf16 %v2047_v31, %v2046_v32 }
 0x479   : > { %5173 = vmatpush3.bf16.msra.mxu0 %v5652_v48 }
 0x47a   : > { %5163 = vmatmul.mubr.bf16.gmra.mrb[44].mxu0 %v2055_v3  ;;  %5174 = vmatprep.subr.bf16.mxu0 %v5653_v0 }
 0x47d   : > { %5175 = vmatpush3.bf16.msra.mxu0 %v5653_v0 }
 0x47e   : > { %5176 = vmatprep.subr.bf16.mxu0 %v5654_v21 }
 0x481   : > { %5177 = vmatpush3.bf16.msra.mxu0 %v5654_v21 }
 0x482   : > { %5178 = vmatprep.subr.bf16.mxu0 %v5655_v41 }
 0x485   : > { %5179 = vmatpush3.bf16.msra.mxu0 %v5655_v41 }
 0x486   : > { %5180 = vmatprep.subr.bf16.mxu0 %v5656_v45 }
 0x489   : > { %5181 = vmatpush3.bf16.msra.mxu0 %v5656_v45 }
 0x533   : > { %v5152_v38 = vpop.f32.mrb[32].mxu0 }
 0x534   : > { %v7436_v25 = vadd.f32 %v5152_v38, %v7433_v30  ;;  %v2161_v23 = vpop.f32.mrb[33].mxu0 }
 0x535   : > { %v7439_v16 = vadd.f32 %v7433_v30, %v2161_v23  ;;  %v5153_v8 = vpop.f32.mrb[34].mxu0 }
 0x536   : > { %v4647_v47 = vmul.f32 -1.442695, %v7436_v25  ;;  %v7443_v12 = vadd.f32 %v5153_v8, %v7433_v30  ;;  %v2164_v17 = vpop.f32.mrb[35].mxu0 }
 0x537   : > { %v4645_v59 = vmul.f32 -1.442695, %v7439_v16  ;;  %v7447_v42 = vadd.f32 %v7433_v30, %v2164_v17 }
 0x538   : > { %5753 = vpow2.f32 %v4647_v47  ;;  %v4648_v11 = vmul.f32 -1.442695, %v7443_v12 }
 0x539   : > { %5755 = vpow2.f32 %v4645_v59  ;;  %v4646_v58 = vmul.f32 -1.442695, %v7447_v42 }
 0x53a   : > { %5757 = vpow2.f32 %v4648_v11 }
 0x53b   : > { %5759 = vpow2.f32 %v4646_v58  ;;  %v5156_v5 = vpop.f32.mrb[36].mxu0 }
 0x53c   : > { %v7452_v18 = vadd.f32 %v5156_v5, %v7433_v30  ;;  %v2177_v51 = vpop.f32.mrb[37].mxu0 }
 0x53d   : > { %v7455_v34 = vadd.f32 %v7433_v30, %v2177_v51  ;;  %v5157_v19 = vpop.f32.mrb[38].mxu0 }
 0x53e   : > { %v4651_v22 = vmul.f32 -1.442695, %v7452_v18  ;;  %v7459_v35 = vadd.f32 %v5157_v19, %v7433_v30  ;;  %v2180_v61 = vpop.f32.mrb[39].mxu0 }
 0x53f   : > { %v4649_v1 = vmul.f32 -1.442695, %v7455_v34  ;;  %v7463_v13 = vadd.f32 %v7433_v30, %v2180_v61 }
 0x540   : > { %5761 = vpow2.f32 %v4651_v22  ;;  %v4652_v32 = vmul.f32 -1.442695, %v7459_v35 }
 0x541   : > { %5763 = vpow2.f32 %v4649_v1  ;;  %v4650_v31 = vmul.f32 -1.442695, %v7463_v13 }
 0x542   : > { %v5754_v3 = vpop.eup %5753  ;;  %5765 = vpow2.f32 %v4652_v32 }
 0x543   : > { %v5756_v54 = vpop.eup %5755  ;;  %v2274_v39 = vadd.f32 1.0, %v5754_v3  ;;  %5767 = vpow2.f32 %v4650_v31  ;;  %v5160_v26 = vpop.f32.mrb[40].mxu0 }
 0x544   : > { %v5758_v48 = vpop.eup %5757  ;;  %v2272_v0 = vadd.f32 1.0, %v5756_v54  ;;  %v7468_v21 = vadd.f32 %v5160_v26, %v7433_v30  ;;  %v2193_v41 = vpop.f32.mrb[41].mxu0 }
 0x545   : > { %v5760_v45 = vpop.eup %5759  ;;  %5769 = vrcp.f32 %v2274_v39  ;;  %v2275_v38 = vadd.f32 1.0, %v5758_v48  ;;  %v7471_v23 = vadd.f32 %v7433_v30, %v2193_v41  ;;  %v5161_v8 = vpop.f32.mrb[42].mxu0 }
 0x546   : > { %5771 = vrcp.f32 %v2272_v0  ;;  %v2273_v47 = vadd.f32 1.0, %v5760_v45  ;;  %v4655_v17 = vmul.f32 -1.442695, %v7468_v21  ;;  %v7475_v59 = vadd.f32 %v5161_v8, %v7433_v30  ;;  %v2196_v11 = vpop.f32.mrb[43].mxu0 }
 0x547   : > { %5773 = vrcp.f32 %v2275_v38  ;;  %v4653_v58 = vmul.f32 -1.442695, %v7471_v23  ;;  %v7479_v5 = vadd.f32 %v7433_v30, %v2196_v11 }
 0x548   : > { %5775 = vrcp.f32 %v2273_v47  ;;  %v4656_v51 = vmul.f32 -1.442695, %v7475_v59 }
 0x549   : > { %5777 = vpow2.f32 %v4655_v17  ;;  %v4654_v19 = vmul.f32 -1.442695, %v7479_v5 }
 0x54a   : > { %v5762_v22 = vpop.eup %5761  ;;  %5779 = vpow2.f32 %v4653_v58 }
 0x54b   : > { %v5764_v61 = vpop.eup %5763  ;;  %v2278_v1 = vadd.f32 1.0, %v5762_v22  ;;  %5781 = vpow2.f32 %v4656_v51 }
 0x54c   : > { %v5766_v32 = vpop.eup %5765  ;;  %v2276_v31 = vadd.f32 1.0, %v5764_v61  ;;  %5783 = vpow2.f32 %v4654_v19 }
 0x54d   : > { %v5768_v3 = vpop.eup %5767  ;;  %5785 = vrcp.f32 %v2278_v1  ;;  %v2279_v54 = vadd.f32 1.0, %v5766_v32  ;;  %v5164_v39 = vpop.f32.mrb[44].mxu0 }
 0x54e   : > { %5787 = vrcp.f32 %v2276_v31  ;;  %v2277_v26 = vadd.f32 1.0, %v5768_v3  ;;  %v7484_v48 = vadd.f32 %v5164_v39, %v7433_v30  ;;  %v2209_v0 = vpop.f32.mrb[45].mxu0 }
 0x54f   : > { %v5770_v41 = vpop.eup %5769  ;;  %5789 = vrcp.f32 %v2279_v54  ;;  %v7487_v45 = vadd.f32 %v7433_v30, %v2209_v0  ;;  %v5165_v38 = vpop.f32.mrb[46].mxu0 }
 0x550   : > { %v5772_v8 = vpop.eup %5771  ;;  %5791 = vrcp.f32 %v2277_v26  ;;  %v4659_v47 = vmul.f32 -1.442695, %v7484_v48  ;;  %v7491_v17 = vadd.f32 %v5165_v38, %v7433_v30  ;;  %v2212_v11 = vpop.f32.mrb[47].mxu0  ;;  %v2322_v61 = vmul.f32 %v5770_v41, %v7436_v25 }
 0x551   : > { %v5774_v58 = vpop.eup %5773  ;;  %v4657_v51 = vmul.f32 -1.442695, %v7487_v45  ;;  %v7495_v19 = vadd.f32 %v7433_v30, %v2212_v11  ;;  %v2320_v3 = vmul.f32 %v5772_v8, %v7439_v16 }
 0x552   : > { %v5776_v22 = vpop.eup %5775  ;;  %v2323_v1 = vmul.f32 %v5774_v58, %v7443_v12  ;;  %5793 = vpow2.f32 %v4659_v47  ;;  %v4660_v32 = vmul.f32 -1.442695, %v7491_v17 }
 0x553   : > { %v5778_v31 = vpop.eup %5777  ;;  %v2321_v54 = vmul.f32 %v5776_v22, %v7447_v42  ;;  %5795 = vpow2.f32 %v4657_v51  ;;  %v4658_v39 = vmul.f32 -1.442695, %v7495_v19 }
 0x554   : > { %v5780_v26 = vpop.eup %5779  ;;  %v2337_v0 = vpack.c.bf16 %v2323_v1, %v2322_v61  ;;  %v2282_v30 = vadd.f32 1.0, %v5778_v31  ;;  %5797 = vpow2.f32 %v4660_v32 }
 0x555   : > { %v5782_v38 = vpop.eup %5781  ;;  %v2280_v11 = vadd.f32 1.0, %v5780_v26  ;;  %5799 = vpow2.f32 %v4658_v39  ;;  %v2336_v25 = vpack.c.bf16 %v2321_v54, %v2320_v3 }
 0x556   : > { %v5784_v12 = vpop.eup %5783  ;;  %5801 = vrcp.f32 %v2282_v30  ;;  %v2283_v41 = vadd.f32 1.0, %v5782_v38 }
 0x557   : > { %v5786_v47 = vpop.eup %5785  ;;  %5803 = vrcp.f32 %v2280_v11  ;;  %v2281_v58 = vadd.f32 1.0, %v5784_v12  ;;  %5182 = vmatprep.mubr.bf16.mxu0 %v2336_v25  ;;  %5230 = vmatprep.subr.bf16.mxu0 %v2336_v25 }
 0x558   : > { %v5788_v16 = vpop.eup %5787  ;;  %5805 = vrcp.f32 %v2283_v41  ;;  %5183 = vmatmul.mubr.bf16.vlgmr.msra.gmra.mrb[48].mxu0 %v2337_v0  ;;  %v2326_v51 = vmul.f32 %v5786_v47, %v7452_v18 }
 0x559   : > { %v5790_v42 = vpop.eup %5789  ;;  %5807 = vrcp.f32 %v2281_v58  ;;  %5231 = vmatpush3.bf16.msra.mxu0 %v2336_v25  ;;  %v2324_v61 = vmul.f32 %v5788_v16, %v7455_v34 }
 0x55a   : > { %v5792_v8 = vpop.eup %5791  ;;  %v2327_v22 = vmul.f32 %v5790_v42, %v7459_v35  ;;  %5232 = vmatprep.subr.bf16.mxu0 %v2337_v0 }
 0x55b   : > { %v2325_v1 = vmul.f32 %v5792_v8, %v7463_v13 }
 0x55c   : > { %v5794_v32 = vpop.eup %5793  ;;  %v2339_v31 = vpack.c.bf16 %v2327_v22, %v2326_v51 }
 0x55d   : > { %v5796_v3 = vpop.eup %5795  ;;  %v2286_v54 = vadd.f32 1.0, %v5794_v32  ;;  %5233 = vmatpush3.bf16.msra.mxu0 %v2337_v0  ;;  %v2338_v39 = vpack.c.bf16 %v2325_v1, %v2324_v61  ;;  %v5657_v32 = vld [vmem:[%s6938_s16] sm:$0xff]  }
 0x55e   : > { %v5798_v26 = vpop.eup %5797  ;;  %v2284_v30 = vadd.f32 1.0, %v5796_v3  ;;  %5198 = vmatprep.subr.bf16.mxu1 %v5657_v32  ;;  %v5661_v3 = vld [vmem:[%s6938_s16 + $0x20] sm:$0xff]  }
 0x55f   : > { %v5800_v38 = vpop.eup %5799  ;;  %5809 = vrcp.f32 %v2286_v54  ;;  %v2287_v11 = vadd.f32 1.0, %v5798_v26  ;;  %5186 = vmatprep.mubr.bf16.mxu0 %v2338_v39  ;;  %5234 = vmatprep.subr.bf16.mxu0 %v2338_v39 }
 0x560   : > { %v5802_v18 = vpop.eup %5801  ;;  %5811 = vrcp.f32 %v2284_v30  ;;  %v2285_v35 = vadd.f32 1.0, %v5800_v38  ;;  %5187 = vmatmul.mubr.bf16.gmra.mrb[52].mxu0 %v2339_v31  ;;  %5199 = vmatpush3.bf16.msra.mxu1 %v5657_v32  ;;  %v5663_v30 = vld [vmem:[%s6938_s16 + $0x30] sm:$0xff]   ;;  %v5664_v38 = vld [vmem:[%s6938_s16 + $0x38] sm:$0xff]  }
 0x561   : > { %v5804_v34 = vpop.eup %5803  ;;  %5813 = vrcp.f32 %v2287_v11  ;;  %5235 = vmatpush3.bf16.msra.mxu0 %v2338_v39  ;;  %v2330_v0 = vmul.f32 %v5802_v18, %v7468_v21  ;;  %v5662_v39 = vld [vmem:[%s6938_s16 + $0x28] sm:$0xff]  }
 0x562   : > { %v5806_v13 = vpop.eup %5805  ;;  %5815 = vrcp.f32 %v2285_v35  ;;  %5236 = vmatprep.subr.bf16.mxu0 %v2339_v31  ;;  %v2328_v41 = vmul.f32 %v5804_v34, %v7471_v23 }
 0x563   : > { %v5808_v25 = vpop.eup %5807  ;;  %v2331_v12 = vmul.f32 %v5806_v13, %v7475_v59  ;;  %v5665_v13 = vld [vmem:[%s6913_s5 + $0x40] sm:$0xff]  }
 0x564   : > { %v2329_v47 = vmul.f32 %v5808_v25, %v7479_v5  ;;  %v5666_v25 = vld [vmem:[%s6913_s5] sm:$0xff]  }
 0x565   : > { %5237 = vmatpush3.bf16.msra.mxu0 %v2339_v31  ;;  %v2341_v58 = vpack.c.bf16 %v2331_v12, %v2330_v0  ;;  %v5660_v31 = vld [vmem:[%s6938_s16 + $0x18] sm:$0xff]   ;;  %v5667_v0 = vld [vmem:[%s6913_s5 + $0x48] sm:$0xff]  }
 0x566   : > { %v2340_v16 = vpack.c.bf16 %v2329_v47, %v2328_v41  ;;  %v5668_v12 = vld [vmem:[%s6913_s5 + $0x8] sm:$0xff]   ;;  %v5669_v41 = vld [vmem:[%s6913_s5 + $0x50] sm:$0xff]  }
 0x567   : > { %v5670_v47 = vld [vmem:[%s6913_s5 + $0x10] sm:$0xff]  }
 0x568   : > { %5190 = vmatprep.mubr.bf16.mxu0 %v2340_v16  ;;  %5238 = vmatprep.subr.bf16.mxu0 %v2340_v16 }
 0x569   : > { %v5810_v42 = vpop.eup %5809  ;;  %5191 = vmatmul.mubr.bf16.gmra.mrb[56].mxu0 %v2341_v58 }
 0x56a   : > { %v5812_v8 = vpop.eup %5811  ;;  %5239 = vmatpush3.bf16.msra.mxu0 %v2340_v16  ;;  %v2334_v21 = vmul.f32 %v5810_v42, %v7484_v48  ;;  %v2913_v48 = vpop.trf.xlu0  ;;  %v5672_v16 = vld [vmem:[%s6913_s5 + $0x18] sm:$0xff]   ;;  %v5673_v42 = vld [vmem:[%s6913_s5 + $0x60] sm:$0xff]  }
 0x56b   : > { %v5814_v51 = vpop.eup %5813  ;;  %5240 = vmatprep.subr.bf16.mxu0 %v2341_v58  ;;  %v2332_v23 = vmul.f32 %v5812_v8, %v7487_v45  ;;  %v5674_v8 = vld [vmem:[%s6913_s5 + $0x20] sm:$0xff]  }
 0x56c   : > { %v5816_v22 = vpop.eup %5815  ;;  %v2335_v59 = vmul.f32 %v5814_v51, %v7491_v17  ;;  %v5658_v17 = vld [vmem:[%s6938_s16 + $0x8] sm:$0xff]  }
 0x56d   : > { %v2333_v5 = vmul.f32 %v5816_v22, %v7495_v19  ;;  %5200 = vmatprep.subr.bf16.mxu1 %v5658_v17  ;;  %v5659_v19 = vld [vmem:[%s6938_s16 + $0x10] sm:$0xff]  }
 0x56e   : > { %5241 = vmatpush3.bf16.msra.mxu0 %v2341_v58  ;;  %v2343_v61 = vpack.c.bf16 %v2335_v59, %v2334_v21  ;;  %5201 = vmatpush3.bf16.msra.mxu1 %v5658_v17  ;;  %v2914_v45 = vpop.trf.xlu0  ;;  %v5671_v58 = vld [vmem:[%s6913_s5 + $0x58] sm:$0xff]   ;;  %v5675_v51 = vld [vmem:[%s6913_s5 + $0x68] sm:$0xff]   ;;  %v5677_v21 = vld [vmem:[%s6913_s5 + $0x70] sm:$0xff]  }
 0x56f   : > { %v2342_v1 = vpack.c.bf16 %v2333_v5, %v2332_v23  ;;  %5202 = vmatprep.subr.bf16.mxu1 %v5659_v19  ;;  %v5676_v22 = vld [vmem:[%s6913_s5 + $0x28] sm:$0xff]   ;;  %v5678_v59 = vld [vmem:[%s6913_s5 + $0x30] sm:$0xff]   ;;  %v5679_v23 = vld [vmem:[%s6913_s5 + $0x78] sm:$0xff]  }
 0x570   : > { %v5680_v5 = vld [vmem:[%s6913_s5 + $0x38] sm:$0xff]  }
 0x571   : > { %5194 = vmatprep.mubr.bf16.mxu0 %v2342_v1  ;;  %5242 = vmatprep.subr.bf16.mxu0 %v2342_v1 }
 0x572   : > { %5195 = vmatmul.mubr.bf16.gmra.mrb[60].mxu0 %v2343_v61  ;;  %5203 = vmatpush3.bf16.msra.mxu1 %v5659_v19  ;;  %v2915_v54 = vpop.trf.xlu0 }
 0x573   : > { %5243 = vmatpush3.bf16.msra.mxu0 %v2342_v1  ;;  %5246 = vmatprep.mubr.bf16.mxu0 %v2913_v48 }
 0x574   : > { %5244 = vmatprep.subr.bf16.mxu0 %v2343_v61  ;;  %5204 = vmatprep.subr.bf16.mxu1 %v5660_v31 }
 0x576   : > { %5205 = vmatpush3.bf16.msra.mxu1 %v5660_v31  ;;  %v2916_v26 = vpop.trf.xlu0 }
 0x577   : > { %5245 = vmatpush3.bf16.msra.mxu0 %v2343_v61  ;;  %5206 = vmatprep.subr.bf16.mxu1 %v5661_v3  ;;  %v7544_v61 = vld [vmem:[%s962_s27] ss:$0 sm:$0xff] }
 0x578   : > { %4918 = vmatprep.subr.bf16.mxu0 %v5665_v13 }
 0x57a   : > { %5247 = vmatmul.mubr.bf16.vlgmr.msra.gmra.mrb[64].mxu0 %v2914_v45  ;;  %5207 = vmatpush3.bf16.msra.mxu1 %v5661_v3  ;;  %v2917_v11 = vpop.trf.xlu0 }
 0x57b   : > { %5250 = vmatprep.mubr.bf16.mxu0 %v2915_v54  ;;  %5208 = vmatprep.subr.bf16.mxu1 %v5662_v39 }
 0x57c   : > { %4919 = vmatpush3.bf16.msra.mxu0 %v5666_v25 }
 0x57d   : > { %4920 = vmatprep.subr.bf16.mxu0 %v5667_v0 }
 0x57e   : > { %5209 = vmatpush3.bf16.msra.mxu1 %v5662_v39  ;;  %v2918_v18 = vpop.trf.xlu0 }
 0x57f   : > { %5210 = vmatprep.subr.bf16.mxu1 %v5663_v30 }
 0x580   : > { %4921 = vmatpush3.bf16.msra.mxu0 %v5668_v12 }
 0x581   : > { %4922 = vmatprep.subr.bf16.mxu0 %v5669_v41 }
 0x582   : > { %5251 = vmatmul.mubr.bf16.gmra.mrb[68].mxu0 %v2916_v26  ;;  %5211 = vmatpush3.bf16.msra.mxu1 %v5663_v30  ;;  %v2919_v35 = vpop.trf.xlu0 }
 0x583   : > { %5212 = vmatprep.subr.bf16.mxu1 %v5664_v38  ;;  %5254 = vmatprep.mubr.bf16.mxu0 %v2917_v11 }
 0x584   : > { %4923 = vmatpush3.bf16.msra.mxu0 %v5670_v47 }
 0x585   : > { %4924 = vmatprep.subr.bf16.mxu0 %v5671_v58 }
 0x586   : > { %5213 = vmatpush3.bf16.msra.mxu1 %v5664_v38  ;;  %v2920_v34 = vpop.trf.xlu0 }
 0x588   : > { %4925 = vmatpush3.bf16.msra.mxu0 %v5672_v16 }
 0x589   : > { %4926 = vmatprep.subr.bf16.mxu0 %v5673_v42 }
 0x58a   : > { %5255 = vmatmul.mubr.bf16.gmra.mrb[72].mxu0 %v2918_v18 }
 0x58b   : > { %5258 = vmatprep.mubr.bf16.mxu0 %v2919_v35 }
 0x58c   : > { %4927 = vmatpush3.bf16.msra.mxu0 %v5674_v8 }
 0x58d   : > { %4928 = vmatprep.subr.bf16.mxu0 %v5675_v51 }
 0x590   : > { %4929 = vmatpush3.bf16.msra.mxu0 %v5676_v22 }
 0x591   : > { %4930 = vmatprep.subr.bf16.mxu0 %v5677_v21 }
 0x592   : > { %5259 = vmatmul.mubr.bf16.gmra.mrb[76].mxu0 %v2920_v34 }
 0x594   : > { %4931 = vmatpush3.bf16.msra.mxu0 %v5678_v59 }
 0x595   : > { %4932 = vmatprep.subr.bf16.mxu0 %v5679_v23 }
 0x598   : > { %4933 = vmatpush3.bf16.msra.mxu0 %v5680_v5 }
 0x62b   : > { %v5184_v1 = vpop.f32.mrb[48].mxu0 }
 0x62c   : > { %v7547_v32 = vadd.f32 %v5184_v1, %v7544_v61  ;;  %v2449_v48 = vpop.f32.mrb[49].mxu0 }
 0x62d   : > { %v7550_v17 = vadd.f32 %v7544_v61, %v2449_v48  ;;  %v5185_v45 = vpop.f32.mrb[50].mxu0 }
 0x62e   : > { %v4672_v19 = vmul.f32 -1.442695, %v7547_v32  ;;  %v7554_v31 = vadd.f32 %v5185_v45, %v7544_v61  ;;  %v2452_v3 = vpop.f32.mrb[51].mxu0 }
 0x62f   : > { %v4670_v54 = vmul.f32 -1.442695, %v7550_v17  ;;  %v7558_v39 = vadd.f32 %v7544_v61, %v2452_v3 }
 0x630   : > { %5817 = vpow2.f32 %v4672_v19  ;;  %v4673_v26 = vmul.f32 -1.442695, %v7554_v31 }
 0x631   : > { %5819 = vpow2.f32 %v4670_v54  ;;  %v4671_v30 = vmul.f32 -1.442695, %v7558_v39 }
 0x632   : > { %5821 = vpow2.f32 %v4673_v26 }
 0x633   : > { %5823 = vpow2.f32 %v4671_v30  ;;  %v5188_v38 = vpop.f32.mrb[52].mxu0 }
 0x634   : > { %v7563_v11 = vadd.f32 %v5188_v38, %v7544_v61  ;;  %v2465_v18 = vpop.f32.mrb[53].mxu0 }
 0x635   : > { %v7566_v35 = vadd.f32 %v7544_v61, %v2465_v18  ;;  %v5189_v34 = vpop.f32.mrb[54].mxu0 }
 0x636   : > { %v4676_v13 = vmul.f32 -1.442695, %v7563_v11  ;;  %v7570_v25 = vadd.f32 %v5189_v34, %v7544_v61  ;;  %v2468_v0 = vpop.f32.mrb[55].mxu0 }
 0x637   : > { %v4674_v12 = vmul.f32 -1.442695, %v7566_v35  ;;  %v7574_v41 = vadd.f32 %v7544_v61, %v2468_v0 }
 0x638   : > { %5825 = vpow2.f32 %v4676_v13  ;;  %v4677_v47 = vmul.f32 -1.442695, %v7570_v25 }
 0x639   : > { %5827 = vpow2.f32 %v4674_v12  ;;  %v4675_v58 = vmul.f32 -1.442695, %v7574_v41 }
 0x63a   : > { %v5818_v16 = vpop.eup %5817  ;;  %5829 = vpow2.f32 %v4677_v47 }
 0x63b   : > { %v5820_v42 = vpop.eup %5819  ;;  %v2562_v8 = vadd.f32 1.0, %v5818_v16  ;;  %5831 = vpow2.f32 %v4675_v58 }
 0x63c   : > { %v5822_v51 = vpop.eup %5821  ;;  %v2560_v22 = vadd.f32 1.0, %v5820_v42  ;;  %v5192_v21 = vpop.f32.mrb[56].mxu0 }
 0x63d   : > { %v5824_v59 = vpop.eup %5823  ;;  %5833 = vrcp.f32 %v2562_v8  ;;  %v2563_v23 = vadd.f32 1.0, %v5822_v51  ;;  %v7579_v5 = vadd.f32 %v5192_v21, %v7544_v61  ;;  %v2481_v1 = vpop.f32.mrb[57].mxu0 }
 0x63e   : > { %5835 = vrcp.f32 %v2560_v22  ;;  %v2561_v48 = vadd.f32 1.0, %v5824_v59  ;;  %v7582_v45 = vadd.f32 %v7544_v61, %v2481_v1  ;;  %v5193_v19 = vpop.f32.mrb[58].mxu0 }
 0x63f   : > { %5837 = vrcp.f32 %v2563_v23  ;;  %v4680_v3 = vmul.f32 -1.442695, %v7579_v5  ;;  %v7586_v54 = vadd.f32 %v5193_v19, %v7544_v61  ;;  %v2484_v26 = vpop.f32.mrb[59].mxu0 }
 0x640   : > { %5839 = vrcp.f32 %v2561_v48  ;;  %v4678_v30 = vmul.f32 -1.442695, %v7582_v45  ;;  %v7590_v38 = vadd.f32 %v7544_v61, %v2484_v26 }
 0x641   : > { %5841 = vpow2.f32 %v4680_v3  ;;  %v4681_v18 = vmul.f32 -1.442695, %v7586_v54 }
 0x642   : > { %v5826_v34 = vpop.eup %5825  ;;  %5843 = vpow2.f32 %v4678_v30  ;;  %v4679_v13 = vmul.f32 -1.442695, %v7590_v38 }
 0x643   : > { %v5828_v0 = vpop.eup %5827  ;;  %v2566_v12 = vadd.f32 1.0, %v5826_v34  ;;  %5845 = vpow2.f32 %v4681_v18 }
 0x644   : > { %v5830_v47 = vpop.eup %5829  ;;  %v2564_v58 = vadd.f32 1.0, %v5828_v0  ;;  %5847 = vpow2.f32 %v4679_v13 }
 0x645   : > { %v5832_v16 = vpop.eup %5831  ;;  %5849 = vrcp.f32 %v2566_v12  ;;  %v2567_v42 = vadd.f32 1.0, %v5830_v47  ;;  %v5196_v8 = vpop.f32.mrb[60].mxu0 }
 0x646   : > { %5851 = vrcp.f32 %v2564_v58  ;;  %v2565_v51 = vadd.f32 1.0, %v5832_v16  ;;  %v7595_v22 = vadd.f32 %v5196_v8, %v7544_v61  ;;  %v2497_v21 = vpop.f32.mrb[61].mxu0 }
 0x647   : > { %v5834_v59 = vpop.eup %5833  ;;  %5853 = vrcp.f32 %v2567_v42  ;;  %v7598_v23 = vadd.f32 %v7544_v61, %v2497_v21  ;;  %v5197_v1 = vpop.f32.mrb[62].mxu0 }
 0x648   : > { %v5836_v48 = vpop.eup %5835  ;;  %5855 = vrcp.f32 %v2565_v51  ;;  %v4684_v19 = vmul.f32 -1.442695, %v7595_v22  ;;  %v7602_v3 = vadd.f32 %v5197_v1, %v7544_v61  ;;  %v2500_v26 = vpop.f32.mrb[63].mxu0  ;;  %v2610_v0 = vmul.f32 %v5834_v59, %v7547_v32 }
 0x649   : > { %v5838_v30 = vpop.eup %5837  ;;  %v4682_v18 = vmul.f32 -1.442695, %v7598_v23  ;;  %v7606_v34 = vadd.f32 %v7544_v61, %v2500_v26  ;;  %v2608_v16 = vmul.f32 %v5836_v48, %v7550_v17 }
 0x64a   : > { %v5840_v13 = vpop.eup %5839  ;;  %v2611_v12 = vmul.f32 %v5838_v30, %v7554_v31  ;;  %5857 = vpow2.f32 %v4684_v19  ;;  %v4685_v47 = vmul.f32 -1.442695, %v7602_v3 }
 0x64b   : > { %v5842_v58 = vpop.eup %5841  ;;  %v2609_v42 = vmul.f32 %v5840_v13, %v7558_v39  ;;  %5859 = vpow2.f32 %v4682_v18  ;;  %v4683_v8 = vmul.f32 -1.442695, %v7606_v34 }
 0x64c   : > { %v5844_v51 = vpop.eup %5843  ;;  %v2625_v21 = vpack.c.bf16 %v2611_v12, %v2610_v0  ;;  %v2570_v61 = vadd.f32 1.0, %v5842_v58  ;;  %5861 = vpow2.f32 %v4685_v47 }
 0x64d   : > { %v5846_v1 = vpop.eup %5845  ;;  %v2568_v26 = vadd.f32 1.0, %v5844_v51  ;;  %5863 = vpow2.f32 %v4683_v8  ;;  %v2624_v32 = vpack.c.bf16 %v2609_v42, %v2608_v16 }
 0x64e   : > { %v5848_v31 = vpop.eup %5847  ;;  %5865 = vrcp.f32 %v2570_v61  ;;  %v2571_v59 = vadd.f32 1.0, %v5846_v1 }
 0x64f   : > { %v5850_v19 = vpop.eup %5849  ;;  %5867 = vrcp.f32 %v2568_v26  ;;  %v2569_v30 = vadd.f32 1.0, %v5848_v31  ;;  %5214 = vmatprep.mubr.bf16.mxu1 %v2624_v32 }
 0x650   : > { %v5852_v17 = vpop.eup %5851  ;;  %5869 = vrcp.f32 %v2571_v59  ;;  %5215 = vmatmul.mubr.bf16.vlgmr.msra.gmra.mrb[32].mxu1 %v2625_v21  ;;  %v2614_v18 = vmul.f32 %v5850_v19, %v7563_v11 }
 0x651   : > { %v5854_v39 = vpop.eup %5853  ;;  %5871 = vrcp.f32 %v2569_v30  ;;  %v2612_v0 = vmul.f32 %v5852_v17, %v7566_v35 }
 0x652   : > { %v5856_v48 = vpop.eup %5855  ;;  %v2615_v13 = vmul.f32 %v5854_v39, %v7570_v25 }
 0x653   : > { %v2613_v12 = vmul.f32 %v5856_v48, %v7574_v41 }
 0x654   : > { %v5858_v47 = vpop.eup %5857  ;;  %v2627_v58 = vpack.c.bf16 %v2615_v13, %v2614_v18 }
 0x655   : > { %v5860_v16 = vpop.eup %5859  ;;  %v2574_v42 = vadd.f32 1.0, %v5858_v47  ;;  %v2626_v8 = vpack.c.bf16 %v2613_v12, %v2612_v0 }
 0x656   : > { %v5862_v51 = vpop.eup %5861  ;;  %v2572_v61 = vadd.f32 1.0, %v5860_v16  ;;  %v3471_v16 = vld [vmem:[#allocation2 + $0x8] sm:$0xff] }
 0x657   : > { %v5864_v1 = vpop.eup %5863  ;;  %5873 = vrcp.f32 %v2574_v42  ;;  %v2575_v21 = vadd.f32 1.0, %v5862_v51  ;;  %5218 = vmatprep.mubr.bf16.mxu1 %v2626_v8 }
 0x658   : > { %v5866_v26 = vpop.eup %5865  ;;  %5875 = vrcp.f32 %v2572_v61  ;;  %v2573_v11 = vadd.f32 1.0, %v5864_v1  ;;  %5219 = vmatmul.mubr.bf16.gmra.mrb[36].mxu1 %v2627_v58  ;;  %v3470_v58 = vld [vmem:[#allocation2] sm:$0xff] }
 0x659   : > { %v5868_v25 = vpop.eup %5867  ;;  %5877 = vrcp.f32 %v2575_v21  ;;  %v2618_v32 = vmul.f32 %v5866_v26, %v7579_v5  ;;  %v3486_v1 = vpack.c.bf16 %v3471_v16, %v3470_v58  ;;  %v3474_v26 = vld [vmem:[#allocation2 + $0x20] sm:$0xff] }
 0x65a   : > { %v5870_v35 = vpop.eup %5869  ;;  %5879 = vrcp.f32 %v2573_v11  ;;  %v2616_v59 = vmul.f32 %v5868_v25, %v7582_v45  ;;  %v3475_v11 = vld [vmem:[#allocation2 + $0x28] sm:$0xff] }
 0x65b   : > { %v5872_v41 = vpop.eup %5871  ;;  %v2619_v31 = vmul.f32 %v5870_v35, %v7586_v54 }
 0x65c   : > { %v2617_v19 = vmul.f32 %v5872_v41, %v7590_v38  ;;  %v5248_v38 = vpop.f32.mrb[64].mxu0 }
 0x65d   : > { %v2629_v30 = vpack.c.bf16 %v2619_v31, %v2618_v32  ;;  %v2955_v42 = vpop.f32.mrb[65].mxu0  ;;  %v3490_v31 = vpack.c.bf16 %v3475_v11, %v3474_v26 }
 0x65e   : > { %v2628_v17 = vpack.c.bf16 %v2617_v19, %v2616_v59  ;;  %v5249_v8 = vpop.f32.mrb[66].mxu0  ;;  %v3476_v19 = vld [vmem:[#allocation2 + $0x30] sm:$0xff] }
 0x65f   : > { %v3489_v51 = vpack.c.bf16 %v5249_v8, %v5248_v38  ;;  %v2958_v61 = vpop.f32.mrb[67].mxu0  ;;  %v3481_v38 = vld [vmem:[#allocation2 + $0x58] sm:$0xff] }
 0x660   : > { %5222 = vmatprep.mubr.bf16.mxu1 %v2628_v17  ;;  %v3487_v21 = vpack.c.bf16 %v2958_v61, %v2955_v42 }
 0x661   : > { %v5874_v39 = vpop.eup %5873  ;;  %5223 = vmatmul.mubr.bf16.gmra.mrb[40].mxu1 %v2629_v30  ;;  %v3477_v30 = vld [vmem:[#allocation2 + $0x38] sm:$0xff] }
 0x662   : > { %v5876_v48 = vpop.eup %5875  ;;  %v2622_v0 = vmul.f32 %v5874_v39, %v7595_v22  ;;  %3669 = vmatprep.mubr.bf16.mxu0 %v3487_v21  ;;  %v3472_v22 = vld [vmem:[#allocation2 + $0x10] sm:$0xff]  ;;  %v3492_v17 = vpack.c.bf16 %v3477_v30, %v3476_v19  ;;  %v3482_v21 = vld [vmem:[#allocation2 + $0x60] sm:$0xff] }
 0x663   : > { %v5878_v18 = vpop.eup %5877  ;;  %v2620_v5 = vmul.f32 %v5876_v48, %v7598_v23  ;;  %3670 = vmatmul.mubr.bf16.vlgmr.msra.gmra.mrb[80].mxu0 %v3486_v1  ;;  %v3473_v23 = vld [vmem:[#allocation2 + $0x18] sm:$0xff] }
 0x664   : > { %v5880_v13 = vpop.eup %5879  ;;  %v2623_v12 = vmul.f32 %v5878_v18, %v7602_v3  ;;  %3677 = vmatprep.mubr.bf16.mxu0 %v3489_v51  ;;  %v3488_v3 = vpack.c.bf16 %v3473_v23, %v3472_v22  ;;  %v3483_v22 = vld [vmem:[#allocation2 + $0x68] sm:$0xff] }
 0x665   : > { %v2621_v54 = vmul.f32 %v5880_v13, %v7606_v34  ;;  %v5252_v34 = vpop.f32.mrb[68].mxu0  ;;  %v3498_v23 = vpack.c.bf16 %v3483_v22, %v3482_v21 }
 0x666   : > { %v2631_v47 = vpack.c.bf16 %v2623_v12, %v2622_v0  ;;  %v2971_v25 = vpop.f32.mrb[69].mxu0 }
 0x667   : > { %v2630_v45 = vpack.c.bf16 %v2621_v54, %v2620_v5  ;;  %v5253_v35 = vpop.f32.mrb[70].mxu0  ;;  %v3478_v5 = vld [vmem:[#allocation2 + $0x40] sm:$0xff]  ;;  %v3479_v54 = vld [vmem:[#allocation2 + $0x48] sm:$0xff] }
 0x668   : > { %v3493_v41 = vpack.c.bf16 %v5253_v35, %v5252_v34  ;;  %v2974_v32 = vpop.f32.mrb[71].mxu0  ;;  %v3485_v34 = vld [vmem:[#allocation2 + $0x78] sm:$0xff] }
 0x669   : > { %5226 = vmatprep.mubr.bf16.mxu1 %v2630_v45  ;;  %v3491_v59 = vpack.c.bf16 %v2974_v32, %v2971_v25  ;;  %v5256_v39 = vpop.f32.mrb[72].mxu0  ;;  %v3480_v45 = vld [vmem:[#allocation2 + $0x50] sm:$0xff] }
 0x66a   : > { %5227 = vmatmul.mubr.bf16.gmra.mrb[44].mxu1 %v2631_v47  ;;  %v2987_v48 = vpop.f32.mrb[73].mxu0  ;;  %v3494_v47 = vpack.c.bf16 %v3479_v54, %v3478_v5  ;;  %v3496_v58 = vpack.c.bf16 %v3481_v38, %v3480_v45  ;;  %v3310_v5 = vld [vmem:[%s8153_s20] sm:$0xff]  ;;  %v3311_v54 = vld [vmem:[%s8153_s20 + $0x8] sm:$0xff]  ;;  %v3313_v45 = vld [vmem:[%s8153_s20 + $0x18] sm:$0xff] }
 0x66b   : > { %3678 = vmatmul.mubr.bf16.gmra.mrb[84].mxu0 %v3488_v3  ;;  %v5257_v18 = vpop.f32.mrb[74].mxu0  ;;  %v3484_v3 = vld [vmem:[#allocation2 + $0x70] sm:$0xff]  ;;  %v3314_v38 = vld [vmem:[%s8153_s20 + $0x20] sm:$0xff] }
 0x66c   : > { %3685 = vmatprep.mubr.bf16.mxu0 %v3491_v59  ;;  %v3497_v13 = vpack.c.bf16 %v5257_v18, %v5256_v39  ;;  %v2990_v0 = vpop.f32.mrb[75].mxu0  ;;  %v3500_v26 = vpack.c.bf16 %v3485_v34, %v3484_v3  ;;  %v3320_v3 = vld [vmem:[%s8153_s20 + $0x50] sm:$0xff] }
 0x66d   : > { %v3495_v12 = vpack.c.bf16 %v2990_v0, %v2987_v48  ;;  %v5260_v16 = vpop.f32.mrb[76].mxu0 }
 0x66e   : > { %v3003_v42 = vpop.f32.mrb[77].mxu0 }
 0x66f   : > { %v5261_v8 = vpop.f32.mrb[78].mxu0 }
 0x670   : > { %v3501_v51 = vpack.c.bf16 %v5261_v8, %v5260_v16  ;;  %v3006_v61 = vpop.f32.mrb[79].mxu0  ;;  %v3316_v16 = vld [vmem:[%s8153_s20 + $0x30] sm:$0xff]  ;;  %v3318_v8 = vld [vmem:[%s8153_s20 + $0x40] sm:$0xff] }
 0x671   : > { %v3499_v1 = vpack.c.bf16 %v3006_v61, %v3003_v42  ;;  %v3317_v42 = vld [vmem:[%s8153_s20 + $0x38] sm:$0xff] }
 0x673   : > { %3686 = vmatmul.mubr.bf16.gmra.mrb[88].mxu0 %v3490_v31 }
 0x674   : > { %3693 = vmatprep.mubr.bf16.mxu0 %v3493_v41 }
 0x67b   : > { %3694 = vmatmul.mubr.bf16.gmra.mrb[92].mxu0 %v3492_v17 }
 0x67c   : > { %3701 = vmatprep.mubr.bf16.mxu0 %v3495_v12 }
 0x683   : > { %3702 = vmatmul.mubr.bf16.gmra.mrb[96].mxu0 %v3494_v47  ;;  %v3312_v47 = vld [vmem:[%s8153_s20 + $0x10] sm:$0xff] }
 0x684   : > { %3709 = vmatprep.mubr.bf16.mxu0 %v3497_v13 }
 0x68b   : > { %3710 = vmatmul.mubr.bf16.gmra.mrb[100].mxu0 %v3496_v58  ;;  %v3315_v58 = vld [vmem:[%s8153_s20 + $0x28] sm:$0xff] }
 0x68c   : > { %3717 = vmatprep.mubr.bf16.mxu0 %v3499_v1  ;;  %v7661_v1 = vld [vmem:[%s970_s10] ss:$0 sm:$0xff] }
 0x693   : > { %3718 = vmatmul.mubr.bf16.gmra.mrb[104].mxu0 %v3498_v23 }
 0x694   : > { %3725 = vmatprep.mubr.bf16.mxu0 %v3501_v51  ;;  %v3319_v51 = vld [vmem:[%s8153_s20 + $0x48] sm:$0xff] }
 0x69b   : > { %3726 = vmatmul.mubr.bf16.gmra.mrb[108].mxu0 %v3500_v26 }
 0x723   : > { %v5216_v11 = vpop.f32.mrb[32].mxu1 }
 0x724   : > { %2805 = vperm.xlu1 %5615, %v5216_v11   ;;  %v2730_v25 = vpop.f32.mrb[33].mxu1 }
 0x725   : > { %v5217_v35 = vpop.f32.mrb[34].mxu1 }
 0x726   : > { %v2733_v41 = vpop.f32.mrb[35].mxu1 }
 0x728   : > { %2795 = vperm.xlu1 %5615, %v2730_v25  }
 0x72b   : > { %v5220_v32 = vpop.f32.mrb[36].mxu1 }
 0x72c   : > { %2810 = vperm.xlu1 %5615, %v5217_v35   ;;  %v2746_v31 = vpop.f32.mrb[37].mxu1 }
 0x72d   : > { %v5221_v59 = vpop.f32.mrb[38].mxu1 }
 0x72e   : > { %v2749_v19 = vpop.f32.mrb[39].mxu1 }
 0x730   : > { %2800 = vperm.xlu1 %5615, %v2733_v41   ;;  %v3321_v41 = vld [vmem:[%s8153_s20 + $0x58] sm:$0xff] }
 0x734   : > { %v5224_v30 = vpop.f32.mrb[40].mxu1  ;;  %2825 = vperm.xlu1 %5615, %v5220_v32  }
 0x735   : > { %v2762_v17 = vpop.f32.mrb[41].mxu1 }
 0x736   : > { %v5225_v39 = vpop.f32.mrb[42].mxu1  ;;  %v4934_v61 = vpop.f32.mrb[80].mxu0 }
 0x737   : > { %v2765_v48 = vpop.f32.mrb[43].mxu1  ;;  %v4935_v21 = vpop.f32.mrb[81].mxu0 }
 0x738   : > { %2815 = vperm.xlu1 %5615, %v2746_v31   ;;  %v4936_v22 = vadd.f32 %v4935_v21, %v4934_v61  ;;  %v4937_v23 = vpop.f32.mrb[82].mxu0 }
 0x739   : > { %v4938_v34 = vpop.f32.mrb[83].mxu0 }
 0x73a   : > { %v7667_v26 = vadd.f32 %v4936_v22, %v7661_v1  ;;  %v4939_v11 = vadd.f32 %v4938_v34, %v4937_v23  ;;  %v3325_v34 = vld [vmem:[%s8153_s20 + $0x78] sm:$0xff] }
 0x73c   : > { %2830 = vperm.xlu1 %5615, %v5221_v59   ;;  %v4711_v25 = vmul.f32 -1.442695, %v7667_v26  ;;  %v7671_v35 = vadd.f32 %v4939_v11, %v7661_v1 }
 0x73d   : > { %v5228_v18 = vpop.f32.mrb[44].mxu1 }
 0x73e   : > { %v2778_v13 = vpop.f32.mrb[45].mxu1  ;;  %5881 = vpow2.f32 %v4711_v25  ;;  %v4712_v32 = vmul.f32 -1.442695, %v7671_v35  ;;  %v4940_v31 = vpop.f32.mrb[84].mxu0 }
 0x73f   : > { %v5229_v0 = vpop.f32.mrb[46].mxu1  ;;  %v4941_v59 = vpop.f32.mrb[85].mxu0 }
 0x740   : > { %2870 = vperm.xlu0 %5616, %v5229_v0   ;;  %v2781_v12 = vpop.f32.mrb[47].mxu1  ;;  %2820 = vperm.xlu1 %5615, %v2749_v19   ;;  %5883 = vpow2.f32 %v4712_v32  ;;  %v4942_v19 = vadd.f32 %v4941_v59, %v4940_v31 }
 0x744   : > { %2845 = vperm.xlu1 %5615, %v5224_v30   ;;  %3328 = vperm.xlu0 %5616, %v3310_v5   ;;  %v4943_v30 = vpop.f32.mrb[86].mxu0 }
 0x748   : > { %2835 = vperm.xlu1 %5615, %v2762_v17   ;;  %3333 = vperm.xlu0 %5616, %v3311_v54   ;;  %v3322_v17 = vld [vmem:[%s8153_s20 + $0x60] sm:$0xff] }
 0x74c   : > { %2850 = vperm.xlu1 %5615, %v5225_v39   ;;  %3338 = vperm.xlu0 %5616, %v3312_v47   ;;  %v4944_v39 = vpop.f32.mrb[87].mxu0 }
 0x74d   : > { %v4946_v54 = vpop.f32.mrb[88].mxu0 }
 0x74e   : > { %v4947_v47 = vpop.f32.mrb[89].mxu0 }
 0x750   : > { %2840 = vperm.xlu1 %5615, %v2765_v48   ;;  %3343 = vperm.xlu0 %5616, %v3313_v45   ;;  %v7681_v48 = vadd.f32 %v4942_v19, %v7661_v1  ;;  %v5882_v45 = vpop.eup %5881 }
 0x754   : > { %2865 = vperm.xlu1 %5615, %v5228_v18   ;;  %3348 = vperm.xlu0 %5616, %v3314_v38   ;;  %v4945_v18 = vadd.f32 %v4944_v39, %v4943_v30  ;;  %v4948_v38 = vadd.f32 %v4947_v47, %v4946_v54 }
 0x756   : > { %v7685_v0 = vadd.f32 %v4945_v18, %v7661_v1  ;;  %v7695_v61 = vadd.f32 %v4948_v38, %v7661_v1 }
 0x758   : > { %2855 = vperm.xlu1 %5615, %v2778_v13   ;;  %3353 = vperm.xlu0 %5616, %v3315_v58   ;;  %v4713_v13 = vmul.f32 -1.442695, %v7681_v48  ;;  %v4714_v5 = vmul.f32 -1.442695, %v7685_v0  ;;  %v4949_v58 = vpop.f32.mrb[90].mxu0 }
 0x759   : > { %v4715_v23 = vmul.f32 -1.442695, %v7695_v61 }
 0x75a   : > { %5885 = vpow2.f32 %v4713_v13 }
 0x75b   : > { %5887 = vpow2.f32 %v4714_v5 }
 0x75c   : > { %2860 = vperm.xlu1 %5615, %v2781_v12   ;;  %3358 = vperm.xlu0 %5616, %v3316_v16   ;;  %v3323_v12 = vld [vmem:[%s8153_s20 + $0x68] sm:$0xff]  ;;  %v3324_v16 = vld [vmem:[%s8153_s20 + $0x70] sm:$0xff] }
 0x760   : > { %3363 = vperm.xlu0 %5616, %v3317_v42   ;;  %v3782_v42 = vadd.f32 1.0, %v5882_v45 }
 0x762   : > { %5889 = vrcp.f32 %v3782_v42 }
 0x764   : > { %3368 = vperm.xlu0 %5616, %v3318_v8   ;;  %v4950_v8 = vpop.f32.mrb[91].mxu0 }
 0x765   : > { %v4951_v21 = vadd.f32 %v4950_v8, %v4949_v58  ;;  %v4952_v25 = vpop.f32.mrb[92].mxu0 }
 0x768   : > { %3373 = vperm.xlu0 %5616, %v3319_v51   ;;  %v5884_v51 = vpop.eup %5883 }
 0x769   : > { %v3783_v22 = vadd.f32 1.0, %v5884_v51  ;;  %v5886_v32 = vpop.eup %5885 }
 0x76a   : > { %v3784_v19 = vadd.f32 1.0, %v5886_v32 }
 0x76b   : > { %5891 = vrcp.f32 %v3783_v22 }
 0x76c   : > { %3378 = vperm.xlu0 %5616, %v3320_v3   ;;  %v7699_v3 = vadd.f32 %v4951_v21, %v7661_v1  ;;  %5893 = vpow2.f32 %v4715_v23 }
 0x76e   : > { %v4716_v11 = vmul.f32 -1.442695, %v7699_v3 }
 0x770   : > { %3383 = vperm.xlu0 %5616, %v3321_v41   ;;  %v4953_v41 = vpop.f32.mrb[93].mxu0  ;;  %5895 = vpow2.f32 %v4716_v11 }
 0x771   : > { %v4954_v31 = vadd.f32 %v4953_v41, %v4952_v25  ;;  %v4955_v59 = vpop.f32.mrb[94].mxu0  ;;  %5897 = vrcp.f32 %v3784_v19 }
 0x772   : > { %v4956_v30 = vpop.f32.mrb[95].mxu0 }
 0x773   : > { %v7706_v39 = vadd.f32 %v4954_v31, %v7661_v1  ;;  %v4957_v18 = vadd.f32 %v4956_v30, %v4955_v59  ;;  %v4958_v38 = vpop.f32.mrb[96].mxu0 }
 0x774   : > { %3388 = vperm.xlu0 %5616, %v3322_v17   ;;  %v5888_v17 = vpop.eup %5887 }
 0x775   : > { %v3785_v13 = vadd.f32 1.0, %v5888_v17  ;;  %v7710_v5 = vadd.f32 %v4957_v18, %v7661_v1  ;;  %v5890_v54 = vpop.eup %5889 }
 0x776   : > { %v7714_v47 = vmul.f32 %v5890_v54, %v7667_v26  ;;  %v5892_v58 = vpop.eup %5891 }
 0x777   : > { %5899 = vrcp.f32 %v3785_v13  ;;  %v4718_v45 = vmul.f32 -1.442695, %v7710_v5  ;;  %v5894_v42 = vpop.eup %5893  ;;  %v7718_v8 = vmul.f32 %v5892_v58, %v7671_v35 }
 0x778   : > { %3393 = vperm.xlu0 %5616, %v3323_v12   ;;  %v4717_v12 = vmul.f32 -1.442695, %v7706_v39 }
 0x779   : > { %v3846_v11 = vpack.c.bf16 %v7718_v8, %v7714_v47 }
 0x77a   : > { %5901 = vpow2.f32 %v4717_v12  ;;  %v5896_v23 = vpop.eup %5895 }
 0x77b   : > { %5903 = vpow2.f32 %v4718_v45  ;;  %v3787_v25 = vadd.f32 1.0, %v5896_v23  ;;  %v5898_v32 = vpop.eup %5897 }
 0x77c   : > { %3398 = vperm.xlu0 %5616, %v3324_v16   ;;  %v4959_v16 = vpop.f32.mrb[97].mxu0 }
 0x77d   : > { %v4960_v51 = vadd.f32 %v4959_v16, %v4958_v38  ;;  %v4961_v21 = vpop.f32.mrb[98].mxu0 }
 0x77e   : > { %v4962_v22 = vpop.f32.mrb[99].mxu0 }
 0x77f   : > { %v7722_v26 = vadd.f32 %v4960_v51, %v7661_v1  ;;  %v4964_v59 = vpop.f32.mrb[100].mxu0 }
 0x780   : > { %3403 = vperm.xlu0 %5616, %v3325_v34   ;;  %v4963_v34 = vadd.f32 %v4962_v22, %v4961_v21  ;;  %v4965_v30 = vpop.f32.mrb[101].mxu0 }
 0x781   : > { %v4719_v35 = vmul.f32 -1.442695, %v7722_v26  ;;  %v5900_v19 = vpop.eup %5899  ;;  %v4966_v13 = vadd.f32 %v4965_v30, %v4964_v59  ;;  %v4967_v12 = vpop.f32.mrb[102].mxu0 }
 0x782   : > { %v7728_v41 = vadd.f32 %v4963_v34, %v7661_v1  ;;  %v7736_v18 = vmul.f32 %v5900_v19, %v7685_v0  ;;  %v4968_v54 = vpop.f32.mrb[103].mxu0 }
 0x783   : > { %v7742_v38 = vadd.f32 %v4966_v13, %v7661_v1  ;;  %v4969_v58 = vadd.f32 %v4968_v54, %v4967_v12 }
 0x784   : > { %v4720_v31 = vmul.f32 -1.442695, %v7728_v41  ;;  %v5902_v17 = vpop.eup %5901 }
 0x785   : > { %3066 = vxpose.xlu1.b32.start [1/16] %v7060_v33, 128  ;;  %v3786_v33 = vadd.f32 1.0, %v5894_v42  ;;  %v5904_v45 = vpop.eup %5903  ;;  %v4721_v0 = vmul.f32 -1.442695, %v7742_v38  ;;  %v7746_v42 = vadd.f32 %v4969_v58, %v7661_v1 }
 0x786   : > { %v3789_v16 = vadd.f32 1.0, %v5904_v45 }
 0x787   : > { %5905 = vrcp.f32 %v3786_v33  ;;  %v4722_v21 = vmul.f32 -1.442695, %v7746_v42  ;;  %v4970_v33 = vpop.f32.mrb[104].mxu0 }
 0x788   : > { %5907 = vrcp.f32 %v3787_v25  ;;  %v4971_v23 = vpop.f32.mrb[105].mxu0 }
 0x789   : > { %3067 = vxpose.xlu1.b32.cont [2/16] %v7073_v49, 128  ;;  %v7732_v49 = vmul.f32 %v5898_v32, %v7681_v48  ;;  %5909 = vpow2.f32 %v4719_v35  ;;  %v4972_v35 = vadd.f32 %v4971_v23, %v4970_v33  ;;  %v4973_v32 = vpop.f32.mrb[106].mxu0 }
 0x78a   : > { %5911 = vpow2.f32 %v4720_v31  ;;  %v4974_v31 = vpop.f32.mrb[107].mxu0 }
 0x78b   : > { %v3847_v48 = vpack.c.bf16 %v7736_v18, %v7732_v49  ;;  %v4975_v19 = vadd.f32 %v4974_v31, %v4973_v32  ;;  %v4976_v54 = vpop.f32.mrb[108].mxu0 }
 0x78c   : > { %v4977_v58 = vpop.f32.mrb[109].mxu0 }
 0x78d   : > { %3068 = vxpose.xlu1.b32.cont [3/16] %v7079_v56, 128  ;;  %v3788_v56 = vadd.f32 1.0, %v5902_v17  ;;  %v7764_v13 = vadd.f32 %v4975_v19, %v7661_v1 }
 0x78f   : > { %5913 = vrcp.f32 %v3788_v56  ;;  %v4724_v56 = vmul.f32 -1.442695, %v7764_v13 }
 0x790   : > { %5915 = vrcp.f32 %v3789_v16 }
 0x791   : > { %3069 = vxpose.xlu1.b32.cont [4/16] %v7084_v62, 128  ;;  %v5906_v51 = vpop.eup %5905  ;;  %5917 = vpow2.f32 %v4721_v0 }
 0x792   : > { %v7750_v62 = vmul.f32 %v5906_v51, %v7695_v61  ;;  %v5908_v22 = vpop.eup %5907  ;;  %5919 = vpow2.f32 %v4722_v21  ;;  %v7758_v61 = vadd.f32 %v4972_v35, %v7661_v1  ;;  %v4978_v51 = vadd.f32 %v4977_v58, %v4976_v54  ;;  %v4979_v21 = vpop.f32.mrb[110].mxu0 }
 0x793   : > { %v5910_v34 = vpop.eup %5909  ;;  %v7754_v25 = vmul.f32 %v5908_v22, %v7699_v3  ;;  %v4980_v33 = vpop.f32.mrb[111].mxu0 }
 0x794   : > { %v5912_v59 = vpop.eup %5911  ;;  %v4723_v3 = vmul.f32 -1.442695, %v7758_v61  ;;  %v4981_v23 = vadd.f32 %v4980_v33, %v4979_v21 }
 0x795   : > { %3070 = vxpose.xlu1.b32.cont [5/16] %v7086_v9, 128  ;;  %v3790_v9 = vadd.f32 1.0, %v5910_v34  ;;  %v3848_v30 = vpack.c.bf16 %v7754_v25, %v7750_v62  ;;  %v3791_v17 = vadd.f32 1.0, %v5912_v59  ;;  %v3423_v25 = vld [vmem:[#allocation3 + $0x8] sm:$0xff] }
 0x797   : > { %5921 = vrcp.f32 %v3790_v9  ;;  %v7782_v9 = vadd.f32 %v4981_v23, %v7661_v1 }
 0x798   : > { %5923 = vrcp.f32 %v3791_v17 }
 0x799   : > { %3071 = vxpose.xlu1.b32.cont [6/16] %v7097_v6, 128  ;;  %v5914_v12 = vpop.eup %5913  ;;  %5925 = vpow2.f32 %v4723_v3  ;;  %v4726_v59 = vmul.f32 -1.442695, %v7782_v9 }
 0x79a   : > { %v7768_v6 = vmul.f32 %v5914_v12, %v7706_v39  ;;  %v5916_v45 = vpop.eup %5915  ;;  %5927 = vpow2.f32 %v4724_v56  ;;  %v7776_v39 = vadd.f32 %v4978_v51, %v7661_v1 }
 0x79b   : > { %v5918_v16 = vpop.eup %5917  ;;  %v7772_v0 = vmul.f32 %v5916_v45, %v7710_v5 }
 0x79c   : > { %v5920_v22 = vpop.eup %5919  ;;  %v4725_v5 = vmul.f32 -1.442695, %v7776_v39 }
 0x79d   : > { %3072 = vxpose.xlu1.b32.cont [7/16] %v7104_v15, 128  ;;  %v3792_v15 = vadd.f32 1.0, %v5918_v16  ;;  %v3849_v34 = vpack.c.bf16 %v7772_v0, %v7768_v6  ;;  %v3793_v32 = vadd.f32 1.0, %v5920_v22  ;;  %v3422_v0 = vld [vmem:[#allocation3] sm:$0xff] }
 0x79f   : > { %5929 = vrcp.f32 %v3792_v15 }
 0x7a0   : > { %5931 = vrcp.f32 %v3793_v32 }
 0x7a1   : > { %3073 = vxpose.xlu1.b32.cont [8/16] %v7110_v63, 128  ;;  %v5922_v31 = vpop.eup %5921  ;;  %5933 = vpow2.f32 %v4725_v5 }
 0x7a2   : > { %v7786_v63 = vmul.f32 %v5922_v31, %v7722_v26  ;;  %v5924_v19 = vpop.eup %5923  ;;  %5935 = vpow2.f32 %v4726_v59 }
 0x7a3   : > { %v2806_v35 = vpop.permute.xlu1 %2805  ;;  %v5926_v3 = vpop.eup %5925  ;;  %v7790_v12 = vmul.f32 %v5924_v19, %v7728_v41 }
 0x7a4   : > { %v3794_v1 = vadd.f32 1.0, %v5926_v3  ;;  %v5928_v56 = vpop.eup %5927  ;;  %v2875_v45 = vmul.f32 %v2806_v35, %v7205_v28 }
 0x7a5   : > { %3074 = vxpose.xlu1.b32.cont [9/16] %v7118_v29, 128  ;;  %v3850_v29 = vpack.c.bf16 %v7790_v12, %v7786_v63  ;;  %v3795_v26 = vadd.f32 1.0, %v5928_v56 }
 0x7a6   : > { %5937 = vrcp.f32 %v3794_v1 }
 0x7a7   : > { %v2796_v17 = vpop.permute.xlu1 %2795  ;;  %5939 = vrcp.f32 %v3795_v26 }
 0x7a8   : > { %v2873_v33 = vmul.f32 %v2796_v17, %v7199_v14 }
 0x7a9   : > { %3075 = vxpose.xlu1.b32.cont [10/16] %v7129_v20, 128  ;;  %v5930_v16 = vpop.eup %5929 }
 0x7aa   : > { %v7799_v51 = vmul.f32 %v5930_v16, %v7742_v38  ;;  %v5932_v20 = vpop.eup %5931 }
 0x7ab   : > { %v2811_v54 = vpop.permute.xlu1 %2810  ;;  %v5934_v15 = vpop.eup %5933  ;;  %v7804_v23 = vmul.f32 %v5932_v20, %v7746_v42 }
 0x7ac   : > { %v2876_v58 = vmul.f32 %v7203_v27, %v2811_v54  ;;  %v3796_v27 = vadd.f32 1.0, %v5934_v15  ;;  %v5936_v28 = vpop.eup %5935 }
 0x7ad   : > { %3076 = vxpose.xlu1.b32.cont [11/16] %v7131_v40, 128  ;;  %v3851_v35 = vpack.c.bf16 %v7804_v23, %v7799_v51  ;;  %v3797_v32 = vadd.f32 1.0, %v5936_v28 }
 0x7ae   : > { %v5418_v41 = vpack.c.bf16 %v2876_v58, %v2875_v45  ;;  %5941 = vrcp.f32 %v3796_v27  ;;  %v8156_v27 = vld [vmem:[#allocation36_spill] sm:$0xff] }
 0x7af   : > { %v2801_v21 = vpop.permute.xlu1 %2800  ;;  %5943 = vrcp.f32 %v3797_v32  ;;  %v5683_v32 = vld [vmem:[%s6915_s21 + $0x10] sm:$0xff]  }
 0x7b0   : > { %v2874_v22 = vmul.f32 %v7197_v24, %v2801_v21  ;;  %v5938_v5 = vpop.eup %5937 }
 0x7b1   : > { %3077 = vxpose.xlu1.b32.cont [12/16] %v7138_v46, 128  ;;  %v7811_v24 = vmul.f32 %v5938_v5, %v7758_v61  ;;  %v5940_v46 = vpop.eup %5939 }
 0x7b2   : > { %v5414_v40 = vpack.c.bf16 %v2874_v22, %v2873_v33  ;;  %v7814_v42 = vmul.f32 %v5940_v46, %v7764_v13  ;;  %v8155_v22 = vld [vmem:[#allocation37_spill] sm:$0xff]  ;;  %v5684_v46 = vld [vmem:[%s6915_s21 + $0x18] sm:$0xff]  }
 0x7b3   : > { %v2826_v38 = vpop.permute.xlu1 %2825 }
 0x7b4   : > { %5415 = vmatprep.subr.bf16.mxu1 %v5414_v40  ;;  %v3852_v31 = vpack.c.bf16 %v7814_v42, %v7811_v24  ;;  %v2879_v19 = vmul.f32 %v2826_v38, %v7223_v44 }
 0x7b5   : > { %5417 = vmatpush3.bf16.msra.mxu1 %v5414_v40  ;;  %3078 = vxpose.xlu1.b32.cont [13/16] %v7145_v53, 128  ;;  %v5682_v40 = vld [vmem:[%s6915_s21 + $0x8] sm:$0xff]  }
 0x7b6   : > { %5419 = vmatprep.subr.bf16.mxu1 %v5418_v41 }
 0x7b7   : > { %v2816_v14 = vpop.permute.xlu1 %2815 }
 0x7b8   : > { %v5942_v17 = vpop.eup %5941  ;;  %v2877_v56 = vmul.f32 %v2816_v14, %v7213_v37 }
 0x7b9   : > { %5421 = vmatpush3.bf16.msra.mxu1 %v5418_v41  ;;  %3079 = vxpose.xlu1.b32.cont [14/16] %v7151_v60, 128  ;;  %v7823_v3 = vmul.f32 %v5942_v17, %v7776_v39  ;;  %v5944_v13 = vpop.eup %5943 }
 0x7ba   : > { %v7828_v54 = vmul.f32 %v5944_v13, %v7782_v9 }
 0x7bb   : > { %v2831_v59 = vpop.permute.xlu1 %2830 }
 0x7bc   : > { %v2880_v53 = vmul.f32 %v7221_v43, %v2831_v59  ;;  %v3853_v43 = vpack.c.bf16 %v7828_v54, %v7823_v3  ;;  %v5685_v59 = vld [vmem:[%s6915_s21 + $0x20] sm:$0xff]  }
 0x7bd   : > { %3080 = vxpose.xlu1.b32.cont [15/16] %v7157_v2, 128 }
 0x7be   : > { %v5426_v61 = vpack.c.bf16 %v2880_v53, %v2879_v19  ;;  %v5686_v53 = vld [vmem:[%s6915_s21 + $0x28] sm:$0xff]  }
 0x7bf   : > { %v2821_v1 = vpop.permute.xlu1 %2820  ;;  %v2871_v16 = vpop.permute.xlu0 %2870 }
 0x7c0   : > { %v2878_v60 = vmul.f32 %v7211_v36, %v2821_v1  ;;  %v2888_v21 = vmul.f32 %v7253_v4, %v2871_v16  ;;  %v5681_v4 = vld [vmem:[%s6915_s21] sm:$0xff]   ;;  %v5688_v1 = vld [vmem:[%s6915_s21 + $0x38] sm:$0xff]  }
 0x7c1   : > { %3081 = vxpose.xlu1.b32.end [16/16] %v7161_v7, 128 }
 0x7c2   : > { %v5422_v44 = vpack.c.bf16 %v2878_v60, %v2877_v56 }
 0x7c3   : > { %v2846_v2 = vpop.permute.xlu1 %2845  ;;  %v3329_v47 = vpop.permute.xlu0 %3328 }
 0x7c4   : > { %5423 = vmatprep.subr.bf16.mxu1 %v5422_v44  ;;  %v2883_v37 = vmul.f32 %v2846_v2, %v7239_v57 }
 0x7c5   : > { %5425 = vmatpush3.bf16.msra.mxu1 %v5422_v44 }
 0x7c6   : > { %5427 = vmatprep.subr.bf16.mxu1 %v5426_v61 }
 0x7c7   : > { %v2836_v39 = vpop.permute.xlu1 %2835  ;;  %v3334_v8 = vpop.permute.xlu0 %3333 }
 0x7c8   : > { %v2881_v58 = vmul.f32 %v2836_v39, %v7231_v52 }
 0x7c9   : > { %5429 = vmatpush3.bf16.msra.mxu1 %v5426_v61  ;;  %v5687_v61 = vld [vmem:[%s6915_s21 + $0x30] sm:$0xff]  }
 0x7cb   : > { %v2851_v26 = vpop.permute.xlu1 %2850 }
 0x7cc   : > { %v2884_v36 = vmul.f32 %v7237_v55, %v2851_v26 }
 0x7ce   : > { %v5434_v45 = vpack.c.bf16 %v2884_v36, %v2883_v37 }
 0x7cf   : > { %v2841_v9 = vpop.permute.xlu1 %2840 }
 0x7d0   : > { %v2882_v7 = vmul.f32 %v7229_v50, %v2841_v9 }
 0x7d2   : > { %v5430_v41 = vpack.c.bf16 %v2882_v7, %v2881_v58  ;;  %v3427_v7 = vld [vmem:[#allocation3 + $0x28] sm:$0xff] }
 0x7d3   : > { %v2866_v20 = vpop.permute.xlu1 %2865 }
 0x7d4   : > { %v2887_v15 = vmul.f32 %v2866_v20, %v7255_v10  ;;  %5431 = vmatprep.subr.bf16.mxu1 %v5430_v41  ;;  %v3426_v20 = vld [vmem:[#allocation3 + $0x20] sm:$0xff] }
 0x7d5   : > { %5433 = vmatpush3.bf16.msra.mxu1 %v5430_v41 }
 0x7d6   : > { %v5442_v33 = vpack.c.bf16 %v2888_v21, %v2887_v15  ;;  %5435 = vmatprep.subr.bf16.mxu1 %v5434_v45 }
 0x7d7   : > { %v2856_v55 = vpop.permute.xlu1 %2855 }
 0x7d8   : > { %v2885_v52 = vmul.f32 %v2856_v55, %v8155_v22  ;;  %v3429_v22 = vld [vmem:[#allocation3 + $0x38] sm:$0xff] }
 0x7d9   : > { %5437 = vmatpush3.bf16.msra.mxu1 %v5434_v45 }
 0x7db   : > { %v2861_v57 = vpop.permute.xlu1 %2860 }
 0x7dc   : > { %v2886_v50 = vmul.f32 %v8156_v27, %v2861_v57 }
 0x7de   : > { %v5438_v28 = vpack.c.bf16 %v2886_v50, %v2885_v52  ;;  %v3428_v50 = vld [vmem:[#allocation3 + $0x30] sm:$0xff] }
 0x7e0   : > { %5439 = vmatprep.subr.bf16.mxu1 %v5438_v28 }
 0x7e1   : > { %5441 = vmatpush3.bf16.msra.mxu1 %v5438_v28 }
 0x7e2   : > { %5443 = vmatprep.subr.bf16.mxu1 %v5442_v33 }
 0x7e5   : > { %5445 = vmatpush3.bf16.msra.mxu1 %v5442_v33 }
 0x7e6   : > { %5318 = vmatprep.subr.bf16.mxu1 %v5681_v4 }
 0x805   : > { %v3082_v10 = vpop.trf.xlu1 }
 0x806   : > { %5294 = vmatprep.mubr.f32.mxu1 %v3082_v10 }
 0x809   : > { %v3083_v38 = vpop.trf.xlu1 }
 0x80a   : > { %5295 = vmatmul.mubr.f32.vlgmr.msra.gmra.mrb[48].mxu1 %v3083_v38 }
 0x80b   : > { %5319 = vmatpush3.bf16.msra.mxu1 %v5681_v4 }
 0x80c   : > { %5320 = vmatprep.subr.bf16.mxu1 %v5682_v40 }
 0x80d   : > { %v3084_v5 = vpop.trf.xlu1 }
 0x80e   : > { %5297 = vmatprep.mubr.f32.mxu1 %v3084_v5  ;;  %v3431_v5 = vld [vmem:[#allocation3 + $0x48] sm:$0xff] }
 0x80f   : > { %5321 = vmatpush3.bf16.msra.mxu1 %v5682_v40 }
 0x810   : > { %5322 = vmatprep.subr.bf16.mxu1 %v5683_v32 }
 0x811   : > { %v3085_v14 = vpop.trf.xlu1 }
 0x812   : > { %5298 = vmatmul.mubr.f32.gmra.mrb[50].mxu1 %v3085_v14 }
 0x813   : > { %5323 = vmatpush3.bf16.msra.mxu1 %v5683_v32 }
 0x814   : > { %5324 = vmatprep.subr.bf16.mxu1 %v5684_v46 }
 0x815   : > { %v3086_v19 = vpop.trf.xlu1 }
 0x816   : > { %5300 = vmatprep.mubr.f32.mxu1 %v3086_v19 }
 0x817   : > { %5325 = vmatpush3.bf16.msra.mxu1 %v5684_v46 }
 0x818   : > { %5326 = vmatprep.subr.bf16.mxu1 %v5685_v59 }
 0x819   : > { %v3087_v17 = vpop.trf.xlu1 }
 0x81a   : > { %5301 = vmatmul.mubr.f32.gmra.mrb[52].mxu1 %v3087_v17 }
 0x81b   : > { %5327 = vmatpush3.bf16.msra.mxu1 %v5685_v59  ;;  %v3430_v59 = vld [vmem:[#allocation3 + $0x40] sm:$0xff] }
 0x81c   : > { %5328 = vmatprep.subr.bf16.mxu1 %v5686_v53 }
 0x81d   : > { %v3088_v13 = vpop.trf.xlu1 }
 0x81e   : > { %5303 = vmatprep.mubr.f32.mxu1 %v3088_v13 }
 0x81f   : > { %5329 = vmatpush3.bf16.msra.mxu1 %v5686_v53 }
 0x820   : > { %5330 = vmatprep.subr.bf16.mxu1 %v5687_v61 }
 0x821   : > { %v3089_v56 = vpop.trf.xlu1 }
 0x822   : > { %5304 = vmatmul.mubr.f32.gmra.mrb[54].mxu1 %v3089_v56 }
 0x823   : > { %5331 = vmatpush3.bf16.msra.mxu1 %v5687_v61 }
 0x824   : > { %5332 = vmatprep.subr.bf16.mxu1 %v5688_v1 }
 0x825   : > { %v3090_v60 = vpop.trf.xlu1 }
 0x826   : > { %5306 = vmatprep.mubr.f32.mxu1 %v3090_v60 }
 0x827   : > { %5333 = vmatpush3.bf16.msra.mxu1 %v5688_v1  ;;  %v3433_v1 = vld [vmem:[#allocation3 + $0x58] sm:$0xff] }
 0x829   : > { %v3091_v44 = vpop.trf.xlu1 }
 0x82a   : > { %5307 = vmatmul.mubr.f32.gmra.mrb[56].mxu1 %v3091_v44  ;;  %v3432_v44 = vld [vmem:[#allocation3 + $0x50] sm:$0xff] }
 0x82d   : > { %v3092_v2 = vpop.trf.xlu1 }
 0x82e   : > { %5309 = vmatprep.mubr.f32.mxu1 %v3092_v2 }
 0x831   : > { %v3093_v39 = vpop.trf.xlu1 }
 0x832   : > { %5310 = vmatmul.mubr.f32.gmra.mrb[58].mxu1 %v3093_v39 }
 0x835   : > { %v3094_v26 = vpop.trf.xlu1 }
 0x836   : > { %5312 = vmatprep.mubr.f32.mxu1 %v3094_v26 }
 0x839   : > { %v3095_v37 = vpop.trf.xlu1 }
 0x83a   : > { %5313 = vmatmul.mubr.f32.gmra.mrb[60].mxu1 %v3095_v37 }
 0x83d   : > { %v3096_v36 = vpop.trf.xlu1 }
 0x83e   : > { %5315 = vmatprep.mubr.f32.mxu1 %v3096_v36 }
 0x841   : > { %v3097_v45 = vpop.trf.xlu1 }
 0x842   : > { %5316 = vmatmul.mubr.f32.gmra.mrb[62].mxu1 %v3097_v45  ;;  %v3435_v45 = vld [vmem:[#allocation3 + $0x68] sm:$0xff] }
 0x843   : > { %5334 = vmatprep.mubr.bf16.mxu1 %v3846_v11  ;;  %v3339_v11 = vpop.permute.xlu0 %3338 }
 0x846   : > { %5335 = vmatmul.mubr.bf16.vlgmr.msra.gmra.mrb[64].mxu1 %v3847_v48 }
 0x847   : > { %5338 = vmatprep.mubr.bf16.mxu1 %v3848_v30  ;;  %v3344_v49 = vpop.permute.xlu0 %3343 }
 0x84b   : > { %v3349_v18 = vpop.permute.xlu0 %3348 }
 0x84e   : > { %5339 = vmatmul.mubr.bf16.gmra.mrb[68].mxu1 %v3849_v34 }
 0x84f   : > { %5342 = vmatprep.mubr.bf16.mxu1 %v3850_v29  ;;  %v3354_v48 = vpop.permute.xlu0 %3353 }
 0x853   : > { %v3359_v34 = vpop.permute.xlu0 %3358 }
 0x856   : > { %5343 = vmatmul.mubr.bf16.gmra.mrb[72].mxu1 %v3851_v35  ;;  %v3425_v35 = vld [vmem:[#allocation3 + $0x18] sm:$0xff] }
 0x857   : > { %5346 = vmatprep.mubr.bf16.mxu1 %v3852_v31  ;;  %v3364_v51 = vpop.permute.xlu0 %3363  ;;  %v3424_v31 = vld [vmem:[#allocation3 + $0x10] sm:$0xff] }
 0x85b   : > { %v3369_v9 = vpop.permute.xlu0 %3368 }
 0x85e   : > { %5347 = vmatmul.mubr.bf16.gmra.mrb[76].mxu1 %v3853_v43 }
 0x85f   : > { %v3374_v33 = vpop.permute.xlu0 %3373 }
 0x863   : > { %v3379_v28 = vpop.permute.xlu0 %3378 }
 0x867   : > { %v3384_v38 = vpop.permute.xlu0 %3383 }
 0x86b   : > { %v3389_v61 = vpop.permute.xlu0 %3388 }
 0x86f   : > { %v3394_v26 = vpop.permute.xlu0 %3393 }
 0x8dd   : > { %v5296_v62 = vpop.f32.mrb[48].mxu1 }
 0x8de   : > { %v3407_v30 = vmul.f32 %v5296_v62, %v3334_v8  ;;  %v3164_v6 = vpop.f32.mrb[49].mxu1 }
 0x8df   : > { %v3406_v63 = vmul.f32 %v3329_v47, %v3164_v6  ;;  %v3437_v6 = vld [vmem:[#allocation3 + $0x78] sm:$0xff] }
 0x8e0   : > { %v3439_v12 = vadd.f32 %v3423_v25, %v3407_v30 }
 0x8e1   : > { %v3438_v29 = vadd.f32 %v3422_v0, %v3406_v63  ;;  %v3436_v63 = vld [vmem:[#allocation3 + $0x70] sm:$0xff] }
 0x8e2   : > { %3455 = vst [vmem:[#allocation3 + $0x8] sm:$0xff] %v3439_v12 }
 0x8e3   : > { %3454 = vst [vmem:[#allocation3] sm:$0xff] %v3438_v29  ;;  %v7878_v29 = vld [vmem:[%s973_s18] ss:$0 sm:$0xff]  ;;  %s8158_s18 = sld [smem:[#allocation31_spill]] }
 0x8e5   : > { %v5299_v23 = vpop.f32.mrb[50].mxu1 }
 0x8e6   : > { %v3409_v24 = vmul.f32 %v5299_v23, %v3344_v49  ;;  %v3174_v42 = vpop.f32.mrb[51].mxu1  ;;  %v3399_v49 = vpop.permute.xlu0 %3398 }
 0x8e7   : > { %v3408_v3 = vmul.f32 %v3339_v11, %v3174_v42  ;;  %v3434_v11 = vld [vmem:[#allocation3 + $0x60] sm:$0xff] }
 0x8e8   : > { %v3441_v54 = vadd.f32 %v3425_v35, %v3409_v24 }
 0x8e9   : > { %v3440_v43 = vadd.f32 %v3424_v31, %v3408_v3  ;;  %p4736_p7 = scmp.ne.s32.totalorder %s8158_s18, 3 }
 0x8ea   : > { %3457 = vst [vmem:[#allocation3 + $0x18] sm:$0xff] %v3441_v54  ;;  %v3404_v25 = vpop.permute.xlu0 %3403  ;;  %v5945_v54 = vld [vmem:[#allocation2 + $0x10] sm:$0xff]  ;;  %s8159_s15 = sld [smem:[#allocation56_spill]] (!%p4736_p7) }
 0x8eb   : > { %3456 = vst [vmem:[#allocation3 + $0x10] sm:$0xff] %v3440_v43 }
 0x8ed   : > { %v5302_v58 = vpop.f32.mrb[52].mxu1 }
 0x8ee   : > { %v3411_v16 = vmul.f32 %v5302_v58, %v3354_v48  ;;  %v3184_v41 = vpop.f32.mrb[53].mxu1 }
 0x8ef   : > { %v3410_v21 = vmul.f32 %v3349_v18, %v3184_v41 }
 0x8f0   : > { %v3443_v15 = vadd.f32 %v3427_v7, %v3411_v16  ;;  %v5946_v7 = vld [vmem:[#allocation2] sm:$0xff] }
 0x8f1   : > { %v3442_v55 = vadd.f32 %v3426_v20, %v3410_v21  ;;  %v5947_v20 = vld [vmem:[#allocation2 + $0x18] sm:$0xff] }
 0x8f2   : > { %3459 = vst [vmem:[#allocation3 + $0x28] sm:$0xff] %v3443_v15  ;;  %v5948_v15 = vld [vmem:[#allocation2 + $0x8] sm:$0xff] }
 0x8f3   : > { %3458 = vst [vmem:[#allocation3 + $0x20] sm:$0xff] %v3442_v55 }
 0x8f5   : > { %v5305_v57 = vpop.f32.mrb[54].mxu1 }
 0x8f6   : > { %v3413_v52 = vmul.f32 %v5305_v57, %v3364_v51  ;;  %v3194_v27 = vpop.f32.mrb[55].mxu1 }
 0x8f7   : > { %v3412_v4 = vmul.f32 %v3359_v34, %v3194_v27 }
 0x8f8   : > { %v3445_v10 = vadd.f32 %v3429_v22, %v3413_v52 }
 0x8f9   : > { %v3444_v40 = vadd.f32 %v3428_v50, %v3412_v4  ;;  %v5949_v50 = vld [vmem:[#allocation2 + $0x30] sm:$0xff] }
 0x8fa   : > { %3461 = vst [vmem:[#allocation3 + $0x38] sm:$0xff] %v3445_v10 }
 0x8fb   : > { %3460 = vst [vmem:[#allocation3 + $0x30] sm:$0xff] %v3444_v40  ;;  %v5950_v40 = vld [vmem:[#allocation2 + $0x20] sm:$0xff] }
 0x8fd   : > { %v5308_v32 = vpop.f32.mrb[56].mxu1 }
 0x8fe   : > { %v3415_v46 = vmul.f32 %v5308_v32, %v3374_v33  ;;  %v3204_v14 = vpop.f32.mrb[57].mxu1 }
 0x8ff   : > { %v3414_v19 = vmul.f32 %v3369_v9, %v3204_v14  ;;  %v5952_v14 = vld [vmem:[#allocation2 + $0x28] sm:$0xff] }
 0x900   : > { %v3447_v53 = vadd.f32 %v3431_v5, %v3415_v46  ;;  %v5951_v5 = vld [vmem:[#allocation2 + $0x38] sm:$0xff] }
 0x901   : > { %v3446_v17 = vadd.f32 %v3430_v59, %v3414_v19 }
 0x902   : > { %3463 = vst [vmem:[#allocation3 + $0x48] sm:$0xff] %v3447_v53 }
 0x903   : > { %3462 = vst [vmem:[#allocation3 + $0x40] sm:$0xff] %v3446_v17 }
 0x905   : > { %v5311_v13 = vpop.f32.mrb[58].mxu1 }
 0x906   : > { %v3417_v56 = vmul.f32 %v5311_v13, %v3384_v38  ;;  %v3214_v60 = vpop.f32.mrb[59].mxu1 }
 0x907   : > { %v3416_v2 = vmul.f32 %v3379_v28, %v3214_v60 }
 0x908   : > { %v3449_v39 = vadd.f32 %v3433_v1, %v3417_v56  ;;  %v5953_v1 = vld [vmem:[#allocation2 + $0x50] sm:$0xff] }
 0x909   : > { %v3448_v37 = vadd.f32 %v3432_v44, %v3416_v2  ;;  %v5954_v2 = vld [vmem:[#allocation2 + $0x40] sm:$0xff] }
 0x90a   : > { %3465 = vst [vmem:[#allocation3 + $0x58] sm:$0xff] %v3449_v39 }
 0x90b   : > { %3464 = vst [vmem:[#allocation3 + $0x50] sm:$0xff] %v3448_v37  ;;  %v5955_v37 = vld [vmem:[#allocation2 + $0x58] sm:$0xff] }
 0x90d   : > { %v5314_v36 = vpop.f32.mrb[60].mxu1 }
 0x90e   : > { %v3419_v47 = vmul.f32 %v5314_v36, %v3394_v26  ;;  %v3224_v8 = vpop.f32.mrb[61].mxu1 }
 0x90f   : > { %v3418_v18 = vmul.f32 %v3389_v61, %v3224_v8 }
 0x910   : > { %v3451_v48 = vadd.f32 %v3435_v45, %v3419_v47  ;;  %v5956_v45 = vld [vmem:[#allocation2 + $0x48] sm:$0xff] }
 0x911   : > { %v3450_v62 = vadd.f32 %v3434_v11, %v3418_v18 }
 0x912   : > { %3467 = vst [vmem:[#allocation3 + $0x68] sm:$0xff] %v3451_v48 }
 0x913   : > { %3466 = vst [vmem:[#allocation3 + $0x60] sm:$0xff] %v3450_v62  ;;  %v5957_v62 = vld [vmem:[#allocation2 + $0x70] sm:$0xff] }
 0x915   : > { %v5317_v30 = vpop.f32.mrb[62].mxu1 }
 0x916   : > { %v3421_v0 = vmul.f32 %v5317_v30, %v3404_v25  ;;  %v3234_v34 = vpop.f32.mrb[63].mxu1 }
 0x917   : > { %v3420_v12 = vmul.f32 %v3399_v49, %v3234_v34 }
 0x918   : > { %v3453_v51 = vadd.f32 %v3437_v6, %v3421_v0  ;;  %v5958_v0 = vld [vmem:[#allocation2 + $0x60] sm:$0xff] }
 0x919   : > { %v3452_v23 = vadd.f32 %v3436_v63, %v3420_v12  ;;  %v5336_v35 = vpop.f32.mrb[64].mxu1  ;;  %v5959_v12 = vld [vmem:[#allocation2 + $0x78] sm:$0xff] }
 0x91a   : > { %3469 = vst [vmem:[#allocation3 + $0x78] sm:$0xff] %v3453_v51  ;;  %v3968_v24 = vadd.f32 %v5336_v35, %v7878_v29  ;;  %v3959_v42 = vpop.f32.mrb[65].mxu1 }
 0x91b   : > { %3468 = vst [vmem:[#allocation3 + $0x70] sm:$0xff] %v3452_v23  ;;  %v3960_v31 = vadd.f32 %v7878_v29, %v3959_v42  ;;  %v5337_v3 = vpop.f32.mrb[66].mxu1  ;;  %v5960_v23 = vld [vmem:[#allocation2 + $0x68] sm:$0xff] }
 0x91c   : > { %v7882_v43 = vadd.f32 %v5945_v54, %v3968_v24  ;;  %v3971_v9 = vadd.f32 %v5337_v3, %v7878_v29  ;;  %v3962_v58 = vpop.f32.mrb[67].mxu1  ;;  %v5961_v24 = vld [vmem:[#allocation20] sm:$0xff] (!%p4736_p7)   ;;  %v5962_v42 = vld [vmem:[#allocation20 + $0x8] sm:$0xff] (!%p4736_p7)   ;;  %v5963_v3 = vld [vmem:[#allocation20 + $0x10] sm:$0xff] (!%p4736_p7)  }
 0x91d   : > { %v7885_v16 = vadd.f32 %v5946_v7, %v3960_v31  ;;  %v3963_v41 = vadd.f32 %v7878_v29, %v3962_v58  ;;  %5350 = vmatprep.subr.bf16.mxu0 (!%p4736_p7), %v5961_v24  ;;  %5462 = vmatprep.subr.bf16.mxu1 (!%p4736_p7), %v5961_v24  ;;  %v5964_v54 = vld [vmem:[#allocation20 + $0x18] sm:$0xff] (!%p4736_p7)   ;;  %v5966_v58 = vld [vmem:[#allocation20 + $0x28] sm:$0xff] (!%p4736_p7)   ;;  %v5967_v7 = vld [vmem:[#allocation20 + $0x30] sm:$0xff] (!%p4736_p7)  }
 0x91e   : > { %4040 = vst [vmem:[#allocation2 + $0x10] sm:$0xff] %v7882_v43  ;;  %v7889_v21 = vadd.f32 %v5947_v20, %v3971_v9  ;;  %5351 = vmatpush3.bf16.msra.mxu0 (!%p4736_p7), %v5961_v24  ;;  %5470 = vmatpush3.bf16.msra.mxu1 (!%p4736_p7), %v5961_v24  ;;  %v5965_v9 = vld [vmem:[#allocation20 + $0x20] sm:$0xff] (!%p4736_p7)  }
 0x91f   : > { %4038 = vst [vmem:[#allocation2] sm:$0xff] %v7885_v16  ;;  %v7892_v33 = vadd.f32 %v5948_v15, %v3963_v41  ;;  %5352 = vmatprep.subr.bf16.mxu0 (!%p4736_p7), %v5962_v42  ;;  %5463 = vmatprep.subr.bf16.mxu1 (!%p4736_p7), %v5962_v42 }
 0x920   : > { %4041 = vst [vmem:[#allocation2 + $0x18] sm:$0xff] %v7889_v21  ;;  %v4059_v41 = vpack.c.bf16 (!%p4736_p7), %v7889_v21, %v7882_v43  ;;  %v4250_v21 = vld [vmem:[#allocation3] sm:$0xff] (!%p4736_p7) }
 0x921   : > { %4039 = vst [vmem:[#allocation2 + $0x8] sm:$0xff] %v7892_v33  ;;  %v5340_v55 = vpop.f32.mrb[68].mxu1  ;;  %4266 = vst [vmem:[#allocation22] sm:$0xff] (!%p4736_p7), %v4250_v21 }
 0x922   : > { %v3984_v57 = vadd.f32 %v5340_v55, %v7878_v29  ;;  %v3975_v22 = vpop.f32.mrb[69].mxu1  ;;  %5353 = vmatpush3.bf16.msra.mxu0 (!%p4736_p7), %v5962_v42  ;;  %5471 = vmatpush3.bf16.msra.mxu1 (!%p4736_p7), %v5962_v42 }
 0x923   : > { %v3976_v52 = vadd.f32 %v7878_v29, %v3975_v22  ;;  %v5341_v27 = vpop.f32.mrb[70].mxu1  ;;  %5354 = vmatprep.subr.bf16.mxu0 (!%p4736_p7), %v5963_v3  ;;  %5464 = vmatprep.subr.bf16.mxu1 (!%p4736_p7), %v5963_v3  ;;  %v4252_v22 = vld [vmem:[#allocation3 + $0x10] sm:$0xff] (!%p4736_p7) }
 0x924   : > { %v7898_v28 = vadd.f32 %v5949_v50, %v3984_v57  ;;  %v3987_v4 = vadd.f32 %v5341_v27, %v7878_v29  ;;  %v3978_v10 = vpop.f32.mrb[71].mxu1  ;;  %v4251_v57 = vld [vmem:[#allocation3 + $0x8] sm:$0xff] (!%p4736_p7)  ;;  %v4254_v27 = vld [vmem:[#allocation3 + $0x20] sm:$0xff] (!%p4736_p7)  ;;  %4268 = vst [vmem:[#allocation22 + $0x10] sm:$0xff] (!%p4736_p7), %v4252_v22 }
 0x925   : > { %v7901_v38 = vadd.f32 %v5950_v40, %v3976_v52  ;;  %v3979_v32 = vadd.f32 %v7878_v29, %v3978_v10  ;;  %v4253_v52 = vld [vmem:[#allocation3 + $0x18] sm:$0xff] (!%p4736_p7)  ;;  %v4255_v50 = vld [vmem:[#allocation3 + $0x28] sm:$0xff] (!%p4736_p7)  ;;  %4267 = vst [vmem:[#allocation22 + $0x8] sm:$0xff] (!%p4736_p7), %v4251_v57  ;;  %v4258_v40 = vld [vmem:[#allocation3 + $0x40] sm:$0xff] (!%p4736_p7) }
 0x926   : > { %4044 = vst [vmem:[#allocation2 + $0x30] sm:$0xff] %v7898_v28  ;;  %v7905_v46 = vadd.f32 %v5951_v5, %v3987_v4  ;;  %5355 = vmatpush3.bf16.msra.mxu0 (!%p4736_p7), %v5963_v3  ;;  %5472 = vmatpush3.bf16.msra.mxu1 (!%p4736_p7), %v5963_v3  ;;  %v4256_v4 = vld [vmem:[#allocation3 + $0x30] sm:$0xff] (!%p4736_p7)  ;;  %v4257_v10 = vld [vmem:[#allocation3 + $0x38] sm:$0xff] (!%p4736_p7)  ;;  %4269 = vst [vmem:[#allocation22 + $0x18] sm:$0xff] (!%p4736_p7), %v4253_v52 }
 0x927   : > { %4042 = vst [vmem:[#allocation2 + $0x20] sm:$0xff] %v7901_v38  ;;  %v7908_v59 = vadd.f32 %v5952_v14, %v3979_v32  ;;  %5356 = vmatprep.subr.bf16.mxu0 (!%p4736_p7), %v5964_v54  ;;  %5465 = vmatprep.subr.bf16.mxu1 (!%p4736_p7), %v5964_v54  ;;  %4270 = vst [vmem:[#allocation22 + $0x20] sm:$0xff] (!%p4736_p7), %v4254_v27  ;;  %v4261_v32 = vld [vmem:[#allocation3 + $0x58] sm:$0xff] (!%p4736_p7)  ;;  %v4262_v5 = vld [vmem:[#allocation3 + $0x60] sm:$0xff] (!%p4736_p7) }
 0x928   : > { %4045 = vst [vmem:[#allocation2 + $0x38] sm:$0xff] %v7905_v46  ;;  %v4061_v55 = vpack.c.bf16 (!%p4736_p7), %v7905_v46, %v7898_v28  ;;  %4271 = vst [vmem:[#allocation22 + $0x28] sm:$0xff] (!%p4736_p7), %v4255_v50  ;;  %v4259_v28 = vld [vmem:[#allocation3 + $0x48] sm:$0xff] (!%p4736_p7)  ;;  %v4264_v14 = vld [vmem:[#allocation3 + $0x70] sm:$0xff] (!%p4736_p7) }
 0x929   : > { %4043 = vst [vmem:[#allocation2 + $0x28] sm:$0xff] %v7908_v59  ;;  %v5344_v19 = vpop.f32.mrb[72].mxu1  ;;  %v4060_v15 = vpack.c.bf16 (!%p4736_p7), %v7908_v59, %v7901_v38  ;;  %v4260_v38 = vld [vmem:[#allocation3 + $0x50] sm:$0xff] (!%p4736_p7)  ;;  %4272 = vst [vmem:[#allocation22 + $0x30] sm:$0xff] (!%p4736_p7), %v4256_v4  ;;  %v4263_v46 = vld [vmem:[#allocation3 + $0x68] sm:$0xff] (!%p4736_p7) }
 0x92a   : > { %v4000_v53 = vadd.f32 %v5344_v19, %v7878_v29  ;;  %v3991_v17 = vpop.f32.mrb[73].mxu1  ;;  %5357 = vmatpush3.bf16.msra.mxu0 (!%p4736_p7), %v5964_v54  ;;  %5473 = vmatpush3.bf16.msra.mxu1 (!%p4736_p7), %v5964_v54  ;;  %4273 = vst [vmem:[#allocation22 + $0x38] sm:$0xff] (!%p4736_p7), %v4257_v10  ;;  %4274 = vst [vmem:[#allocation22 + $0x40] sm:$0xff] (!%p4736_p7), %v4258_v40  ;;  %v4265_v59 = vld [vmem:[#allocation3 + $0x78] sm:$0xff] (!%p4736_p7)  ;;  %v4737_v19 = vld [vmem:[%s8159_s15] ss:$0 sm:$0xff] (!%p4736_p7) }
 0x92b   : > { %v3992_v61 = vadd.f32 %v7878_v29, %v3991_v17  ;;  %v5345_v13 = vpop.f32.mrb[74].mxu1  ;;  %5358 = vmatprep.subr.bf16.mxu0 (!%p4736_p7), %v5965_v9  ;;  %5466 = vmatprep.subr.bf16.mxu1 (!%p4736_p7), %v5965_v9  ;;  %4275 = vst [vmem:[#allocation22 + $0x48] sm:$0xff] (!%p4736_p7), %v4259_v28  ;;  %4276 = vst [vmem:[#allocation22 + $0x50] sm:$0xff] (!%p4736_p7), %v4260_v38 }
 0x92c   : > { %v7914_v56 = vadd.f32 %v5953_v1, %v4000_v53  ;;  %v4003_v60 = vadd.f32 %v5345_v13, %v7878_v29  ;;  %v3994_v44 = vpop.f32.mrb[75].mxu1  ;;  %4277 = vst [vmem:[#allocation22 + $0x58] sm:$0xff] (!%p4736_p7), %v4261_v32  ;;  %4278 = vst [vmem:[#allocation22 + $0x60] sm:$0xff] (!%p4736_p7), %v4262_v5 }
 0x92d   : > { %v4030_v39 = vadd.f32 %v5954_v2, %v3992_v61  ;;  %v3995_v26 = vadd.f32 %v7878_v29, %v3994_v44  ;;  %4279 = vst [vmem:[#allocation22 + $0x68] sm:$0xff] (!%p4736_p7), %v4263_v46  ;;  %4280 = vst [vmem:[#allocation22 + $0x70] sm:$0xff] (!%p4736_p7), %v4264_v14 }
 0x92e   : > { %4048 = vst [vmem:[#allocation2 + $0x50] sm:$0xff] %v7914_v56  ;;  %v7919_v36 = vadd.f32 %v5955_v37, %v4003_v60  ;;  %5359 = vmatpush3.bf16.msra.mxu0 (!%p4736_p7), %v5965_v9  ;;  %5474 = vmatpush3.bf16.msra.mxu1 (!%p4736_p7), %v5965_v9  ;;  %4281 = vst [vmem:[#allocation22 + $0x78] sm:$0xff] (!%p4736_p7), %v4265_v59 }
 0x92f   : > { %4046 = vst [vmem:[#allocation2 + $0x40] sm:$0xff] %v4030_v39  ;;  %v4031_v47 = vadd.f32 %v5956_v45, %v3995_v26  ;;  %5360 = vmatprep.subr.bf16.mxu0 (!%p4736_p7), %v5966_v58  ;;  %5467 = vmatprep.subr.bf16.mxu1 (!%p4736_p7), %v5966_v58 }
 0x930   : > { %4049 = vst [vmem:[#allocation2 + $0x58] sm:$0xff] %v7919_v36  ;;  %v4063_v20 = vpack.c.bf16 (!%p4736_p7), %v7919_v36, %v7914_v56 }
 0x931   : > { %4047 = vst [vmem:[#allocation2 + $0x48] sm:$0xff] %v4031_v47  ;;  %v5348_v8 = vpop.f32.mrb[76].mxu1  ;;  %v4062_v31 = vpack.c.bf16 (!%p4736_p7), %v4031_v47, %v4030_v39 }
 0x932   : > { %v4016_v11 = vadd.f32 %v5348_v8, %v7878_v29  ;;  %v4007_v49 = vpop.f32.mrb[77].mxu1  ;;  %5361 = vmatpush3.bf16.msra.mxu0 (!%p4736_p7), %v5966_v58  ;;  %5475 = vmatpush3.bf16.msra.mxu1 (!%p4736_p7), %v5966_v58 }
 0x933   : > { %v4008_v18 = vadd.f32 %v7878_v29, %v4007_v49  ;;  %v5349_v48 = vpop.f32.mrb[78].mxu1  ;;  %4057 = sbr.rel (%p4736_p7) target bundleno = 2591 (0xa1f), region = 152  ;;  %5374 = vmatprep.mubr.bf16.mxu1 (!%p4736_p7), %v4062_v31  ;;  %5362 = vmatprep.subr.bf16.mxu0 (!%p4736_p7), %v5967_v7 }
 0x934   : > { %v7924_v25 = vadd.f32 %v5957_v62, %v4016_v11  ;;  %v4019_v30 = vadd.f32 %v5349_v48, %v7878_v29  ;;  %v4010_v6 = vpop.f32.mrb[79].mxu1  ;;  %5468 = vmatprep.subr.bf16.mxu1 (!%p4736_p7), %v5967_v7 }
 0x935   : > { %v7927_v34 = vadd.f32 %v5958_v0, %v4008_v18  ;;  %v4011_v63 = vadd.f32 %v7878_v29, %v4010_v6  ;;  %v4058_v29 = vpack.c.bf16 (!%p4736_p7), %v7892_v33, %v7885_v16  ;;  %v5968_v16 = vld [vmem:[#allocation20 + $0x38] sm:$0xff] (!%p4736_p7)  }
 0x936   : > { %4052 = vst [vmem:[#allocation2 + $0x70] sm:$0xff] %v7924_v25  ;;  %v7931_v51 = vadd.f32 %v5959_v12, %v4019_v30  ;;  %5363 = vmatpush3.bf16.msra.mxu0 (!%p4736_p7), %v5967_v7  ;;  %5476 = vmatpush3.bf16.msra.mxu1 (!%p4736_p7), %v5967_v7 }
 0x937   : > { %4050 = vst [vmem:[#allocation2 + $0x60] sm:$0xff] %v7927_v34  ;;  %v4035_v35 = vadd.f32 %v5960_v23, %v4011_v63  ;;  %5366 = vmatprep.mubr.bf16.mxu0 (!%p4736_p7), %v4058_v29  ;;  %5364 = vmatprep.subr.bf16.mxu0 (!%p4736_p7), %v5968_v16 }
 0x938   : > { %4053 = vst [vmem:[#allocation2 + $0x78] sm:$0xff] %v7931_v51  ;;  %5469 = vmatprep.subr.bf16.mxu1 (!%p4736_p7), %v5968_v16  ;;  %v4065_v43 = vpack.c.bf16 (!%p4736_p7), %v7931_v51, %v7924_v25 }
 0x939   : > { %4051 = vst [vmem:[#allocation2 + $0x68] sm:$0xff] %v4035_v35  ;;  %v4064_v33 = vpack.c.bf16 (!%p4736_p7), %v4035_v35, %v7927_v34 }
 0x93a   : > { %5365 = vmatpush3.bf16.msra.mxu0 %v5968_v16  ;;  %5477 = vmatpush3.bf16.msra.mxu1 %v5968_v16 }
 0x93d   : > { %5367 = vmatmul.mubr.bf16.vlgmr.msra.gmra.mrb[0].mxu0 %v4059_v41  ;;  %5375 = vmatmul.mubr.bf16.vlgmr.msra.gmra.mrb[0].mxu1 %v4063_v20 }
 0x93e   : > { %5370 = vmatprep.mubr.bf16.mxu0 %v4060_v15  ;;  %5378 = vmatprep.mubr.bf16.mxu1 %v4064_v33 }
 0x945   : > { %5371 = vmatmul.mubr.bf16.gmra.mrb[4].mxu0 %v4061_v55  ;;  %5379 = vmatmul.mubr.bf16.gmra.mrb[4].mxu1 %v4065_v43 }
 0xa10   : > { %v5368_v53 = vpop.f32.mrb[0].mxu0  ;;  %v5376_v17 = vpop.f32.mrb[0].mxu1 }
 0xa11   : > { %v4180_v61 = vadd.f32 %v5368_v53, %v4737_v19  ;;  %v4212_v13 = vadd.f32 %v5376_v17, %v4737_v19  ;;  %v4171_v1 = vpop.f32.mrb[1].mxu0  ;;  %v4203_v56 = vpop.f32.mrb[1].mxu1 }
 0xa12   : > { %v4172_v60 = vadd.f32 %v4737_v19, %v4171_v1  ;;  %v4204_v44 = vadd.f32 %v4737_v19, %v4203_v56  ;;  %v5369_v2 = vpop.f32.mrb[2].mxu0  ;;  %v5377_v39 = vpop.f32.mrb[2].mxu1 }
 0xa13   : > { %4236 = vst [vmem:[#allocation21 + $0x10] sm:$0xff] %v4180_v61  ;;  %4244 = vst [vmem:[#allocation21 + $0x50] sm:$0xff] %v4212_v13  ;;  %v4183_v26 = vadd.f32 %v5369_v2, %v4737_v19  ;;  %v4215_v37 = vadd.f32 %v5377_v39, %v4737_v19  ;;  %v4174_v36 = vpop.f32.mrb[3].mxu0  ;;  %v4206_v45 = vpop.f32.mrb[3].mxu1 }
 0xa14   : > { %4234 = vst [vmem:[#allocation21] sm:$0xff] %v4172_v60  ;;  %4242 = vst [vmem:[#allocation21 + $0x40] sm:$0xff] %v4204_v44  ;;  %v4175_v47 = vadd.f32 %v4737_v19, %v4174_v36  ;;  %v4207_v8 = vadd.f32 %v4737_v19, %v4206_v45 }
 0xa15   : > { %4237 = vst [vmem:[#allocation21 + $0x18] sm:$0xff] %v4183_v26  ;;  %4245 = vst [vmem:[#allocation21 + $0x58] sm:$0xff] %v4215_v37 }
 0xa16   : > { %4235 = vst [vmem:[#allocation21 + $0x8] sm:$0xff] %v4175_v47  ;;  %4243 = vst [vmem:[#allocation21 + $0x48] sm:$0xff] %v4207_v8 }
 0xa18   : > { %v5372_v11 = vpop.f32.mrb[4].mxu0  ;;  %v5380_v49 = vpop.f32.mrb[4].mxu1 }
 0xa19   : > { %v4196_v18 = vadd.f32 %v5372_v11, %v4737_v19  ;;  %v4228_v48 = vadd.f32 %v5380_v49, %v4737_v19  ;;  %v4187_v62 = vpop.f32.mrb[5].mxu0  ;;  %v4219_v25 = vpop.f32.mrb[5].mxu1 }
 0xa1a   : > { %v4188_v30 = vadd.f32 %v4737_v19, %v4187_v62  ;;  %v4220_v6 = vadd.f32 %v4737_v19, %v4219_v25  ;;  %v5373_v0 = vpop.f32.mrb[6].mxu0  ;;  %v5381_v34 = vpop.f32.mrb[6].mxu1 }
 0xa1b   : > { %4240 = vst [vmem:[#allocation21 + $0x30] sm:$0xff] %v4196_v18  ;;  %4248 = vst [vmem:[#allocation21 + $0x70] sm:$0xff] %v4228_v48  ;;  %v4199_v63 = vadd.f32 %v5373_v0, %v4737_v19  ;;  %v4231_v12 = vadd.f32 %v5381_v34, %v4737_v19  ;;  %v4190_v51 = vpop.f32.mrb[7].mxu0  ;;  %v4222_v23 = vpop.f32.mrb[7].mxu1 }
 0xa1c   : > { %4238 = vst [vmem:[#allocation21 + $0x20] sm:$0xff] %v4188_v30  ;;  %4246 = vst [vmem:[#allocation21 + $0x60] sm:$0xff] %v4220_v6  ;;  %v4191_v35 = vadd.f32 %v4737_v19, %v4190_v51  ;;  %v4223_v24 = vadd.f32 %v4737_v19, %v4222_v23 }
 0xa1d   : > { %4241 = vst [vmem:[#allocation21 + $0x38] sm:$0xff] %v4199_v63  ;;  %4249 = vst [vmem:[#allocation21 + $0x78] sm:$0xff] %v4231_v12 }
 0xa1e   : > { %4239 = vst [vmem:[#allocation21 + $0x28] sm:$0xff] %v4191_v35  ;;  %4247 = vst [vmem:[#allocation21 + $0x68] sm:$0xff] %v4223_v24 }
 0xa1f PF: > { %p5551_p2 = scmp.eq.s32.totalorder %s6540_s3, 3  ;;  %s6402_s17 = smov [#allocation21]  }
 0xa20   : > { %s4288_s8 = sshll.u32 %s6402_s17, 4  ;;  %s4289_s8 = int_to_ptr.vmem [resolvable:$true] %s4288_s8 }
 0xa21   : > { %s6263_s16 = scalar_lea.vmem %s4289_s8, 2048  ;;  %p6270_p6 = scmp.lt.s32.totalorder %s4289_s8, %s4289_s8 }
 0xa22   : > { %p6264_p1 = scmp.ne.s32.totalorder %s4289_s8, %s6263_s16  ;;  %p6271_p9 = scmp.lt.s32.totalorder %s6263_s16, %s6263_s16 }
 0xa24   : > { %p6265_p8 = pnand %p6264_p1, %p5551_p2  ;;  %p6272_p11 = por %p6271_p9, %p6270_p6 }
 0xa26   : > { %p6266_p13 = pneg %p6265_p8 }
 0xa28   : > { %p6273_p0 = pnand %p6272_p11, %p6266_p13 }
 0xa2a   : > { %6276 = shalt.err (!%p6273_p0)
}
 0xa2b   : > { %s8160_s27 = sld [smem:[#allocation57_spill]] }
 0xa31   : > { %s6277_s26 = scalar_lea.hbm %s8160_s27, 2048 }
 0xa32   : > { %p6278_p4 = scmp.ne.s32.totalorder %s8160_s27, %s6277_s26  ;;  %p6283_p10 = scmp.lt.u32.totalorder %s6277_s26, %s8160_s27 }
 0xa34   : > { %p6279_p12 = pnand %p6278_p4, %p5551_p2 }
 0xa36   : > { %p6280_p3 = pneg %p6279_p12 }
 0xa38   : > { %p6285_p5 = pnand %p6283_p10, %p6280_p3 }
 0xa3a   : > { %6288 = shalt.err (!%p6285_p5)
}
 0xa3b   : > { %s6403_s6 = smov 128   ;;  %s6404_s29 = smov 8  }
 0xa3c   : > { %5505 = dma.vmem_to_hbm [thread:$0]  (%p5551_p2), %s4289_s8, 2048, %s8160_s27, [#allocation10], %s6403_s6, %s6403_s6, %s6404_s29  }
 0xa3d   : > { %s6405_s12 = smov [#allocation22]  }
 0xa3e   : > { %s4301_s1 = sshll.u32 %s6405_s12, 4  ;;  %s4302_s1 = int_to_ptr.vmem [resolvable:$true] %s4301_s1 }
 0xa3f   : > { %s6289_s0 = scalar_lea.vmem %s4302_s1, 2048  ;;  %p6296_p13 = scmp.lt.s32.totalorder %s4302_s1, %s4302_s1 }
 0xa40   : > { %p6290_p7 = scmp.ne.s32.totalorder %s4302_s1, %s6289_s0  ;;  %p6297_p6 = scmp.lt.s32.totalorder %s6289_s0, %s6289_s0 }
 0xa42   : > { %p6291_p1 = pnand %p6290_p7, %p5551_p2  ;;  %p6298_p9 = por %p6297_p6, %p6296_p13 }
 0xa44   : > { %p6292_p8 = pneg %p6291_p1 }
 0xa46   : > { %p6299_p11 = pnand %p6298_p9, %p6292_p8 }
 0xa48   : > { %6302 = shalt.err (!%p6299_p11)
}
 0xa49   : > { %s8161_s13 = sld [smem:[#allocation58_spill]] }
 0xa4f   : > { %s6303_s18 = scalar_lea.hbm %s8161_s13, 2048 }
 0xa50   : > { %p6304_p0 = scmp.ne.s32.totalorder %s8161_s13, %s6303_s18  ;;  %p6309_p3 = scmp.lt.u32.totalorder %s6303_s18, %s8161_s13 }
 0xa52   : > { %p6305_p4 = pnand %p6304_p0, %p5551_p2 }
 0xa54   : > { %p6306_p12 = pneg %p6305_p4 }
 0xa56   : > { %p6311_p10 = pnand %p6309_p3, %p6306_p12 }
 0xa58   : > { %6314 = shalt.err (!%p6311_p10)
}
 0xa59   : > { %5507 = dma.vmem_to_hbm [thread:$0]  (%p5551_p2), %s4302_s1, 2048, %s8161_s13, [#allocation23], %s6403_s6, %s6403_s6, %s6404_s29  }
 0xa5a   : > { %6356 = dma.done.wait (%p5551_p2), [#allocation10], 2048  }
 0xa5b   : > { %6358 = vsyncadd (%p5551_p2), [#allocation10], 4294965248 }
 0xa5c   : > { %6360 = dma.done.wait (%p5551_p2), [#allocation23], 2048  }
 0xa5d   : > { %6362 = vsyncadd (%p5551_p2), [#allocation23], 4294965248 }
 0xa5e PF: > { %s8162_s19 = sld [smem:[#allocation32_spill]]  ;;  %s8163_s5 = sld [smem:[#allocation30_spill]] }
 0xa5f   : > { %s8164_s23 = sld [smem:[#allocation35_spill]]  ;;  %s8165_s26 = sld [smem:[#allocation34_spill]] }
 0xa60   : > { %s8166_s1 = smov %s6369_s22  ;;  %s8168_s24 = smov %s6381_s2 }
 0xa64   : > { %s35_s25 = sadd.s32 1, %s8162_s19   ;;  %s8167_s22 = smov %s8163_s5 }
 0xa65   : > { %p32_p5 = scmp.ge.s32.totalorder %s35_s25, 6   ;;  %s8169_s2 = smov %s8165_s26 }
 0xa67   :  { %34 = sbr.rel (!%p32_p5) target bundleno = 28 (0x1c), region = 251 }
 0xa6e   :  { %4321 = vsyncpa [#allocation9], 1 }
 0xa6f   :  { %4323 = vsyncpa [#allocation9 + $0x1], 1 }
 0xa70   :  { %4324 = vsyncpa [#allocation12], 1 }
 0xa71   :  { %4325 = vsyncpa [#allocation10], 1 }
 0xa72   :  { %4327 = vsyncpa [#allocation10 + $0x1], 1 }
 0xa73   :  { %4328 = vsyncpa [#allocation23], 1 }

</bundles_post_ra>
